<compile_context>
chip_gen: v7x
topology: tpu7x:2x2x1
jax: 0.10.0
libtpu: 0.0.40
codegen_flags: <defaults>
</compile_context>

<pallas_src>
import functools

import jax
import jax.numpy as jnp
from jax.experimental import pallas as pl
from jax.experimental.pallas import tpu as pltpu


# ---------------------------------------------------------------------------
# small helpers (wrapper-side layout plumbing)
# ---------------------------------------------------------------------------
def _round_up(n, m):
    return ((n + m - 1) // m) * m


def _pad_last(x, target):
    pad = target - x.shape[-1]
    if pad == 0:
        return x
    return jnp.pad(x, [(0, 0)] * (x.ndim - 1) + [(0, pad)])


def _im2col3x3(x):
    """(B, H, W, C) -> (B, H-2, W-2, 9*C) patches, tap-major / channel-minor."""
    B, H, W, C = x.shape
    Ho, Wo = H - 2, W - 2
    cols = [x[:, u:u + Ho, v:v + Wo, :] for u in range(3) for v in range(3)]
    return jnp.concatenate(cols, axis=-1)


def _pick_bb(batch):
    """Batch elements per grid step: fill MXU M rows while keeping the grid
    length >= 2 so both TensorCores stay busy on v7x (megacore sharding)."""
    bb = 8
    while bb > 1 and (batch + bb - 1) // bb < 2:
        bb //= 2
    return max(1, bb)


# ---------------------------------------------------------------------------
# Fused kernel: conv3x3+BN+ReLU (x2)  ->  depthwise x-corr  ->  1x1 head
# One grid step = BB batch elements.
# ---------------------------------------------------------------------------
def _fused_dwxcorr_kernel(kp_ref, sp_ref, wk_ref, ws_ref, bn_ref,
                          w1_ref, w2_ref, b2_ref, o_ref,
                          *, bb, th, tw, sh, sw, swp):
    Kp = wk_ref.shape[0]
    Hp = wk_ref.shape[1]
    Op = w2_ref.shape[1]
    oh, ow = sh - th + 1, sw - tw + 1

    # --- conv_kernel branch: one im2col matmul (MXU, bf16 x bf16 -> f32) + BN + ReLU
    kf = jnp.dot(kp_ref[...].reshape(bb * th * tw, Kp), wk_ref[...],
                 preferred_element_type=jnp.float32)
    kf = jnp.maximum(kf * bn_ref[0, :] + bn_ref[1, :], 0.0)      # (bb*th*tw, Hp)
    kf4 = kf.reshape(bb, th, tw, Hp)

    # --- conv_search branch (M = bb*sh*swp, sublane-aligned width swp)
    sf = jnp.dot(sp_ref[...].reshape(bb * sh * swp, Kp), ws_ref[...],
                 preferred_element_type=jnp.float32)
    sf = jnp.maximum(sf * bn_ref[2, :] + bn_ref[3, :], 0.0)      # (bb*sh*swp, Hp)
    sf4 = sf.reshape(bb, sh, swp, Hp)                            # aligned reshape

    # --- depthwise cross-correlation (f32 VPU MACs).
    # No materialized tap broadcast: each tap multiplies a (bb,1,1,Hp) view of kf4
    # directly (VPU broadcasts one row per tap).  The unaligned-looking W shift is
    # done once per v on a leading-ish dim of an aligned (bb, sh, swp, Hp) slab.
    acc = jnp.zeros((bb, oh, ow, Hp), jnp.float32)
    for v in range(tw):
        s_v = sf4[:, :, v:v + ow, :]                             # (bb, sh, ow, Hp)
        for u in range(th):
            acc = acc + s_v[:, u:u + oh] * kf4[:, u:u + 1, v:v + 1, :]

    # --- head: 1x1 conv + BN + ReLU, then 1x1 conv + bias (MXU, bf16 -> f32 accum)
    feat = acc.reshape(bb * oh * ow, Hp)
    h = jnp.dot(feat.astype(jnp.bfloat16), w1_ref[...],
                preferred_element_type=jnp.float32)
    h = jnp.maximum(h * bn_ref[4, :] + bn_ref[5, :], 0.0)
    y = jnp.dot(h.astype(jnp.bfloat16), w2_ref[...],
                preferred_element_type=jnp.float32) + b2_ref[0, :]
    o_ref[...] = y.reshape(bb, oh * ow, Op)                      # lane-dense store


def depthwise_xcorr_forward(params, kernel_nchw, search_nchw, out_channels):
    """Full DepthwiseXCorr forward. Inputs/outputs in PyTorch NCHW layout."""
    # NCHW (torch) -> NHWC, cast to bf16 BEFORE im2col so the 9x patch slab is
    # built and stored at half the bytes.
    k_nhwc = jnp.transpose(kernel_nchw, (0, 2, 3, 1)).astype(jnp.bfloat16)
    s_nhwc = jnp.transpose(search_nchw, (0, 2, 3, 1)).astype(jnp.bfloat16)
    B = k_nhwc.shape[0]
    th, tw = k_nhwc.shape[1] - 2, k_nhwc.shape[2] - 2
    sh, sw = s_nhwc.shape[1] - 2, s_nhwc.shape[2] - 2
    oh, ow = sh - th + 1, sw - tw + 1
    swp = _round_up(sw, 8)        # sublane-aligned search width (zero-pad columns)

    Kp, Hp = params['wk'].shape
    Op = params['w2'].shape[1]

    # im2col patch slabs (pure layout plumbing), K padded to a 128 multiple.
    kpatch = _im2col3x3(k_nhwc).reshape(B, th * tw, -1)
    spatch = _im2col3x3(s_nhwc)
    spatch = jnp.pad(spatch, ((0, 0), (0, 0), (0, swp - sw), (0, 0)))
    spatch = spatch.reshape(B, sh * swp, -1)
    kp = _pad_last(kpatch, Kp)
    sp = _pad_last(spatch, Kp)

    # Batch BB samples per grid step; pad batch to a multiple of BB with zeros
    # (padded rows are discarded after the call).
    bb = _pick_bb(B)
    Bp = _round_up(B, bb)
    if Bp != B:
        kp = jnp.pad(kp, ((0, Bp - B), (0, 0), (0, 0)))
        sp = jnp.pad(sp, ((0, Bp - B), (0, 0), (0, 0)))
    grid = Bp // bb

    kern = functools.partial(_fused_dwxcorr_kernel, bb=bb, th=th, tw=tw,
                             sh=sh, sw=sw, swp=swp)

    out = pl.pallas_call(
        kern,
        out_shape=jax.ShapeDtypeStruct((Bp, oh * ow, Op), jnp.float32),
        grid=(grid,),
        in_specs=[
            pl.BlockSpec((bb, th * tw, Kp), lambda b: (b, 0, 0)),   # template patches
            pl.BlockSpec((bb, sh * swp, Kp), lambda b: (b, 0, 0)),  # search patches
            pl.BlockSpec((Kp, Hp), lambda b: (0, 0)),               # wk (im2col weights)
            pl.BlockSpec((Kp, Hp), lambda b: (0, 0)),               # ws
            pl.BlockSpec((8, Hp), lambda b: (0, 0)),                # packed BN scale/bias
            pl.BlockSpec((Hp, Hp), lambda b: (0, 0)),               # head w1
            pl.BlockSpec((Hp, Op), lambda b: (0, 0)),               # head w2
            pl.BlockSpec((1, Op), lambda b: (0, 0)),                # head bias
        ],
        out_specs=pl.BlockSpec((bb, oh * ow, Op), lambda b: (b, 0, 0)),
        compiler_params=pltpu.CompilerParams(
            dimension_semantics=("parallel",),      # shard batch steps across TCs
            vmem_limit_bytes=48 * 1024 * 1024,      # stays inside v7x's 64 MiB/TC
        ),
    )(kp, sp, params['wk'], params['ws'], params['bn'],
      params['w1'], params['w2'], params['b2'])

    # Strip batch/channel padding, restore spatial, NHWC -> NCHW (torch convention).
    out = out[:B, :, :out_channels].reshape(B, oh, ow, out_channels)
    return jnp.transpose(out, (0, 3, 1, 2))


# ---------------------------------------------------------------------------
# Parameters: synthetic torch-like weights -> folded/padded kernel parameters.
# BatchNorm folded with running stats (eval-mode inference semantics).
# ---------------------------------------------------------------------------
def fold_bn(gamma, beta, mean, var, eps=1e-5):
    scale = gamma / jnp.sqrt(var + eps)
    bias = beta - mean * scale
    return scale, bias


def make_raw_params(key, in_channels, hidden, out_channels):
    ks = jax.random.split(key, 17)

    def bn(kg, kb, km, kv, c):
        gamma = 1.0 + 0.1 * jax.random.normal(kg, (c,), jnp.float32)
        beta = 0.1 * jax.random.normal(kb, (c,), jnp.float32)
        mean = 0.1 * jax.random.normal(km, (c,), jnp.float32)
        var = jnp.abs(jax.random.normal(kv, (c,), jnp.float32)) + 0.5
        return fold_bn(gamma, beta, mean, var)

    p = {}
    # conv_kernel: Conv2d(in, hidden, 3, bias=False) + BN + ReLU
    p['wk'] = 0.1 * jax.random.normal(ks[0], (3, 3, in_channels, hidden), jnp.float32)
    p['sk'], p['bk'] = bn(ks[1], ks[2], ks[3], ks[4], hidden)
    # conv_search: same architecture, different weights
    p['ws'] = 0.1 * jax.random.normal(ks[5], (3, 3, in_channels, hidden), jnp.float32)
    p['ss'], p['bs'] = bn(ks[6], ks[7], ks[8], ks[9], hidden)
    # head: 1x1 (hidden->hidden, no bias) + BN + ReLU, then 1x1 (hidden->out, bias)
    p['w1'] = 0.1 * jax.random.normal(ks[10], (hidden, hidden), jnp.float32)
    p['s1'], p['b1'] = bn(ks[11], ks[12], ks[13], ks[14], hidden)
    p['w2'] = 0.1 * jax.random.normal(ks[15], (hidden, out_channels), jnp.float32)
    p['b2'] = 0.1 * jax.random.normal(ks[16], (out_channels,), jnp.float32)
    return p


def prepare_params(p, in_channels, hidden, out_channels):
    """Pad channel dims to 128 lanes, reshape conv weights for im2col, cast to bf16.
    All padded rows/lanes stay exactly zero (keeps padded channels 0 through ReLU)."""
    Kp = _round_up(9 * in_channels, 128)
    Hp = _round_up(hidden, 128)
    Op = _round_up(out_channels, 128)

    def pad2(w, rows, cols):
        return jnp.pad(w, ((0, rows - w.shape[0]), (0, cols - w.shape[1])))

    q = {}
    q['wk'] = pad2(p['wk'].reshape(9 * in_channels, hidden), Kp, Hp).astype(jnp.bfloat16)
    q['ws'] = pad2(p['ws'].reshape(9 * in_channels, hidden), Kp, Hp).astype(jnp.bfloat16)
    q['w1'] = pad2(p['w1'], Hp, Hp).astype(jnp.bfloat16)
    q['w2'] = pad2(p['w2'], Hp, Op).astype(jnp.bfloat16)
    # One (8, Hp) slab holds all six folded-BN scale/bias rows (rows 6,7 unused):
    # [sk, bk, ss, bs, s1, b1] -> one DMA descriptor instead of three.
    q['bn'] = jnp.stack([
        _pad_last(p['sk'], Hp), _pad_last(p['bk'], Hp),
        _pad_last(p['ss'], Hp), _pad_last(p['bs'], Hp),
        _pad_last(p['s1'], Hp), _pad_last(p['b1'], Hp),
        jnp.zeros((Hp,), jnp.float32), jnp.zeros((Hp,), jnp.float32),
    ])
    q['b2'] = _pad_last(p['b2'], Op).reshape(1, Op)
    return q


# ---------------------------------------------------------------------------
# Pure-XLA reference with the same precision choices (bf16 matmuls, f32 accum).
# ---------------------------------------------------------------------------
def ref_forward(q, kernel_nchw, search_nchw, out_channels):
    k = jnp.transpose(kernel_nchw, (0, 2, 3, 1)).astype(jnp.bfloat16)
    s = jnp.transpose(search_nchw, (0, 2, 3, 1)).astype(jnp.bfloat16)
    Kp, Hp = q['wk'].shape

    def branch(x, w, scale, bias):
        B, H, W, C = x.shape
        patches = _pad_last(_im2col3x3(x).reshape(B, (H - 2) * (W - 2), 9 * C), Kp)
        y = jnp.einsum('btk,kh->bth', patches, w, preferred_element_type=jnp.float32)
        return jnp.maximum(y * scale + bias, 0.0)

    kf = branch(k, q['wk'], q['bn'][0], q['bn'][1])
    sf = branch(s, q['ws'], q['bn'][2], q['bn'][3])

    B = k.shape[0]
    th, tw = k.shape[1] - 2, k.shape[2] - 2
    sh, sw = s.shape[1] - 2, s.shape[2] - 2
    oh, ow = sh - th + 1, sw - tw + 1
    kf4 = kf.reshape(B, th, tw, Hp)
    sf4 = sf.reshape(B, sh, sw, Hp)
    feat = jnp.zeros((B, oh, ow, Hp), jnp.float32)
    for v in range(tw):
        for u in range(th):
            feat = feat + sf4[:, u:u + oh, v:v + ow, :] * kf4[:, u:u + 1, v:v + 1, :]
    feat2 = feat.reshape(B, oh * ow, Hp)
    h = jnp.einsum('btc,cd->btd', feat2.astype(jnp.bfloat16), q['w1'],
                   preferred_element_type=jnp.float32)
    h = jnp.maximum(h * q['bn'][4] + q['bn'][5], 0.0)
    y = jnp.einsum('btc,cd->btd', h.astype(jnp.bfloat16), q['w2'],
                   preferred_element_type=jnp.float32) + q['b2'][0]
    out = y[:, :, :out_channels].reshape(B, oh, ow, out_channels)
    return jnp.transpose(out, (0, 3, 1, 2))


if __name__ == "__main__":
    key = jax.random.PRNGKey(0)
    B, in_channels, hidden, out_channels = 2, 4, 16, 8
    H_template, H_search = 7, 15   # template (kernel) and search spatial sizes

    k_params, k_tmpl, k_srch = jax.random.split(key, 3)
    raw = make_raw_params(k_params, in_channels, hidden, out_channels)
    params = prepare_params(raw, in_channels, hidden, out_channels)

    kernel_in = jax.random.normal(k_tmpl, (B, in_channels, H_template, H_template),
                                  jnp.float32)
    search_in = jax.random.normal(k_srch, (B, in_channels, H_search, H_search),
                                  jnp.float32)

    fwd = jax.jit(lambda kk, ss: depthwise_xcorr_forward(params, kk, ss, out_channels))
    out = fwd(kernel_in, search_in)
    jax.block_until_ready(out)

    # Shapes: 7->5 (conv3x3), 15->13 (conv3x3), xcorr 13-5+1=9, head keeps 9x9.
    assert out.shape == (B, out_channels, 9, 9), out.shape

    ref = ref_forward(params, kernel_in, search_in, out_channels)
    max_err = float(jnp.max(jnp.abs(out - ref)))
    assert max_err < 1e-2, max_err

    print("KERNEL_OK")
</pallas_src>

<mosaic_0001>
module attributes {stable_mosaic.version = 11 : i64} {
  func.func @_fused_dwxcorr_kernel(%arg0: i32, %arg1: memref<1x25x128xbf16, #tpu.memory_space<vmem>>, %arg2: memref<1x208x128xbf16, #tpu.memory_space<vmem>>, %arg3: memref<128x128xbf16, #tpu.memory_space<vmem>>, %arg4: memref<128x128xbf16, #tpu.memory_space<vmem>>, %arg5: memref<8x128xf32, #tpu.memory_space<vmem>>, %arg6: memref<128x128xbf16, #tpu.memory_space<vmem>>, %arg7: memref<128x128xbf16, #tpu.memory_space<vmem>>, %arg8: memref<1x128xf32, #tpu.memory_space<vmem>>, %arg9: memref<1x81x128xf32, #tpu.memory_space<vmem>>) attributes {dimension_semantics = [#tpu.dimension_semantics<parallel>], iteration_bounds = array<i64: 2>, scalar_prefetch = 0 : i64, scratch_operands = 0 : i64, tpu.core_type = #tpu.core_type<tc>, window_params = [{transform_indices = @transform_0, window_bounds = array<i64: 1, 25, 128>}, {transform_indices = @transform_1, window_bounds = array<i64: 1, 208, 128>}, {pipeline_mode = #tpu.pipeline_mode<synchronous>, transform_indices = @transform_2, window_bounds = array<i64: 128, 128>}, {pipeline_mode = #tpu.pipeline_mode<synchronous>, transform_indices = @transform_3, window_bounds = array<i64: 128, 128>}, {pipeline_mode = #tpu.pipeline_mode<synchronous>, transform_indices = @transform_4, window_bounds = array<i64: 8, 128>}, {pipeline_mode = #tpu.pipeline_mode<synchronous>, transform_indices = @transform_5, window_bounds = array<i64: 128, 128>}, {pipeline_mode = #tpu.pipeline_mode<synchronous>, transform_indices = @transform_6, window_bounds = array<i64: 128, 128>}, {pipeline_mode = #tpu.pipeline_mode<synchronous>, transform_indices = @transform_7, window_bounds = array<i64: 1, 128>}, {transform_indices = @transform_8, window_bounds = array<i64: 1, 81, 128>}]} {
    %c0 = arith.constant 0 : index
    %c0_0 = arith.constant 0 : index
    %c0_1 = arith.constant 0 : index
    %0 = vector.load %arg1[%c0, %c0_0, %c0_1] : memref<1x25x128xbf16, #tpu.memory_space<vmem>>, vector<1x25x128xbf16>
    %1 = vector.shape_cast %0 : vector<1x25x128xbf16> to vector<25x128xbf16>
    %c0_2 = arith.constant 0 : index
    %c0_3 = arith.constant 0 : index
    %2 = vector.load %arg3[%c0_2, %c0_3] : memref<128x128xbf16, #tpu.memory_space<vmem>>, vector<128x128xbf16>
    %cst = arith.constant dense<0.000000e+00> : vector<25x128xf32>
    %3 = tpu.matmul %1, %2, %cst {dimension_numbers = #tpu.dot_dimension_numbers<[1], [0], [0], [1], [0, 0, 1, 1], [], []>} : vector<25x128xbf16>, vector<128x128xbf16>, vector<25x128xf32> -> vector<25x128xf32>
    %c0_4 = arith.constant 0 : index
    %c0_5 = arith.constant 0 : index
    %4 = vector.load %arg5[%c0_4, %c0_5] : memref<8x128xf32, #tpu.memory_space<vmem>>, vector<1x128xf32>
    %5 = vector.shape_cast %4 : vector<1x128xf32> to vector<128xf32>
    %6 = vector.shape_cast %5 : vector<128xf32> to vector<1x128xf32>
    %7 = vector.broadcast %6 : vector<1x128xf32> to vector<25x128xf32>
    %8 = arith.mulf %3, %7 : vector<25x128xf32>
    %c1 = arith.constant 1 : index
    %c0_6 = arith.constant 0 : index
    %9 = vector.load %arg5[%c1, %c0_6] : memref<8x128xf32, #tpu.memory_space<vmem>>, vector<1x128xf32>
    %10 = vector.shape_cast %9 : vector<1x128xf32> to vector<128xf32>
    %11 = vector.shape_cast %10 : vector<128xf32> to vector<1x128xf32>
    %12 = vector.broadcast %11 : vector<1x128xf32> to vector<25x128xf32>
    %13 = arith.addf %8, %12 : vector<25x128xf32>
    %cst_7 = arith.constant 0.000000e+00 : f32
    %14 = vector.broadcast %cst_7 : f32 to vector<25x128xf32>
    %15 = arith.maximumf %13, %14 : vector<25x128xf32>
    %16 = vector.shape_cast %15 : vector<25x128xf32> to vector<1x5x5x128xf32>
    %c0_8 = arith.constant 0 : index
    %c0_9 = arith.constant 0 : index
    %c0_10 = arith.constant 0 : index
    %17 = vector.load %arg2[%c0_8, %c0_9, %c0_10] : memref<1x208x128xbf16, #tpu.memory_space<vmem>>, vector<1x208x128xbf16>
    %18 = vector.shape_cast %17 : vector<1x208x128xbf16> to vector<208x128xbf16>
    %c0_11 = arith.constant 0 : index
    %c0_12 = arith.constant 0 : index
    %19 = vector.load %arg4[%c0_11, %c0_12] : memref<128x128xbf16, #tpu.memory_space<vmem>>, vector<128x128xbf16>
    %cst_13 = arith.constant dense<0.000000e+00> : vector<208x128xf32>
    %20 = tpu.matmul %18, %19, %cst_13 {dimension_numbers = #tpu.dot_dimension_numbers<[1], [0], [0], [1], [0, 0, 1, 1], [], []>} : vector<208x128xbf16>, vector<128x128xbf16>, vector<208x128xf32> -> vector<208x128xf32>
    %c2 = arith.constant 2 : index
    %c0_14 = arith.constant 0 : index
    %21 = vector.load %arg5[%c2, %c0_14] : memref<8x128xf32, #tpu.memory_space<vmem>>, vector<1x128xf32>
    %22 = vector.shape_cast %21 : vector<1x128xf32> to vector<128xf32>
    %23 = vector.shape_cast %22 : vector<128xf32> to vector<1x128xf32>
    %24 = vector.broadcast %23 : vector<1x128xf32> to vector<208x128xf32>
    %25 = arith.mulf %20, %24 : vector<208x128xf32>
    %c3 = arith.constant 3 : index
    %c0_15 = arith.constant 0 : index
    %26 = vector.load %arg5[%c3, %c0_15] : memref<8x128xf32, #tpu.memory_space<vmem>>, vector<1x128xf32>
    %27 = vector.shape_cast %26 : vector<1x128xf32> to vector<128xf32>
    %28 = vector.shape_cast %27 : vector<128xf32> to vector<1x128xf32>
    %29 = vector.broadcast %28 : vector<1x128xf32> to vector<208x128xf32>
    %30 = arith.addf %25, %29 : vector<208x128xf32>
    %cst_16 = arith.constant 0.000000e+00 : f32
    %31 = vector.broadcast %cst_16 : f32 to vector<208x128xf32>
    %32 = arith.maximumf %30, %31 : vector<208x128xf32>
    %33 = vector.shape_cast %32 : vector<208x128xf32> to vector<1x13x16x128xf32>
    %cst_17 = arith.constant 0.000000e+00 : f32
    %34 = vector.broadcast %cst_17 : f32 to vector<1x9x9x128xf32>
    %35 = vector.extract_strided_slice %33 {offsets = [0, 0, 0, 0], sizes = [1, 13, 9, 128], strides = [1, 1, 1, 1]} : vector<1x13x16x128xf32> to vector<1x13x9x128xf32>
    %36 = vector.extract_strided_slice %35 {offsets = [0, 0, 0, 0], sizes = [1, 9, 9, 128], strides = [1, 1, 1, 1]} : vector<1x13x9x128xf32> to vector<1x9x9x128xf32>
    %37 = vector.extract_strided_slice %16 {offsets = [0, 0, 0, 0], sizes = [1, 1, 1, 128], strides = [1, 1, 1, 1]} : vector<1x5x5x128xf32> to vector<1x1x1x128xf32>
    %38 = vector.broadcast %37 : vector<1x1x1x128xf32> to vector<1x9x9x128xf32>
    %39 = arith.mulf %36, %38 : vector<1x9x9x128xf32>
    %40 = arith.addf %34, %39 : vector<1x9x9x128xf32>
    %41 = vector.extract_strided_slice %35 {offsets = [0, 1, 0, 0], sizes = [1, 9, 9, 128], strides = [1, 1, 1, 1]} : vector<1x13x9x128xf32> to vector<1x9x9x128xf32>
    %42 = vector.extract_strided_slice %16 {offsets = [0, 1, 0, 0], sizes = [1, 1, 1, 128], strides = [1, 1, 1, 1]} : vector<1x5x5x128xf32> to vector<1x1x1x128xf32>
    %43 = vector.broadcast %42 : vector<1x1x1x128xf32> to vector<1x9x9x128xf32>
    %44 = arith.mulf %41, %43 : vector<1x9x9x128xf32>
    %45 = arith.addf %40, %44 : vector<1x9x9x128xf32>
    %46 = vector.extract_strided_slice %35 {offsets = [0, 2, 0, 0], sizes = [1, 9, 9, 128], strides = [1, 1, 1, 1]} : vector<1x13x9x128xf32> to vector<1x9x9x128xf32>
    %47 = vector.extract_strided_slice %16 {offsets = [0, 2, 0, 0], sizes = [1, 1, 1, 128], strides = [1, 1, 1, 1]} : vector<1x5x5x128xf32> to vector<1x1x1x128xf32>
    %48 = vector.broadcast %47 : vector<1x1x1x128xf32> to vector<1x9x9x128xf32>
    %49 = arith.mulf %46, %48 : vector<1x9x9x128xf32>
    %50 = arith.addf %45, %49 : vector<1x9x9x128xf32>
    %51 = vector.extract_strided_slice %35 {offsets = [0, 3, 0, 0], sizes = [1, 9, 9, 128], strides = [1, 1, 1, 1]} : vector<1x13x9x128xf32> to vector<1x9x9x128xf32>
    %52 = vector.extract_strided_slice %16 {offsets = [0, 3, 0, 0], sizes = [1, 1, 1, 128], strides = [1, 1, 1, 1]} : vector<1x5x5x128xf32> to vector<1x1x1x128xf32>
    %53 = vector.broadcast %52 : vector<1x1x1x128xf32> to vector<1x9x9x128xf32>
    %54 = arith.mulf %51, %53 : vector<1x9x9x128xf32>
    %55 = arith.addf %50, %54 : vector<1x9x9x128xf32>
    %56 = vector.extract_strided_slice %35 {offsets = [0, 4, 0, 0], sizes = [1, 9, 9, 128], strides = [1, 1, 1, 1]} : vector<1x13x9x128xf32> to vector<1x9x9x128xf32>
    %57 = vector.extract_strided_slice %16 {offsets = [0, 4, 0, 0], sizes = [1, 1, 1, 128], strides = [1, 1, 1, 1]} : vector<1x5x5x128xf32> to vector<1x1x1x128xf32>
    %58 = vector.broadcast %57 : vector<1x1x1x128xf32> to vector<1x9x9x128xf32>
    %59 = arith.mulf %56, %58 : vector<1x9x9x128xf32>
    %60 = arith.addf %55, %59 : vector<1x9x9x128xf32>
    %61 = vector.extract_strided_slice %33 {offsets = [0, 0, 1, 0], sizes = [1, 13, 9, 128], strides = [1, 1, 1, 1]} : vector<1x13x16x128xf32> to vector<1x13x9x128xf32>
    %62 = vector.extract_strided_slice %61 {offsets = [0, 0, 0, 0], sizes = [1, 9, 9, 128], strides = [1, 1, 1, 1]} : vector<1x13x9x128xf32> to vector<1x9x9x128xf32>
    %63 = vector.extract_strided_slice %16 {offsets = [0, 0, 1, 0], sizes = [1, 1, 1, 128], strides = [1, 1, 1, 1]} : vector<1x5x5x128xf32> to vector<1x1x1x128xf32>
    %64 = vector.broadcast %63 : vector<1x1x1x128xf32> to vector<1x9x9x128xf32>
    %65 = arith.mulf %62, %64 : vector<1x9x9x128xf32>
    %66 = arith.addf %60, %65 : vector<1x9x9x128xf32>
    %67 = vector.extract_strided_slice %61 {offsets = [0, 1, 0, 0], sizes = [1, 9, 9, 128], strides = [1, 1, 1, 1]} : vector<1x13x9x128xf32> to vector<1x9x9x128xf32>
    %68 = vector.extract_strided_slice %16 {offsets = [0, 1, 1, 0], sizes = [1, 1, 1, 128], strides = [1, 1, 1, 1]} : vector<1x5x5x128xf32> to vector<1x1x1x128xf32>
    %69 = vector.broadcast %68 : vector<1x1x1x128xf32> to vector<1x9x9x128xf32>
    %70 = arith.mulf %67, %69 : vector<1x9x9x128xf32>
    %71 = arith.addf %66, %70 : vector<1x9x9x128xf32>
    %72 = vector.extract_strided_slice %61 {offsets = [0, 2, 0, 0], sizes = [1, 9, 9, 128], strides = [1, 1, 1, 1]} : vector<1x13x9x128xf32> to vector<1x9x9x128xf32>
    %73 = vector.extract_strided_slice %16 {offsets = [0, 2, 1, 0], sizes = [1, 1, 1, 128], strides = [1, 1, 1, 1]} : vector<1x5x5x128xf32> to vector<1x1x1x128xf32>
    %74 = vector.broadcast %73 : vector<1x1x1x128xf32> to vector<1x9x9x128xf32>
    %75 = arith.mulf %72, %74 : vector<1x9x9x128xf32>
    %76 = arith.addf %71, %75 : vector<1x9x9x128xf32>
    %77 = vector.extract_strided_slice %61 {offsets = [0, 3, 0, 0], sizes = [1, 9, 9, 128], strides = [1, 1, 1, 1]} : vector<1x13x9x128xf32> to vector<1x9x9x128xf32>
    %78 = vector.extract_strided_slice %16 {offsets = [0, 3, 1, 0], sizes = [1, 1, 1, 128], strides = [1, 1, 1, 1]} : vector<1x5x5x128xf32> to vector<1x1x1x128xf32>
    %79 = vector.broadcast %78 : vector<1x1x1x128xf32> to vector<1x9x9x128xf32>
    %80 = arith.mulf %77, %79 : vector<1x9x9x128xf32>
    %81 = arith.addf %76, %80 : vector<1x9x9x128xf32>
    %82 = vector.extract_strided_slice %61 {offsets = [0, 4, 0, 0], sizes = [1, 9, 9, 128], strides = [1, 1, 1, 1]} : vector<1x13x9x128xf32> to vector<1x9x9x128xf32>
    %83 = vector.extract_strided_slice %16 {offsets = [0, 4, 1, 0], sizes = [1, 1, 1, 128], strides = [1, 1, 1, 1]} : vector<1x5x5x128xf32> to vector<1x1x1x128xf32>
    %84 = vector.broadcast %83 : vector<1x1x1x128xf32> to vector<1x9x9x128xf32>
    %85 = arith.mulf %82, %84 : vector<1x9x9x128xf32>
    %86 = arith.addf %81, %85 : vector<1x9x9x128xf32>
    %87 = vector.extract_strided_slice %33 {offsets = [0, 0, 2, 0], sizes = [1, 13, 9, 128], strides = [1, 1, 1, 1]} : vector<1x13x16x128xf32> to vector<1x13x9x128xf32>
    %88 = vector.extract_strided_slice %87 {offsets = [0, 0, 0, 0], sizes = [1, 9, 9, 128], strides = [1, 1, 1, 1]} : vector<1x13x9x128xf32> to vector<1x9x9x128xf32>
    %89 = vector.extract_strided_slice %16 {offsets = [0, 0, 2, 0], sizes = [1, 1, 1, 128], strides = [1, 1, 1, 1]} : vector<1x5x5x128xf32> to vector<1x1x1x128xf32>
    %90 = vector.broadcast %89 : vector<1x1x1x128xf32> to vector<1x9x9x128xf32>
    %91 = arith.mulf %88, %90 : vector<1x9x9x128xf32>
    %92 = arith.addf %86, %91 : vector<1x9x9x128xf32>
    %93 = vector.extract_strided_slice %87 {offsets = [0, 1, 0, 0], sizes = [1, 9, 9, 128], strides = [1, 1, 1, 1]} : vector<1x13x9x128xf32> to vector<1x9x9x128xf32>
    %94 = vector.extract_strided_slice %16 {offsets = [0, 1, 2, 0], sizes = [1, 1, 1, 128], strides = [1, 1, 1, 1]} : vector<1x5x5x128xf32> to vector<1x1x1x128xf32>
    %95 = vector.broadcast %94 : vector<1x1x1x128xf32> to vector<1x9x9x128xf32>
    %96 = arith.mulf %93, %95 : vector<1x9x9x128xf32>
    %97 = arith.addf %92, %96 : vector<1x9x9x128xf32>
    %98 = vector.extract_strided_slice %87 {offsets = [0, 2, 0, 0], sizes = [1, 9, 9, 128], strides = [1, 1, 1, 1]} : vector<1x13x9x128xf32> to vector<1x9x9x128xf32>
    %99 = vector.extract_strided_slice %16 {offsets = [0, 2, 2, 0], sizes = [1, 1, 1, 128], strides = [1, 1, 1, 1]} : vector<1x5x5x128xf32> to vector<1x1x1x128xf32>
    %100 = vector.broadcast %99 : vector<1x1x1x128xf32> to vector<1x9x9x128xf32>
    %101 = arith.mulf %98, %100 : vector<1x9x9x128xf32>
    %102 = arith.addf %97, %101 : vector<1x9x9x128xf32>
    %103 = vector.extract_strided_slice %87 {offsets = [0, 3, 0, 0], sizes = [1, 9, 9, 128], strides = [1, 1, 1, 1]} : vector<1x13x9x128xf32> to vector<1x9x9x128xf32>
    %104 = vector.extract_strided_slice %16 {offsets = [0, 3, 2, 0], sizes = [1, 1, 1, 128], strides = [1, 1, 1, 1]} : vector<1x5x5x128xf32> to vector<1x1x1x128xf32>
    %105 = vector.broadcast %104 : vector<1x1x1x128xf32> to vector<1x9x9x128xf32>
    %106 = arith.mulf %103, %105 : vector<1x9x9x128xf32>
    %107 = arith.addf %102, %106 : vector<1x9x9x128xf32>
    %108 = vector.extract_strided_slice %87 {offsets = [0, 4, 0, 0], sizes = [1, 9, 9, 128], strides = [1, 1, 1, 1]} : vector<1x13x9x128xf32> to vector<1x9x9x128xf32>
    %109 = vector.extract_strided_slice %16 {offsets = [0, 4, 2, 0], sizes = [1, 1, 1, 128], strides = [1, 1, 1, 1]} : vector<1x5x5x128xf32> to vector<1x1x1x128xf32>
    %110 = vector.broadcast %109 : vector<1x1x1x128xf32> to vector<1x9x9x128xf32>
    %111 = arith.mulf %108, %110 : vector<1x9x9x128xf32>
    %112 = arith.addf %107, %111 : vector<1x9x9x128xf32>
    %113 = vector.extract_strided_slice %33 {offsets = [0, 0, 3, 0], sizes = [1, 13, 9, 128], strides = [1, 1, 1, 1]} : vector<1x13x16x128xf32> to vector<1x13x9x128xf32>
    %114 = vector.extract_strided_slice %113 {offsets = [0, 0, 0, 0], sizes = [1, 9, 9, 128], strides = [1, 1, 1, 1]} : vector<1x13x9x128xf32> to vector<1x9x9x128xf32>
    %115 = vector.extract_strided_slice %16 {offsets = [0, 0, 3, 0], sizes = [1, 1, 1, 128], strides = [1, 1, 1, 1]} : vector<1x5x5x128xf32> to vector<1x1x1x128xf32>
    %116 = vector.broadcast %115 : vector<1x1x1x128xf32> to vector<1x9x9x128xf32>
    %117 = arith.mulf %114, %116 : vector<1x9x9x128xf32>
    %118 = arith.addf %112, %117 : vector<1x9x9x128xf32>
    %119 = vector.extract_strided_slice %113 {offsets = [0, 1, 0, 0], sizes = [1, 9, 9, 128], strides = [1, 1, 1, 1]} : vector<1x13x9x128xf32> to vector<1x9x9x128xf32>
    %120 = vector.extract_strided_slice %16 {offsets = [0, 1, 3, 0], sizes = [1, 1, 1, 128], strides = [1, 1, 1, 1]} : vector<1x5x5x128xf32> to vector<1x1x1x128xf32>
    %121 = vector.broadcast %120 : vector<1x1x1x128xf32> to vector<1x9x9x128xf32>
    %122 = arith.mulf %119, %121 : vector<1x9x9x128xf32>
    %123 = arith.addf %118, %122 : vector<1x9x9x128xf32>
    %124 = vector.extract_strided_slice %113 {offsets = [0, 2, 0, 0], sizes = [1, 9, 9, 128], strides = [1, 1, 1, 1]} : vector<1x13x9x128xf32> to vector<1x9x9x128xf32>
    %125 = vector.extract_strided_slice %16 {offsets = [0, 2, 3, 0], sizes = [1, 1, 1, 128], strides = [1, 1, 1, 1]} : vector<1x5x5x128xf32> to vector<1x1x1x128xf32>
    %126 = vector.broadcast %125 : vector<1x1x1x128xf32> to vector<1x9x9x128xf32>
    %127 = arith.mulf %124, %126 : vector<1x9x9x128xf32>
    %128 = arith.addf %123, %127 : vector<1x9x9x128xf32>
    %129 = vector.extract_strided_slice %113 {offsets = [0, 3, 0, 0], sizes = [1, 9, 9, 128], strides = [1, 1, 1, 1]} : vector<1x13x9x128xf32> to vector<1x9x9x128xf32>
    %130 = vector.extract_strided_slice %16 {offsets = [0, 3, 3, 0], sizes = [1, 1, 1, 128], strides = [1, 1, 1, 1]} : vector<1x5x5x128xf32> to vector<1x1x1x128xf32>
    %131 = vector.broadcast %130 : vector<1x1x1x128xf32> to vector<1x9x9x128xf32>
    %132 = arith.mulf %129, %131 : vector<1x9x9x128xf32>
    %133 = arith.addf %128, %132 : vector<1x9x9x128xf32>
    %134 = vector.extract_strided_slice %113 {offsets = [0, 4, 0, 0], sizes = [1, 9, 9, 128], strides = [1, 1, 1, 1]} : vector<1x13x9x128xf32> to vector<1x9x9x128xf32>
    %135 = vector.extract_strided_slice %16 {offsets = [0, 4, 3, 0], sizes = [1, 1, 1, 128], strides = [1, 1, 1, 1]} : vector<1x5x5x128xf32> to vector<1x1x1x128xf32>
    %136 = vector.broadcast %135 : vector<1x1x1x128xf32> to vector<1x9x9x128xf32>
    %137 = arith.mulf %134, %136 : vector<1x9x9x128xf32>
    %138 = arith.addf %133, %137 : vector<1x9x9x128xf32>
    %139 = vector.extract_strided_slice %33 {offsets = [0, 0, 4, 0], sizes = [1, 13, 9, 128], strides = [1, 1, 1, 1]} : vector<1x13x16x128xf32> to vector<1x13x9x128xf32>
    %140 = vector.extract_strided_slice %139 {offsets = [0, 0, 0, 0], sizes = [1, 9, 9, 128], strides = [1, 1, 1, 1]} : vector<1x13x9x128xf32> to vector<1x9x9x128xf32>
    %141 = vector.extract_strided_slice %16 {offsets = [0, 0, 4, 0], sizes = [1, 1, 1, 128], strides = [1, 1, 1, 1]} : vector<1x5x5x128xf32> to vector<1x1x1x128xf32>
    %142 = vector.broadcast %141 : vector<1x1x1x128xf32> to vector<1x9x9x128xf32>
    %143 = arith.mulf %140, %142 : vector<1x9x9x128xf32>
    %144 = arith.addf %138, %143 : vector<1x9x9x128xf32>
    %145 = vector.extract_strided_slice %139 {offsets = [0, 1, 0, 0], sizes = [1, 9, 9, 128], strides = [1, 1, 1, 1]} : vector<1x13x9x128xf32> to vector<1x9x9x128xf32>
    %146 = vector.extract_strided_slice %16 {offsets = [0, 1, 4, 0], sizes = [1, 1, 1, 128], strides = [1, 1, 1, 1]} : vector<1x5x5x128xf32> to vector<1x1x1x128xf32>
    %147 = vector.broadcast %146 : vector<1x1x1x128xf32> to vector<1x9x9x128xf32>
    %148 = arith.mulf %145, %147 : vector<1x9x9x128xf32>
    %149 = arith.addf %144, %148 : vector<1x9x9x128xf32>
    %150 = vector.extract_strided_slice %139 {offsets = [0, 2, 0, 0], sizes = [1, 9, 9, 128], strides = [1, 1, 1, 1]} : vector<1x13x9x128xf32> to vector<1x9x9x128xf32>
    %151 = vector.extract_strided_slice %16 {offsets = [0, 2, 4, 0], sizes = [1, 1, 1, 128], strides = [1, 1, 1, 1]} : vector<1x5x5x128xf32> to vector<1x1x1x128xf32>
    %152 = vector.broadcast %151 : vector<1x1x1x128xf32> to vector<1x9x9x128xf32>
    %153 = arith.mulf %150, %152 : vector<1x9x9x128xf32>
    %154 = arith.addf %149, %153 : vector<1x9x9x128xf32>
    %155 = vector.extract_strided_slice %139 {offsets = [0, 3, 0, 0], sizes = [1, 9, 9, 128], strides = [1, 1, 1, 1]} : vector<1x13x9x128xf32> to vector<1x9x9x128xf32>
    %156 = vector.extract_strided_slice %16 {offsets = [0, 3, 4, 0], sizes = [1, 1, 1, 128], strides = [1, 1, 1, 1]} : vector<1x5x5x128xf32> to vector<1x1x1x128xf32>
    %157 = vector.broadcast %156 : vector<1x1x1x128xf32> to vector<1x9x9x128xf32>
    %158 = arith.mulf %155, %157 : vector<1x9x9x128xf32>
    %159 = arith.addf %154, %158 : vector<1x9x9x128xf32>
    %160 = vector.extract_strided_slice %139 {offsets = [0, 4, 0, 0], sizes = [1, 9, 9, 128], strides = [1, 1, 1, 1]} : vector<1x13x9x128xf32> to vector<1x9x9x128xf32>
    %161 = vector.extract_strided_slice %16 {offsets = [0, 4, 4, 0], sizes = [1, 1, 1, 128], strides = [1, 1, 1, 1]} : vector<1x5x5x128xf32> to vector<1x1x1x128xf32>
    %162 = vector.broadcast %161 : vector<1x1x1x128xf32> to vector<1x9x9x128xf32>
    %163 = arith.mulf %160, %162 : vector<1x9x9x128xf32>
    %164 = arith.addf %159, %163 : vector<1x9x9x128xf32>
    %165 = vector.shape_cast %164 : vector<1x9x9x128xf32> to vector<81x128xf32>
    %166 = arith.truncf %165 : vector<81x128xf32> to vector<81x128xbf16>
    %c0_18 = arith.constant 0 : index
    %c0_19 = arith.constant 0 : index
    %167 = vector.load %arg6[%c0_18, %c0_19] : memref<128x128xbf16, #tpu.memory_space<vmem>>, vector<128x128xbf16>
    %cst_20 = arith.constant dense<0.000000e+00> : vector<81x128xf32>
    %168 = tpu.matmul %166, %167, %cst_20 {dimension_numbers = #tpu.dot_dimension_numbers<[1], [0], [0], [1], [0, 0, 1, 1], [], []>} : vector<81x128xbf16>, vector<128x128xbf16>, vector<81x128xf32> -> vector<81x128xf32>
    %c4 = arith.constant 4 : index
    %c0_21 = arith.constant 0 : index
    %169 = vector.load %arg5[%c4, %c0_21] : memref<8x128xf32, #tpu.memory_space<vmem>>, vector<1x128xf32>
    %170 = vector.shape_cast %169 : vector<1x128xf32> to vector<128xf32>
    %171 = vector.shape_cast %170 : vector<128xf32> to vector<1x128xf32>
    %172 = vector.broadcast %171 : vector<1x128xf32> to vector<81x128xf32>
    %173 = arith.mulf %168, %172 : vector<81x128xf32>
    %c5 = arith.constant 5 : index
    %c0_22 = arith.constant 0 : index
    %174 = vector.load %arg5[%c5, %c0_22] : memref<8x128xf32, #tpu.memory_space<vmem>>, vector<1x128xf32>
    %175 = vector.shape_cast %174 : vector<1x128xf32> to vector<128xf32>
    %176 = vector.shape_cast %175 : vector<128xf32> to vector<1x128xf32>
    %177 = vector.broadcast %176 : vector<1x128xf32> to vector<81x128xf32>
    %178 = arith.addf %173, %177 : vector<81x128xf32>
    %cst_23 = arith.constant 0.000000e+00 : f32
    %179 = vector.broadcast %cst_23 : f32 to vector<81x128xf32>
    %180 = arith.maximumf %178, %179 : vector<81x128xf32>
    %181 = arith.truncf %180 : vector<81x128xf32> to vector<81x128xbf16>
    %c0_24 = arith.constant 0 : index
    %c0_25 = arith.constant 0 : index
    %182 = vector.load %arg7[%c0_24, %c0_25] : memref<128x128xbf16, #tpu.memory_space<vmem>>, vector<128x128xbf16>
    %cst_26 = arith.constant dense<0.000000e+00> : vector<81x128xf32>
    %183 = tpu.matmul %181, %182, %cst_26 {dimension_numbers = #tpu.dot_dimension_numbers<[1], [0], [0], [1], [0, 0, 1, 1], [], []>} : vector<81x128xbf16>, vector<128x128xbf16>, vector<81x128xf32> -> vector<81x128xf32>
    %c0_27 = arith.constant 0 : index
    %c0_28 = arith.constant 0 : index
    %184 = vector.load %arg8[%c0_27, %c0_28] : memref<1x128xf32, #tpu.memory_space<vmem>>, vector<1x128xf32>
    %185 = vector.shape_cast %184 : vector<1x128xf32> to vector<128xf32>
    %186 = vector.shape_cast %185 : vector<128xf32> to vector<1x128xf32>
    %187 = vector.broadcast %186 : vector<1x128xf32> to vector<81x128xf32>
    %188 = arith.addf %183, %187 : vector<81x128xf32>
    %189 = vector.shape_cast %188 : vector<81x128xf32> to vector<1x81x128xf32>
    %c0_29 = arith.constant 0 : index
    %c0_30 = arith.constant 0 : index
    %c0_31 = arith.constant 0 : index
    %190 = vector.load %arg9[%c0_29, %c0_30, %c0_31] : memref<1x81x128xf32, #tpu.memory_space<vmem>>, vector<1x81x128xf32>
    tpu.vector_store %arg9[%c0_29, %c0_30, %c0_31], %189 {strides = array<i32>} : memref<1x81x128xf32, #tpu.memory_space<vmem>>, vector<1x81x128xf32>,
    return
  }
  func.func @transform_0(%arg0: i32) -> (i32, i32, i32) {
    %c0_i32 = arith.constant 0 : i32
    %c0_i32_0 = arith.constant 0 : i32
    %c0_i32_1 = arith.constant 0 : i32
    return %arg0, %c0_i32, %c0_i32_0 : i32, i32, i32
  }
  func.func @transform_1(%arg0: i32) -> (i32, i32, i32) {
    %c0_i32 = arith.constant 0 : i32
    %c0_i32_0 = arith.constant 0 : i32
    %c0_i32_1 = arith.constant 0 : i32
    return %arg0, %c0_i32, %c0_i32_0 : i32, i32, i32
  }
  func.func @transform_2(%arg0: i32) -> (i32, i32) {
    %c0_i32 = arith.constant 0 : i32
    %c0_i32_0 = arith.constant 0 : i32
    %c0_i32_1 = arith.constant 0 : i32
    return %c0_i32, %c0_i32_0 : i32, i32
  }
  func.func @transform_3(%arg0: i32) -> (i32, i32) {
    %c0_i32 = arith.constant 0 : i32
    %c0_i32_0 = arith.constant 0 : i32
    %c0_i32_1 = arith.constant 0 : i32
    return %c0_i32, %c0_i32_0 : i32, i32
  }
  func.func @transform_4(%arg0: i32) -> (i32, i32) {
    %c0_i32 = arith.constant 0 : i32
    %c0_i32_0 = arith.constant 0 : i32
    %c0_i32_1 = arith.constant 0 : i32
    return %c0_i32, %c0_i32_0 : i32, i32
  }
  func.func @transform_5(%arg0: i32) -> (i32, i32) {
    %c0_i32 = arith.constant 0 : i32
    %c0_i32_0 = arith.constant 0 : i32
    %c0_i32_1 = arith.constant 0 : i32
    return %c0_i32, %c0_i32_0 : i32, i32
  }
  func.func @transform_6(%arg0: i32) -> (i32, i32) {
    %c0_i32 = arith.constant 0 : i32
    %c0_i32_0 = arith.constant 0 : i32
    %c0_i32_1 = arith.constant 0 : i32
    return %c0_i32, %c0_i32_0 : i32, i32
  }
  func.func @transform_7(%arg0: i32) -> (i32, i32) {
    %c0_i32 = arith.constant 0 : i32
    %c0_i32_0 = arith.constant 0 : i32
    %c0_i32_1 = arith.constant 0 : i32
    return %c0_i32, %c0_i32_0 : i32, i32
  }
  func.func @transform_8(%arg0: i32) -> (i32, i32, i32) {
    %c0_i32 = arith.constant 0 : i32
    %c0_i32_0 = arith.constant 0 : i32
    %c0_i32_1 = arith.constant 0 : i32
    return %arg0, %c0_i32, %c0_i32_0 : i32, i32, i32
  }
}

</mosaic_0001>

<bundles_post_ra>
// kernel: _lambda_.1
= control target key start
LH: loop header
LB: loop body
LE: loop exit
PB: predicated region body
PF: predicated region fallthrough
CT: control target
= control target key end

     0   :  { %s5058_s27 = smov 0   ;;  %s7531_s0 = inlined_call_operand.vmem [shape: bf16[2,25,128], index: 0, kind: input, shape index: {}]   ;;  %s7532_s1 = inlined_call_operand.vmem [shape: bf16[2,208,128], index: 1, kind: input, shape index: {}]   ;;  %s7533_s2 = inlined_call_operand.vmem [shape: bf16[128,128], index: 2, kind: input, shape index: {}]   ;;  %s7534_s3 = inlined_call_operand.vmem [shape: bf16[128,128], index: 3, kind: input, shape index: {}]   ;;  %s7535_s4 = inlined_call_operand.vmem [shape: f32[8,128], index: 4, kind: input, shape index: {}]   ;;  %s7536_s5 = inlined_call_operand.vmem [shape: bf16[128,128], index: 5, kind: input, shape index: {}]   ;;  %s7537_s6 = inlined_call_operand.vmem [shape: bf16[128,128], index: 6, kind: input, shape index: {}]   ;;  %s7538_s7 = inlined_call_operand.vmem [shape: f32[1,128], index: 7, kind: input, shape index: {}]   ;;  %s7539_s8 = inlined_call_operand.vmem [shape: f32[2,81,128], index: 8, kind: output, shape index: {}]  }
   0x1 LB: > { %s4663_s28 = sadd.s32 4294967295, %s5008_s27   ;;  %p4667_p0 = scmp.ge.s32.totalorder %s5008_s27, 1  ;;  %s5008_s27 = sphi %s5058_s27, %s18_s27  }
   0x2   : > { %p272_p1 = scmp.lt.s32.totalorder %s5008_s27, 3 }
   0x4   : > { %p273_p2 = pnand %p4667_p0, %p272_p1 }
   0x6   : > { %276 = sbr.rel (%p273_p2) target bundleno = 1197 (0x4ad), region = 52 }
   0xd   : > { %v4955_v0 = vld [vmem:[%s7533_s2] sm:$0xff]   ;;  %v5010_v1 = vmov 0.0   ;;  %v4957_v3 = vld [vmem:[%s7533_s2 + $0x8] sm:$0xff]   ;;  %vm5011_vm0 = vmmov 0   ;;  %p311_p3 = scmp.lt.s32.totalorder %s4663_s28, 1  ;;  %v4959_v5 = vld [vmem:[%s7533_s2 + $0x10] sm:$0xff]   ;;  %v871_v35 = vlaneseq }
   0xe   : > { %4818 = vmatprep.subr.bf16.mxu1 %v5010_v1  ;;  %v4956_v2 = vld [vmem:[%s7534_s3] sm:$0xff]   ;;  %4798 = vmatprep.subr.bf16.mxu0 %v4955_v0  ;;  %v4958_v4 = vld [vmem:[%s7534_s3 + $0x8] sm:$0xff]   ;;  %v4960_v6 = vld [vmem:[%s7534_s3 + $0x10] sm:$0xff]   ;;  %v5012_v39 = vmov 1966171168   ;;  %vm1111_vm1 = vcmask 1046528  }
   0xf   : > { %4834 = vmatprep.mubr.msk.bf16.mxu1 %vm5011_vm0, %v5010_v1  ;;  %4819 = vmatpush3.bf16.msra.mxu1 %v4956_v2  ;;  %s8063_s28 = smov (!%p311_p3, %s4663_s28), 1  ;;  %v4961_v7 = vld [vmem:[%s7533_s2 + $0x18] sm:$0xff]   ;;  %v4963_v9 = vld [vmem:[%s7533_s2 + $0x20] sm:$0xff]   ;;  %v4965_v11 = vld [vmem:[%s7533_s2 + $0x28] sm:$0xff]   ;;  %v872_v38 = vshrl.u32 %v871_v35, 7  ;;  %v3155_v40 = vunpack.c.l.s4 %v5012_v39  ;;  %vm1627_vm2 = vcmask 1045504  }
  0x10   : > { %4799 = vmatpush3.bf16.msra.mxu0 %v4955_v0  ;;  %4820 = vmatprep.subr.bf16.mxu1 %v5010_v1  ;;  %s4738_s21 = sshll.u32 %s8063_s28, 4  ;;  %v4962_v8 = vld [vmem:[%s7534_s3 + $0x18] sm:$0xff]   ;;  %s4942_s26 = smul.u32 104, %s8063_s28  ;;  %v4964_v10 = vld [vmem:[%s7534_s3 + $0x20] sm:$0xff]   ;;  %v4966_v13 = vld [vmem:[%s7534_s3 + $0x28] sm:$0xff]   ;;  %vm2143_vm3 = vcmask 1044480  }
  0x11   : > { %4800 = vmatprep.subr.bf16.mxu0 %v4957_v3  ;;  %s315_s9 = scalar_lea.vmem %s7531_s0, %s4738_s21  ;;  %v4967_v14 = vld [vmem:[%s7533_s2 + $0x30] sm:$0xff]   ;;  %v4969_v16 = vld [vmem:[%s7533_s2 + $0x38] sm:$0xff]   ;;  %v4986_v32 = vld [vmem:[%s7536_s5] sm:$0xff]   ;;  %v5205_v49 = vsub.s32 5, %v872_v38  ;;  %v5207_v52 = vsub.s32 2, %v872_v38  ;;  %v5209_v53 = vsub.s32 7, %v872_v38  ;;  %v3156_v54 = vunpack.c.0.s8 %v3155_v40 }
  0x12   : > { %s5116_s16 = scalar_lea.vmem %s7532_s1, %s4942_s26  ;;  %v4971_v12 = vld [vmem:[%s315_s9] sm:$0xff]   ;;  %v4968_v15 = vld [vmem:[%s7534_s3 + $0x30] sm:$0xff]   ;;  %v4970_v17 = vld [vmem:[%s7534_s3 + $0x38] sm:$0xff]   ;;  %v5211_v59 = vsub.s32 4, %v872_v38  ;;  %vm2659_vm4 = vcmask 1043456   ;;  %s4943_s11 = smul.u32 88, %s8063_s28 }
  0x13   : > { %4821 = vmatpush3.bf16.msra.mxu1 %v4958_v4  ;;  %4814 = vmatprep.mubr.bf16.mxu0 %v4971_v12  ;;  %v4972_v18 = vld [vmem:[%s5116_s16] sm:$0xff]   ;;  %v4973_v19 = vld [vmem:[%s315_s9 + $0x8] sm:$0x1f]   ;;  %v4975_v21 = vld [vmem:[%s5116_s16 + $0x10] sm:$0xff]  }
  0x14   : > { %4801 = vmatpush3.bf16.msra.mxu0 %v4957_v3  ;;  %4822 = vmatprep.subr.bf16.mxu1 %v5010_v1  ;;  %v4974_v20 = vld [vmem:[%s5116_s16 + $0x8] sm:$0xff]   ;;  %v4976_v22 = vld [vmem:[%s5116_s16 + $0x18] sm:$0xff]   ;;  %v4977_v23 = vld [vmem:[%s5116_s16 + $0x20] sm:$0xff]  }
  0x15   : > { %4802 = vmatprep.subr.bf16.mxu0 %v4959_v5  ;;  %v4978_v24 = vld [vmem:[%s5116_s16 + $0x28] sm:$0xff]   ;;  %v4979_v25 = vld [vmem:[%s5116_s16 + $0x30] sm:$0xff]   ;;  %v4980_v26 = vld [vmem:[%s5116_s16 + $0x38] sm:$0xff]  }
  0x16   : > { %v4981_v27 = vld [vmem:[%s5116_s16 + $0x40] sm:$0xff]   ;;  %v4982_v28 = vld [vmem:[%s5116_s16 + $0x48] sm:$0xff]   ;;  %v4983_v29 = vld [vmem:[%s5116_s16 + $0x50] sm:$0xff]  }
  0x17   : > { %4823 = vmatpush3.bf16.msra.mxu1 %v4960_v6  ;;  %v4984_v30 = vld [vmem:[%s5116_s16 + $0x58] sm:$0xff]   ;;  %v4985_v31 = vld [vmem:[%s5116_s16 + $0x60] sm:$0xff]   ;;  %v4987_v33 = vld [vmem:[%s7536_s5 + $0x8] sm:$0xff]   ;;  %v1280_v6 = vsub.s32 3, %v872_v38  ;;  %s7515_s16 = scalar_lea.vmem %s7539_s8, %s4943_s11 }
  0x18   : > { %4803 = vmatpush3.bf16.msra.mxu0 %v4959_v5  ;;  %4824 = vmatprep.subr.bf16.mxu1 %v5010_v1  ;;  %v4988_v34 = vld [vmem:[%s7536_s5 + $0x10] sm:$0xff]   ;;  %v4989_v36 = vld [vmem:[%s7536_s5 + $0x18] sm:$0xff]   ;;  %v5188_v37 = vld [vmem:[%s7535_s4 + $0x2] ss:$0 sm:$0xff]  ;;  %v5217_v5 = vsub.s32 6, %v872_v38 }
  0x19   : > { %4804 = vmatprep.subr.bf16.mxu0 %v4961_v7  ;;  %v4682_v41 = vld [vmem:[%s7535_s4] ss:$0 sm:$0xff]  ;;  %v5199_v44 = vld [vmem:[%s7535_s4 + $0x3] ss:$0 sm:$0xff]  ;;  %v4683_v48 = vld [vmem:[%s7535_s4 + $0x1] ss:$0 sm:$0xff] }
  0x1a   : > { %v4990_v42 = vld [vmem:[%s7536_s5 + $0x20] sm:$0xff]  }
  0x1b   : > { %4825 = vmatpush3.bf16.msra.mxu1 %v4962_v8  ;;  %v5221_v8 = vsub.s32 %v3156_v54, %v872_v38 }
  0x1c   : > { %4805 = vmatpush3.bf16.msra.mxu0 %v4961_v7  ;;  %4826 = vmatprep.subr.bf16.mxu1 %v5010_v1  ;;  %v5219_v7 = vsub.s32 0, %v872_v38 }
  0x1d   : > { %4806 = vmatprep.subr.bf16.mxu0 %v4963_v9  ;;  %7758 = vst [vmem:[#allocation2_spill] sm:$0xff] %v5221_v8 }
  0x1f   : > { %4827 = vmatpush3.bf16.msra.mxu1 %v4964_v10 }
  0x20   : > { %4807 = vmatpush3.bf16.msra.mxu0 %v4963_v9  ;;  %4828 = vmatprep.subr.bf16.mxu1 %v5010_v1 }
  0x21   : > { %4808 = vmatprep.subr.bf16.mxu0 %v4965_v11 }
  0x23   : > { %4829 = vmatpush3.bf16.msra.mxu1 %v4966_v13 }
  0x24   : > { %4809 = vmatpush3.bf16.msra.mxu0 %v4965_v11  ;;  %4830 = vmatprep.subr.bf16.mxu1 %v5010_v1 }
  0x25   : > { %4810 = vmatprep.subr.bf16.mxu0 %v4967_v14 }
  0x27   : > { %4831 = vmatpush3.bf16.msra.mxu1 %v4968_v15 }
  0x28   : > { %4811 = vmatpush3.bf16.msra.mxu0 %v4967_v14  ;;  %4832 = vmatprep.subr.bf16.mxu1 %v5010_v1 }
  0x29   : > { %4812 = vmatprep.subr.bf16.mxu0 %v4969_v16 }
  0x2b   : > { %4833 = vmatpush3.bf16.msra.mxu1 %v4970_v17 }
  0x2c   : > { %4813 = vmatpush3.bf16.msra.mxu0 %v4969_v16 }
  0x2d   : > { %4886 = vmatprep.subr.bf16.mxu0 %v4986_v32 }
  0x2e   : > { %4835 = vmatmul.mubr.bf16.vlgmr.msra.gmra.mrb[0].mxu1 %v4972_v18 }
  0x2f   : > { %4815 = vmatmul.mubr.bf16.vlgmr.msra.gmra.mrb[0].mxu0 %v4973_v19  ;;  %4838 = vmatprep.mubr.msk.bf16.mxu1 %vm5011_vm0, %v5010_v1 }
  0x30   : > { %4887 = vmatpush3.bf16.msra.mxu0 %v4986_v32 }
  0x31   : > { %4888 = vmatprep.subr.bf16.mxu0 %v4987_v33 }
  0x34   : > { %4889 = vmatpush3.bf16.msra.mxu0 %v4987_v33 }
  0x35   : > { %4890 = vmatprep.subr.bf16.mxu0 %v4988_v34 }
  0x36   : > { %4839 = vmatmul.mubr.bf16.gmra.mrb[4].mxu1 %v4974_v20 }
  0x37   : > { %4842 = vmatprep.mubr.msk.bf16.mxu1 %vm5011_vm0, %v5010_v1 }
  0x38   : > { %4891 = vmatpush3.bf16.msra.mxu0 %v4988_v34 }
  0x39   : > { %4892 = vmatprep.subr.bf16.mxu0 %v4989_v36 }
  0x3c   : > { %4893 = vmatpush3.bf16.msra.mxu0 %v4989_v36 }
  0x3d   : > { %4894 = vmatprep.subr.bf16.mxu0 %v4990_v42 }
  0x3e   : > { %4843 = vmatmul.mubr.bf16.gmra.mrb[8].mxu1 %v4975_v21 }
  0x3f   : > { %4846 = vmatprep.mubr.msk.bf16.mxu1 %vm5011_vm0, %v5010_v1 }
  0x40   : > { %4895 = vmatpush3.bf16.msra.mxu0 %v4990_v42 }
  0x46   : > { %4847 = vmatmul.mubr.bf16.gmra.mrb[12].mxu1 %v4976_v22 }
  0x47   : > { %4850 = vmatprep.mubr.msk.bf16.mxu1 %vm5011_vm0, %v5010_v1 }
  0x4e   : > { %4851 = vmatmul.mubr.bf16.gmra.mrb[16].mxu1 %v4977_v23 }
  0x4f   : > { %4854 = vmatprep.mubr.msk.bf16.mxu1 %vm5011_vm0, %v5010_v1 }
  0x56   : > { %4855 = vmatmul.mubr.bf16.gmra.mrb[20].mxu1 %v4978_v24 }
  0x57   : > { %4858 = vmatprep.mubr.msk.bf16.mxu1 %vm5011_vm0, %v5010_v1 }
  0x5e   : > { %4859 = vmatmul.mubr.bf16.gmra.mrb[24].mxu1 %v4979_v25 }
  0x5f   : > { %4862 = vmatprep.mubr.msk.bf16.mxu1 %vm5011_vm0, %v5010_v1 }
  0x66   : > { %4863 = vmatmul.mubr.bf16.gmra.mrb[28].mxu1 %v4980_v26 }
  0x67   : > { %4866 = vmatprep.mubr.msk.bf16.mxu1 %vm5011_vm0, %v5010_v1 }
  0x6e   : > { %4867 = vmatmul.mubr.bf16.gmra.mrb[32].mxu1 %v4981_v27 }
  0x6f   : > { %4870 = vmatprep.mubr.msk.bf16.mxu1 %vm5011_vm0, %v5010_v1 }
  0x76   : > { %4871 = vmatmul.mubr.bf16.gmra.mrb[36].mxu1 %v4982_v28 }
  0x77   : > { %4874 = vmatprep.mubr.msk.bf16.mxu1 %vm5011_vm0, %v5010_v1 }
  0x7e   : > { %4875 = vmatmul.mubr.bf16.gmra.mrb[40].mxu1 %v4983_v29 }
  0x7f   : > { %4878 = vmatprep.mubr.msk.bf16.mxu1 %vm5011_vm0, %v5010_v1 }
  0x86   : > { %4879 = vmatmul.mubr.bf16.gmra.mrb[44].mxu1 %v4984_v30 }
  0x87   : > { %4882 = vmatprep.mubr.msk.bf16.mxu1 %vm5011_vm0, %v5010_v1  ;;  %v5215_v1 = vsub.s32 1, %v872_v38 }
  0x8e   : > { %4883 = vmatmul.mubr.bf16.gmra.mrb[48].mxu1 %v4985_v31 }
 0x101   : > { %v680_v43 = vpop.f32.mrb[0].mxu1 }
 0x102   : > { %v4816_v45 = vpop.f32.mrb[0].mxu0  ;;  %v788_v46 = vmul.f32 %v5188_v37, %v680_v43  ;;  %v4836_v50 = vpop.f32.mrb[1].mxu1 }
 0x103   : > { %v463_v47 = vmul.f32 %v4816_v45, %v4682_v41  ;;  %v441_v51 = vpop.f32.mrb[1].mxu0  ;;  %v683_v56 = vpop.f32.mrb[2].mxu1 }
 0x104   : > { %v461_v55 = vmul.f32 %v4682_v41, %v441_v51  ;;  %v4817_v57 = vpop.f32.mrb[2].mxu0  ;;  %v789_v60 = vmul.f32 %v5188_v37, %v683_v56  ;;  %v4837_v61 = vpop.f32.mrb[3].mxu1  ;;  %v819_v0 = vadd.f32 %v5199_v44, %v788_v46 }
 0x105   : > { %v472_v58 = vadd.f32 %v4683_v48, %v463_v47  ;;  %v464_v62 = vmul.f32 %v4817_v57, %v4682_v41  ;;  %v444_v63 = vpop.f32.mrb[3].mxu0 }
 0x106   : > { %v470_v2 = vadd.f32 %v4683_v48, %v461_v55  ;;  %v462_v3 = vmul.f32 %v4682_v41, %v444_v63  ;;  %v820_v10 = vadd.f32 %v5199_v44, %v789_v60  ;;  %v5224_v12 = vmax.f32 %v819_v0, 0.0 }
 0x107   : > { %v476_v4 = vmax.f32 %v472_v58, 0.0  ;;  %v473_v11 = vadd.f32 %v4683_v48, %v464_v62 }
 0x108   : > { %v474_v9 = vmax.f32 %v470_v2, 0.0  ;;  %v471_v15 = vadd.f32 %v4683_v48, %v462_v3  ;;  %v846_v25 = vmax.f32 %v820_v10, 0.0 }
 0x109   : > { %v5227_v13 = vrot.slane %v476_v4, %v5211_v59  ;;  %v5230_v14 = vrot.slane %v476_v4, %v5205_v49  ;;  %v688_v16 = vpop.f32.mrb[4].mxu1  ;;  %v5233_v17 = vrot.slane %v476_v4, %v5215_v1  ;;  %v5236_v18 = vrot.slane %v476_v4, %v5217_v5 }
 0x10a   : > { %v5239_v19 = vrot.slane %v474_v9, %v5215_v1  ;;  %v5242_v20 = vrot.slane %v474_v9, %v5207_v52  ;;  %v4840_v21 = vpop.f32.mrb[5].mxu1  ;;  %v5245_v22 = vrot.slane %v476_v4, %v5207_v52  ;;  %v5247_v23 = vrot.slane %v474_v9, %v1280_v6 }
 0x10b   : > { %7759 = vst [vmem:[#allocation3_spill] sm:$0xff] %v5227_v13  ;;  %7760 = vst [vmem:[#allocation4_spill] sm:$0xff] %v5230_v14  ;;  %v5250_v24 = vrot.slane %v474_v9, %v5211_v59  ;;  %v691_v26 = vpop.f32.mrb[6].mxu1  ;;  %v5253_v27 = vrot.slane %v476_v4, %v5209_v53  ;;  %v477_v30 = vmax.f32 %v473_v11, 0.0  ;;  %v5278_v46 = vrot.slane %v476_v4, %v1280_v6 }
 0x10c   : > { %7761 = vst [vmem:[#allocation5_spill] sm:$0xff] %v5233_v17  ;;  %7762 = vst [vmem:[#allocation6_spill] sm:$0xff] %v5236_v18  ;;  %v1075_v28 = vmul.f32 %v5239_v19, %v5224_v12  ;;  %v1591_v29 = vmul.f32 %v5242_v20, %v5224_v12  ;;  %v4841_v31 = vpop.f32.mrb[7].mxu1  ;;  %v5260_v32 = vmul.f32 %v5239_v19, %v846_v25  ;;  %v475_v50 = vmax.f32 %v471_v15, 0.0 }
 0x10d   : > { %7763 = vst [vmem:[#allocation7_spill] sm:$0xff] %v5239_v19  ;;  %7764 = vst [vmem:[#allocation8_spill] sm:$0xff] %v5242_v20  ;;  %v5263_v33 = vmul.f32 %v5242_v20, %v846_v25  ;;  %v2107_v34 = vmul.f32 %v5247_v23, %v5224_v12  ;;  %v5268_v35 = vmul.f32 %v5247_v23, %v846_v25 }
 0x10e   : > { %7765 = vst [vmem:[#allocation9_spill] sm:$0xff] %v5245_v22  ;;  %7766 = vst [vmem:[#allocation10_spill] sm:$0xff] %v5247_v23  ;;  %v1112_v36 = vrot.slane %v1075_v28, 1  ;;  %v1628_v38 = vrot.slane %v1591_v29, 2  ;;  %v2623_v39 = vmul.f32 %v5250_v24, %v5224_v12  ;;  %v5273_v40 = vmul.f32 %v5250_v24, %v846_v25 }
 0x10f   : > { %7767 = vst [vmem:[#allocation11_spill] sm:$0xff] %v5250_v24  ;;  %7768 = vst [vmem:[#allocation12_spill] sm:$0xff] %v5253_v27  ;;  %v7543_v41 = vrot.slane %v5260_v32, 1  ;;  %v7542_v42 = vrot.slane %v5263_v33, 2  ;;  %v2144_v43 = vrot.slane %v2107_v34, 3  ;;  %v7541_v45 = vrot.slane %v5268_v35, 3 }
 0x110   : > { %7769 = vst [vmem:[#allocation13_spill] sm:$0xff] %v5268_v35  ;;  %7770 = vst [vmem:[#allocation14_spill] sm:$0xff] %v5273_v40  ;;  %v2660_v47 = vrot.slane %v2623_v39, 4  ;;  %v7540_v48 = vrot.slane %v5273_v40, 4  ;;  %v790_v56 = vmul.f32 %v5188_v37, %v688_v16  ;;  %v5298_v58 = vrot.slane %v474_v9, %v5205_v49 }
 0x111   : > { %7771 = vst [vmem:[#allocation15_spill] sm:$0xff] %v5278_v46  ;;  %v5284_v51 = vsel %vm1111_vm1, %v1112_v36, %v7543_v41  ;;  %v5289_v54 = vsel %vm1627_vm2, %v1628_v38, %v7542_v42  ;;  %v5294_v55 = vsel %vm2143_vm3, %v2144_v43, %v7541_v45  ;;  %v696_v57 = vpop.f32.mrb[8].mxu1  ;;  %v5301_v60 = vrot.slane %v474_v9, %v5217_v5 }
 0x112   : > { %7772 = vst [vmem:[#allocation16_spill] sm:$0xff] %v5294_v55  ;;  %7773 = vst [vmem:[#allocation17_spill] sm:$0xff] %v5298_v58  ;;  %v5304_v61 = vrot.slane %v474_v9, %v5209_v53  ;;  %v5309_v62 = vsel %vm2659_vm4, %v2660_v47, %v7540_v48  ;;  %v4844_v63 = vpop.f32.mrb[9].mxu1  ;;  %v5312_v0 = vrot.slane %v474_v9, %v5219_v7 }
 0x113   : > { %7774 = vst [vmem:[#allocation18_spill] sm:$0xff] %v5301_v60  ;;  %7776 = vst [vmem:[#allocation20_spill] sm:$0xff] %v5309_v62  ;;  %v5315_v2 = vrot.slane %v476_v4, %v5219_v7  ;;  %v5318_v3 = vrot.slane %v477_v30, %v5219_v7  ;;  %v5321_v10 = vrot.slane %v475_v50, %v5207_v52  ;;  %v699_v11 = vpop.f32.mrb[10].mxu1 }
 0x114   : > { %7775 = vst [vmem:[#allocation19_spill] sm:$0xff] %v5304_v61  ;;  %7777 = vst [vmem:[#allocation21_spill] sm:$0xff] %v5312_v0  ;;  %v5324_v15 = vrot.slane %v475_v50, %v5209_v53  ;;  %v5326_v16 = vrot.slane %v475_v50, %v1280_v6  ;;  %v821_v21 = vadd.f32 %v5199_v44, %v790_v56  ;;  %v4845_v28 = vpop.f32.mrb[11].mxu1 }
 0x115   : > { %7778 = vst [vmem:[#allocation22_spill] sm:$0xff] %v5315_v2  ;;  %7779 = vst [vmem:[#allocation23_spill] sm:$0xff] %v5318_v3  ;;  %v791_v9 = vmul.f32 %v5188_v37, %v691_v26  ;;  %v5331_v4 = vrot.slane %v475_v50, %v5211_v59  ;;  %v5334_v29 = vrot.slane %v475_v50, %v5219_v7 }
 0x116   : > { %7780 = vst [vmem:[#allocation24_spill] sm:$0xff] %v5321_v10  ;;  %7781 = vst [vmem:[#allocation25_spill] sm:$0xff] %v5324_v15  ;;  %v792_v52 = vmul.f32 %v5188_v37, %v696_v57  ;;  %v793_v30 = vmul.f32 %v5188_v37, %v699_v11  ;;  %v5339_v53 = vrot.slane %v475_v50, %v5205_v49  ;;  %v5344_v31 = vmax.f32 %v821_v21, 0.0 }
 0x117   : > { %7782 = vst [vmem:[#allocation26_spill] sm:$0xff] %v5326_v16  ;;  %7783 = vst [vmem:[#allocation27_spill] sm:$0xff] %v5331_v4  ;;  %v5342_v6 = vrot.slane %v475_v50, %v5215_v1  ;;  %v822_v26 = vadd.f32 %v5199_v44, %v791_v9  ;;  %v5348_v59 = vrot.slane %v475_v50, %v5217_v5 }
 0x118   : > { %7784 = vst [vmem:[#allocation28_spill] sm:$0xff] %v5339_v53  ;;  %v875_v7 = vmul.f32 %v5312_v0, %v5224_v12  ;;  %v823_v34 = vadd.f32 %v5199_v44, %v792_v52  ;;  %v824_v36 = vadd.f32 %v5199_v44, %v793_v30  ;;  %v915_v49 = vmul.f32 %v5298_v58, %v5344_v31 }
 0x119   : > { %7785 = vst [vmem:[#allocation29_spill] sm:$0xff] %v5342_v6  ;;  %7786 = vst [vmem:[#allocation30_spill] sm:$0xff] %v5348_v59  ;;  %v1077_v1 = vmul.f32 %v5239_v19, %v5344_v31  ;;  %v1179_v38 = vmul.f32 %v5301_v60, %v5344_v31  ;;  %v876_v39 = vmul.f32 %v5312_v0, %v846_v25  ;;  %v5367_v43 = vmax.f32 %v822_v26, 0.0  ;;  %v704_v50 = vpop.f32.mrb[12].mxu1 }
 0x11a   : > { %v877_v5 = vmul.f32 %v5312_v0, %v5344_v31  ;;  %v5365_v12 = vmul.f32 %v5242_v20, %v5344_v31  ;;  %v5369_v47 = vmax.f32 %v823_v34, 0.0  ;;  %v933_v56 = vadd.f32 %v915_v49, %v875_v7  ;;  %v4848_v21 = vpop.f32.mrb[13].mxu1 }
 0x11b   : > { %v1115_v57 = vrot.slane %v1077_v1, 1  ;;  %v5371_v63 = vmax.f32 %v824_v36, 0.0  ;;  %v794_v11 = vmul.f32 %v5188_v37, %v704_v50  ;;  %v1215_v25 = vrot.slane %v1179_v38, 1  ;;  %v707_v30 = vpop.f32.mrb[14].mxu1 }
 0x11c   : > { %v916_v9 = vmul.f32 %v5298_v58, %v5367_v43  ;;  %v5378_v28 = vmul.f32 %v5239_v19, %v5367_v43  ;;  %v5382_v52 = vmul.f32 %v5301_v60, %v5367_v43  ;;  %v5386_v26 = vmul.f32 %v5312_v0, %v5367_v43  ;;  %v4849_v36 = vpop.f32.mrb[15].mxu1 }
 0x11d   : > { %v825_v7 = vadd.f32 %v5199_v44, %v794_v11  ;;  %v795_v34 = vmul.f32 %v5188_v37, %v707_v30  ;;  %v917_v49 = vmul.f32 %v5298_v58, %v5369_v47  ;;  %v5396_v50 = vmul.f32 %v5242_v20, %v5367_v43 }
 0x11e   : > { %7787 = vst [vmem:[#allocation31_spill] sm:$0xff] %v5378_v28  ;;  %7788 = vst [vmem:[#allocation32_spill] sm:$0xff] %v5386_v26  ;;  %v7545_v1 = vrot.slane %v5378_v28, 1  ;;  %v955_v21 = vmul.f32 %v5321_v10, %v5369_v47  ;;  %v934_v30 = vadd.f32 %v916_v9, %v876_v39  ;;  %v956_v36 = vmul.f32 %v5321_v10, %v5371_v63 }
 0x11f   : > { %7789 = vst [vmem:[#allocation33_spill] sm:$0xff] %v5396_v50  ;;  %v5400_v48 = vmax.f32 %v825_v7, 0.0  ;;  %v826_v11 = vadd.f32 %v5199_v44, %v795_v34  ;;  %v935_v42 = vadd.f32 %v917_v49, %v877_v5  ;;  %v1181_v41 = vmul.f32 %v5301_v60, %v5369_v47 }
 0x120   : > { %v5408_v45 = vsel %vm1111_vm1, %v1115_v57, %v7545_v1  ;;  %v5414_v38 = vmul.f32 %v5301_v60, %v5371_v63  ;;  %v973_v9 = vadd.f32 %v955_v21, %v933_v56  ;;  %v974_v57 = vadd.f32 %v956_v36, %v934_v30 }
 0x121   : > { %v5416_v7 = vmax.f32 %v826_v11, 0.0  ;;  %v957_v39 = vmul.f32 %v5321_v10, %v5400_v48  ;;  %v995_v34 = vmul.f32 %v5324_v15, %v5400_v48  ;;  %v712_v28 = vpop.f32.mrb[16].mxu1  ;;  %v7791_v5 = vrot.slane %v5382_v52, 1 }
 0x122   : > { %7790 = vst [vmem:[#allocation34_spill] sm:$0xff] %v5414_v38  ;;  %v7551_v1 = vrot.slane %v5414_v38, 1  ;;  %v1282_v11 = vmul.f32 %v5326_v16, %v5369_v47  ;;  %v796_v26 = vmul.f32 %v5188_v37, %v712_v28  ;;  %v4852_v8 = vpop.f32.mrb[17].mxu1  ;;  %v1218_v21 = vrot.slane %v1181_v41, 1 }
 0x123   : > { %v5425_v49 = vsel %vm1111_vm1, %v1215_v25, %v7791_v5  ;;  %v975_v46 = vadd.f32 %v957_v39, %v935_v42  ;;  %v996_v56 = vmul.f32 %v5324_v15, %v5416_v7  ;;  %v715_v59 = vpop.f32.mrb[18].mxu1  ;;  %v1013_v30 = vadd.f32 %v995_v34, %v973_v9 }
 0x124   : > { %v5435_v36 = vmul.f32 %v5326_v16, %v5371_v63  ;;  %v1284_v25 = vmul.f32 %v5326_v16, %v5400_v48  ;;  %v5441_v5 = vmul.f32 %v5326_v16, %v5416_v7  ;;  %v827_v8 = vadd.f32 %v5199_v44, %v796_v26  ;;  %v4853_v28 = vpop.f32.mrb[19].mxu1 }
 0x125   : > { %v797_v42 = vmul.f32 %v5188_v37, %v715_v59  ;;  %v5448_v41 = vsel %vm1111_vm1, %v1218_v21, %v7551_v1  ;;  %v1318_v39 = vrot.slane %v1282_v11, 1  ;;  %v1385_v40 = vmul.f32 %v5315_v2, %v5400_v48 }
 0x126   : > { %7792 = vst [vmem:[#allocation35_spill] sm:$0xff] %v5441_v5  ;;  %v7554_v9 = vrot.slane %v5435_v36, 1  ;;  %v1321_v34 = vrot.slane %v1284_v25, 1  ;;  %v7553_v62 = vrot.slane %v5441_v5, 1  ;;  %v5454_v35 = vmax.f32 %v827_v8, 0.0 }
 0x127   : > { %v828_v26 = vadd.f32 %v5199_v44, %v797_v42  ;;  %v1014_v59 = vadd.f32 %v996_v56, %v974_v57  ;;  %v5459_v28 = vmul.f32 %v5315_v2, %v5416_v7  ;;  %v1631_v25 = vrot.slane %v5365_v12, 2 }
 0x128   : > { %v1320_v11 = vsel %vm1111_vm1, %v1318_v39, %v7554_v9  ;;  %v5467_v21 = vsel %vm1111_vm1, %v1321_v34, %v7553_v62  ;;  %v7559_v8 = vrot.slane %v5396_v50, 2  ;;  %v997_v57 = vmul.f32 %v5324_v15, %v5454_v35 }
 0x129   : > { %v5471_v1 = vmax.f32 %v828_v26, 0.0  ;;  %v1035_v56 = vmul.f32 %v5227_v13, %v5454_v35  ;;  %v1421_v42 = vrot.slane %v1385_v40, 1  ;;  %v720_v38 = vpop.f32.mrb[20].mxu1  ;;  %v1387_v39 = vmul.f32 %v5315_v2, %v5454_v35 }
 0x12a   : > { %v1422_v34 = vrot.slane %v5459_v28, 1  ;;  %v1488_v12 = vmul.f32 %v5230_v14, %v5454_v35  ;;  %v5485_v26 = vsel %vm1627_vm2, %v1631_v25, %v7559_v8  ;;  %v798_v62 = vmul.f32 %v5188_v37, %v720_v38  ;;  %v4856_v9 = vpop.f32.mrb[21].mxu1 }
 0x12b   : > { %v1036_v40 = vmul.f32 %v5227_v13, %v5471_v1  ;;  %v1053_v5 = vadd.f32 %v1035_v56, %v1013_v30  ;;  %v1695_v55 = vmul.f32 %v5304_v61, %v5344_v31  ;;  %v723_v3 = vpop.f32.mrb[22].mxu1  ;;  %v1015_v28 = vadd.f32 %v997_v57, %v975_v46  ;;  %v4991_v46 = vld [vmem:[%s7536_s5 + $0x28] sm:$0xff]   ;;  %v4992_v57 = vld [vmem:[%s7536_s5 + $0x30] sm:$0xff]  }
 0x12c   : > { %v5494_v27 = vmul.f32 %v5315_v2, %v5471_v1  ;;  %v1423_v50 = vsel %vm1111_vm1, %v1421_v42, %v1422_v34  ;;  %v1489_v25 = vmul.f32 %v5230_v14, %v5471_v1  ;;  %v829_v38 = vadd.f32 %v5199_v44, %v798_v62  ;;  %v4857_v8 = vpop.f32.mrb[23].mxu1  ;;  %4896 = vmatprep.subr.bf16.mxu0 %v4991_v46 }
 0x12d   : > { %v799_v9 = vmul.f32 %v5188_v37, %v723_v3  ;;  %v1054_v30 = vadd.f32 %v1036_v40, %v1014_v59  ;;  %v1157_v56 = vadd.f32 %v5284_v51, %v1053_v5  ;;  %v1424_v42 = vrot.slane %v1387_v39, 1  ;;  %4897 = vmatpush3.bf16.msra.mxu0 %v4991_v46 }
 0x12e   : > { %7793 = vst [vmem:[#allocation36_spill] sm:$0xff] %v5494_v27  ;;  %v7563_v22 = vrot.slane %v5494_v27, 1  ;;  %v1525_v2 = vrot.slane %v1489_v25, 1  ;;  %v5511_v62 = vmul.f32 %v5304_v61, %v5367_v43  ;;  %v5513_v3 = vmax.f32 %v829_v38, 0.0  ;;  %4898 = vmatprep.subr.bf16.mxu0 %v4992_v57 }
 0x12f   : > { %v830_v51 = vadd.f32 %v5199_v44, %v799_v9  ;;  %v7794_v5 = vrot.slane %v5260_v32, 1  ;;  %v1260_v8 = vadd.f32 %v5425_v49, %v1157_v56  ;;  %v1524_v40 = vrot.slane %v1488_v12, 1  ;;  %v4993_v12 = vld [vmem:[%s7536_s5 + $0x38] sm:$0xff]  }
 0x130   : > { %v1426_v39 = vsel %vm1111_vm1, %v1424_v42, %v7563_v22  ;;  %v1697_v25 = vmul.f32 %v5304_v61, %v5369_v47  ;;  %v5526_v38 = vmul.f32 %v5304_v61, %v5371_v63  ;;  %v1037_v32 = vmul.f32 %v5227_v13, %v5513_v3 }
 0x131   : > { %v1158_v59 = vadd.f32 %v7794_v5, %v1054_v30  ;;  %v5528_v9 = vmax.f32 %v830_v51, 0.0  ;;  %v7797_v49 = vrot.slane %v5382_v52, 1  ;;  %v1363_v56 = vadd.f32 %v1320_v11, %v1260_v8  ;;  %v728_v42 = vpop.f32.mrb[24].mxu1  ;;  %4899 = vmatpush3.bf16.msra.mxu0 %v4992_v57 }
 0x132   : > { %7795 = vst [vmem:[#allocation37_spill] sm:$0xff] %v5526_v38  ;;  %v1490_v5 = vmul.f32 %v5230_v14, %v5513_v3  ;;  %v1526_v46 = vsel %vm1111_vm1, %v1524_v40, %v1525_v2  ;;  %v1731_v51 = vrot.slane %v1695_v55, 2  ;;  %v1732_v22 = vrot.slane %v5511_v62, 2  ;;  %v4860_v13 = vpop.f32.mrb[25].mxu1  ;;  %4900 = vmatprep.subr.bf16.mxu0 %v4993_v12 }
 0x133   : > { %7796 = vst [vmem:[#allocation38_spill] sm:$0xff] %v5528_v9  ;;  %v1261_v30 = vadd.f32 %v7797_v49, %v1158_v59  ;;  %v800_v27 = vmul.f32 %v5188_v37, %v728_v42  ;;  %v1055_v52 = vadd.f32 %v1037_v32, %v1015_v28  ;;  %v7798_v11 = vrot.slane %v5435_v36, 1  ;;  %v731_v49 = vpop.f32.mrb[26].mxu1 }
 0x134   : > { %v1466_v8 = vadd.f32 %v1423_v50, %v1363_v56  ;;  %v5546_v53 = vmul.f32 %v5230_v14, %v5528_v9  ;;  %v1527_v16 = vrot.slane %v1490_v5, 1  ;;  %v1734_v15 = vrot.slane %v1697_v25, 2  ;;  %v4861_v13 = vpop.f32.mrb[27].mxu1 }
 0x135   : > { %v1364_v59 = vadd.f32 %v7798_v11, %v1261_v30  ;;  %v7575_v40 = vrot.slane %v5526_v38, 2  ;;  %v831_v55 = vadd.f32 %v5199_v44, %v800_v27  ;;  %v801_v62 = vmul.f32 %v5188_v37, %v731_v49  ;;  %4901 = vmatpush3.bf16.msra.mxu0 %v4993_v12 }
 0x136   : > { %7799 = vst [vmem:[#allocation39_spill] sm:$0xff] %v5546_v53  ;;  %v1159_v28 = vadd.f32 %v5408_v45, %v1055_v52  ;;  %v7576_v50 = vrot.slane %v5546_v53, 1  ;;  %v1569_v32 = vadd.f32 %v1526_v46, %v1466_v8  ;;  %v1733_v30 = vsel %vm1627_vm2, %v1731_v51, %v1732_v22 }
 0x137   : > { %v1467_v36 = vadd.f32 %v1422_v34, %v1364_v59  ;;  %v1798_v25 = vmul.f32 %v5331_v4, %v5369_v47  ;;  %v832_v56 = vadd.f32 %v5199_v44, %v801_v62  ;;  %v1736_v42 = vsel %vm1627_vm2, %v1734_v15, %v7575_v40 }
 0x138   : > { %v1262_v57 = vadd.f32 %v5448_v41, %v1159_v28  ;;  %v5561_v45 = vmax.f32 %v831_v55, 0.0  ;;  %v1673_v34 = vadd.f32 %v5289_v54, %v1569_v32  ;;  %v1799_v5 = vmul.f32 %v5331_v4, %v5371_v63 }
 0x139   : > { %v1570_v27 = vadd.f32 %v1525_v2, %v1467_v36  ;;  %v1800_v46 = vmul.f32 %v5331_v4, %v5400_v48  ;;  %v1529_v2 = vsel %vm1111_vm1, %v1527_v16, %v7576_v50  ;;  %v7801_v41 = vrot.slane %v5263_v33, 2  ;;  %v736_v11 = vpop.f32.mrb[28].mxu1 }
 0x13a   : > { %7800 = vst [vmem:[#allocation40_spill] sm:$0xff] %v5561_v45  ;;  %v1365_v51 = vadd.f32 %v5467_v21, %v1262_v57  ;;  %v5576_v52 = vmul.f32 %v5331_v4, %v5416_v7  ;;  %v5578_v54 = vmax.f32 %v832_v56, 0.0  ;;  %v1776_v59 = vadd.f32 %v1733_v30, %v1673_v34  ;;  %v4864_v21 = vpop.f32.mrb[29].mxu1 }
 0x13b   : > { %v1674_v15 = vadd.f32 %v7801_v41, %v1570_v27  ;;  %v1834_v8 = vrot.slane %v1798_v25, 2  ;;  %v1835_v49 = vrot.slane %v1799_v5, 2  ;;  %v802_v12 = vmul.f32 %v5188_v37, %v736_v11  ;;  %v739_v13 = vpop.f32.mrb[30].mxu1 }
 0x13c   : > { %7802 = vst [vmem:[#allocation41_spill] sm:$0xff] %v5576_v52  ;;  %7803 = vst [vmem:[#allocation42_spill] sm:$0xff] %v5578_v54  ;;  %v1468_v55 = vadd.f32 %v1426_v39, %v1365_v51  ;;  %v7574_v16 = vrot.slane %v5576_v52, 2  ;;  %v1837_v33 = vrot.slane %v1800_v46, 2  ;;  %v1901_v28 = vmul.f32 %v5233_v17, %v5400_v48  ;;  %v4865_v56 = vpop.f32.mrb[31].mxu1 }
 0x13d   : > { %v1777_v62 = vadd.f32 %v1732_v22, %v1674_v15  ;;  %v1902_v36 = vmul.f32 %v5233_v17, %v5416_v7  ;;  %v1903_v32 = vmul.f32 %v5233_v17, %v5454_v35  ;;  %v833_v30 = vadd.f32 %v5199_v44, %v802_v12 }
 0x13e   : > { %v803_v25 = vmul.f32 %v5188_v37, %v739_v13  ;;  %v1571_v39 = vadd.f32 %v1529_v2, %v1468_v55  ;;  %v1836_v22 = vsel %vm1627_vm2, %v1834_v8, %v1835_v49  ;;  %v1839_v57 = vsel %vm1627_vm2, %v1837_v33, %v7574_v16 }
 0x13f   : > { %v1879_v27 = vadd.f32 %v1836_v22, %v1776_v59  ;;  %v1880_v34 = vadd.f32 %v1835_v49, %v1777_v62  ;;  %v5596_v5 = vmul.f32 %v5233_v17, %v5471_v1  ;;  %v5598_v46 = vmax.f32 %v833_v30, 0.0 }
 0x140   : > { %v834_v51 = vadd.f32 %v5199_v44, %v803_v25  ;;  %v1675_v41 = vadd.f32 %v5485_v26, %v1571_v39  ;;  %v1938_v15 = vrot.slane %v1902_v36, 2  ;;  %v1937_v2 = vrot.slane %v1901_v28, 2 }
 0x141   : > { %7804 = vst [vmem:[#allocation43_spill] sm:$0xff] %v5596_v5  ;;  %7805 = vst [vmem:[#allocation44_spill] sm:$0xff] %v5598_v46  ;;  %v1940_v11 = vrot.slane %v1903_v32, 2  ;;  %v7572_v8 = vrot.slane %v5596_v5, 2  ;;  %v2004_v12 = vmul.f32 %v5236_v18, %v5454_v35  ;;  %v1089_v49 = vmul.f32 %v5239_v19, %v5598_v46  ;;  %v744_v62 = vpop.f32.mrb[32].mxu1 }
 0x142   : > { %v5605_v59 = vmax.f32 %v834_v51, 0.0  ;;  %v1778_v21 = vadd.f32 %v1736_v42, %v1675_v41  ;;  %v2005_v55 = vmul.f32 %v5236_v18, %v5471_v1  ;;  %v889_v26 = vmul.f32 %v5312_v0, %v5598_v46  ;;  %v4868_v32 = vpop.f32.mrb[33].mxu1 }
 0x143   : > { %v1939_v13 = vsel %vm1627_vm2, %v1937_v2, %v1938_v15  ;;  %v1942_v33 = vsel %vm1627_vm2, %v1940_v11, %v7572_v8  ;;  %v2006_v28 = vmul.f32 %v5236_v18, %v5513_v3  ;;  %v804_v36 = vmul.f32 %v5188_v37, %v744_v62  ;;  %v747_v56 = vpop.f32.mrb[34].mxu1 }
 0x144   : > { %7806 = vst [vmem:[#allocation45_spill] sm:$0xff] %v5605_v59  ;;  %v5622_v42 = vmul.f32 %v5239_v19, %v5605_v59  ;;  %v1133_v30 = vrot.slane %v1089_v49, 1  ;;  %v1983_v25 = vadd.f32 %v1938_v15, %v1880_v34  ;;  %v1881_v39 = vadd.f32 %v1839_v57, %v1778_v21  ;;  %v4869_v62 = vpop.f32.mrb[35].mxu1 }
 0x145   : > { %v1982_v22 = vadd.f32 %v1939_v13, %v1879_v27  ;;  %v5626_v51 = vmul.f32 %v5236_v18, %v5528_v9  ;;  %v2040_v41 = vrot.slane %v2004_v12, 2  ;;  %v835_v2 = vadd.f32 %v5199_v44, %v804_v36 }
 0x146   : > { %v805_v11 = vmul.f32 %v5188_v37, %v747_v56  ;;  %v7577_v32 = vrot.slane %v5622_v42, 1  ;;  %v2041_v8 = vrot.slane %v2005_v55, 2  ;;  %v890_v49 = vmul.f32 %v5312_v0, %v5605_v59 }
 0x147   : > { %7807 = vst [vmem:[#allocation46_spill] sm:$0xff] %v5626_v51  ;;  %v1984_v34 = vadd.f32 %v1942_v33, %v1881_v39  ;;  %v2043_v15 = vrot.slane %v2006_v28, 2  ;;  %v7573_v57 = vrot.slane %v5626_v51, 2  ;;  %v5634_v27 = vmax.f32 %v835_v2, 0.0 }
 0x148   : > { %v836_v21 = vadd.f32 %v5199_v44, %v805_v11  ;;  %v2042_v12 = vsel %vm1627_vm2, %v2040_v41, %v2041_v8  ;;  %v5640_v13 = vmul.f32 %v5247_v23, %v5344_v31  ;;  %v5645_v55 = vsel %vm1111_vm1, %v1133_v30, %v7577_v32 }
 0x149   : > { %7808 = vst [vmem:[#allocation47_spill] sm:$0xff] %v5634_v27  ;;  %v2045_v33 = vsel %vm1627_vm2, %v2043_v15, %v7573_v57  ;;  %v5650_v28 = vadd.f32 %v2042_v12, %v1982_v22  ;;  %v5652_v36 = vadd.f32 %v2041_v8, %v1983_v25  ;;  %v929_v39 = vmul.f32 %v5298_v58, %v5634_v27  ;;  %v752_v2 = vpop.f32.mrb[36].mxu1 }
 0x14a   : > { %v5654_v56 = vmax.f32 %v836_v21, 0.0  ;;  %v1091_v41 = vmul.f32 %v5239_v19, %v5634_v27  ;;  %v5662_v30 = vmul.f32 %v5247_v23, %v5367_v43  ;;  %v891_v11 = vmul.f32 %v5312_v0, %v5634_v27  ;;  %v4872_v15 = vpop.f32.mrb[37].mxu1 }
 0x14b   : > { %v1607_v8 = vmul.f32 %v5242_v20, %v5634_v27  ;;  %v2123_v25 = vmul.f32 %v5247_v23, %v5634_v27  ;;  %v2639_v22 = vmul.f32 %v5250_v24, %v5634_v27  ;;  %v806_v62 = vmul.f32 %v5188_v37, %v752_v2  ;;  %v755_v16 = vpop.f32.mrb[38].mxu1 }
 0x14c   : > { %7809 = vst [vmem:[#allocation48_spill] sm:$0xff] %v5654_v56  ;;  %v930_v21 = vmul.f32 %v5298_v58, %v5654_v56  ;;  %v5677_v12 = vmul.f32 %v5239_v19, %v5654_v56  ;;  %v5679_v57 = vadd.f32 %v2045_v33, %v1984_v34  ;;  %v947_v40 = vadd.f32 %v929_v39, %v889_v26  ;;  %v4873_v51 = vpop.f32.mrb[39].mxu1 }
 0x14d   : > { %v1136_v50 = vrot.slane %v1091_v41, 1  ;;  %v892_v32 = vmul.f32 %v5312_v0, %v5654_v56  ;;  %v5685_v27 = vmul.f32 %v5242_v20, %v5654_v56  ;;  %v837_v2 = vadd.f32 %v5199_v44, %v806_v62 }
 0x14e   : > { %v807_v15 = vmul.f32 %v5188_v37, %v755_v16  ;;  %v7585_v5 = vrot.slane %v5677_v12, 1  ;;  %v1652_v52 = vrot.slane %v1607_v8, 2  ;;  %v948_v34 = vadd.f32 %v930_v21, %v890_v49 }
 0x14f   : > { %v7586_v33 = vrot.slane %v5685_v27, 2  ;;  %v5693_v26 = vmul.f32 %v5247_v23, %v5654_v56  ;;  %v5697_v39 = vmul.f32 %v5250_v24, %v5654_v56  ;;  %v5699_v41 = vmax.f32 %v837_v2, 0.0 }
 0x150   : > { %v838_v62 = vadd.f32 %v5199_v44, %v807_v15  ;;  %v5705_v16 = vsel %vm1111_vm1, %v1136_v50, %v7585_v5  ;;  %v2168_v51 = vrot.slane %v2123_v25, 3  ;;  %v2684_v21 = vrot.slane %v2639_v22, 4 }
 0x151   : > { %7810 = vst [vmem:[#allocation49_spill] sm:$0xff] %v5693_v26  ;;  %7811 = vst [vmem:[#allocation50_spill] sm:$0xff] %v5697_v39  ;;  %v5710_v49 = vsel %vm1627_vm2, %v1652_v52, %v7586_v33  ;;  %v7597_v8 = vrot.slane %v5693_v26, 3  ;;  %v969_v15 = vmul.f32 %v5321_v10, %v5699_v41  ;;  %v931_v50 = vmul.f32 %v5298_v58, %v5699_v41  ;;  %v760_v5 = vpop.f32.mrb[40].mxu1 }
 0x152   : > { %7812 = vst [vmem:[#allocation51_spill] sm:$0xff] %v5699_v41  ;;  %v5714_v2 = vmax.f32 %v838_v62, 0.0  ;;  %v1195_v25 = vmul.f32 %v5301_v60, %v5699_v41  ;;  %v1711_v52 = vmul.f32 %v5304_v61, %v5699_v41  ;;  %v2227_v62 = vmul.f32 %v5334_v29, %v5699_v41  ;;  %v4876_v23 = vpop.f32.mrb[41].mxu1 }
 0x153   : > { %v5727_v22 = vsel %vm2143_vm3, %v2168_v51, %v7597_v8  ;;  %v808_v56 = vmul.f32 %v5188_v37, %v760_v5  ;;  %v987_v38 = vadd.f32 %v969_v15, %v947_v40  ;;  %v7815_v53 = vrot.slane %v5697_v39, 4  ;;  %v763_v19 = vpop.f32.mrb[42].mxu1 }
 0x154   : > { %7813 = vst [vmem:[#allocation52_spill] sm:$0xff] %v5714_v2  ;;  %7814 = vst [vmem:[#allocation53_spill] sm:$0xff] %v5727_v22  ;;  %v970_v20 = vmul.f32 %v5321_v10, %v5714_v2  ;;  %v949_v51 = vadd.f32 %v931_v50, %v891_v11  ;;  %v5742_v8 = vmul.f32 %v5301_v60, %v5714_v2  ;;  %v4877_v15 = vpop.f32.mrb[43].mxu1  ;;  %v1755_v50 = vrot.slane %v1711_v52, 2 }
 0x155   : > { %v5738_v59 = vsel %vm2659_vm4, %v2684_v21, %v7815_v53  ;;  %v932_v33 = vmul.f32 %v5298_v58, %v5714_v2  ;;  %v5748_v23 = vmul.f32 %v5304_v61, %v5714_v2  ;;  %v839_v40 = vadd.f32 %v5199_v44, %v808_v56 }
 0x156   : > { %7816 = vst [vmem:[#allocation54_spill] sm:$0xff] %v5738_v59  ;;  %v809_v5 = vmul.f32 %v5188_v37, %v763_v19  ;;  %v988_v53 = vadd.f32 %v970_v20, %v948_v34  ;;  %v1239_v21 = vrot.slane %v1195_v25, 1  ;;  %v7606_v11 = vrot.slane %v5742_v8, 1 }
 0x157   : > { %v7607_v39 = vrot.slane %v5748_v23, 2  ;;  %v5756_v60 = vmul.f32 %v5334_v29, %v5714_v2  ;;  %v5758_v46 = vmax.f32 %v839_v40, 0.0  ;;  %v950_v54 = vadd.f32 %v932_v33, %v892_v32  ;;  %v7821_v32 = vld [vmem:[#allocation25_spill] sm:$0xff] }
 0x158   : > { %v840_v61 = vadd.f32 %v5199_v44, %v809_v5  ;;  %v5763_v19 = vmul.f32 %v5342_v6, %v5699_v41  ;;  %v5768_v20 = vsel %vm1111_vm1, %v1239_v21, %v7606_v11  ;;  %v2271_v34 = vrot.slane %v2227_v62, 3  ;;  %v7822_v5 = vld [vmem:[#allocation26_spill] sm:$0xff] }
 0x159   : > { %7817 = vst [vmem:[#allocation55_spill] sm:$0xff] %v5756_v60  ;;  %7818 = vst [vmem:[#allocation56_spill] sm:$0xff] %v5758_v46  ;;  %v5773_v56 = vsel %vm1627_vm2, %v1755_v50, %v7607_v39  ;;  %v7617_v25 = vrot.slane %v5756_v60, 3  ;;  %v1009_v33 = vmul.f32 %v7821_v32, %v5758_v46  ;;  %v971_v40 = vmul.f32 %v5321_v10, %v5758_v46  ;;  %v768_v21 = vpop.f32.mrb[44].mxu1 }
 0x15a   : > { %7819 = vst [vmem:[#allocation57_spill] sm:$0xff] %v5763_v19  ;;  %v5776_v52 = vmax.f32 %v840_v61, 0.0  ;;  %v1298_v15 = vmul.f32 %v7822_v5, %v5758_v46  ;;  %v1814_v11 = vmul.f32 %v5331_v4, %v5758_v46  ;;  %v7824_v61 = vld [vmem:[#allocation28_spill] sm:$0xff]  ;;  %v5795_v39 = vmul.f32 %v5342_v6, %v5714_v2  ;;  %v4880_v58 = vpop.f32.mrb[45].mxu1 }
 0x15b   : > { %v5789_v62 = vsel %vm2143_vm3, %v2271_v34, %v7617_v25  ;;  %v2330_v50 = vmul.f32 %v7824_v61, %v5758_v46  ;;  %v810_v41 = vmul.f32 %v5188_v37, %v768_v21  ;;  %v1027_v45 = vadd.f32 %v1009_v33, %v987_v38  ;;  %v771_v60 = vpop.f32.mrb[46].mxu1 }
 0x15c   : > { %7820 = vst [vmem:[#allocation58_spill] sm:$0xff] %v5776_v52  ;;  %7823 = vst [vmem:[#allocation59_spill] sm:$0xff] %v5789_v62  ;;  %v1010_v0 = vmul.f32 %v7821_v32, %v5776_v52  ;;  %v989_v26 = vadd.f32 %v971_v40, %v949_v51  ;;  %v5803_v34 = vmul.f32 %v7822_v5, %v5776_v52  ;;  %v4881_v21 = vpop.f32.mrb[47].mxu1  ;;  %v1342_v59 = vrot.slane %v1298_v15, 1  ;;  %v7828_v15 = vld [vmem:[#allocation3_spill] sm:$0xff]  ;;  %v7834_v62 = vld [vmem:[#allocation9_spill] sm:$0xff] }
 0x15d   : > { %7825 = vst [vmem:[#allocation28_spill] sm:$0xff] %v5795_v39  ;;  %v972_v25 = vmul.f32 %v5321_v10, %v5776_v52  ;;  %v5809_v46 = vmul.f32 %v5331_v4, %v5776_v52  ;;  %v841_v58 = vadd.f32 %v5199_v44, %v810_v41  ;;  %v811_v38 = vmul.f32 %v5188_v37, %v771_v60 }
 0x15e   : > { %v1028_v33 = vadd.f32 %v1010_v0, %v988_v53  ;;  %v7629_v51 = vrot.slane %v5803_v34, 1  ;;  %v1858_v40 = vrot.slane %v1814_v11, 2  ;;  %v5817_v5 = vmul.f32 %v7824_v61, %v5776_v52 }
 0x15f   : > { %v7628_v2 = vrot.slane %v5809_v46, 2  ;;  %v5819_v10 = vmax.f32 %v841_v58, 0.0  ;;  %v842_v4 = vadd.f32 %v5199_v44, %v811_v38  ;;  %v990_v19 = vadd.f32 %v972_v25, %v950_v54  ;;  %v7831_v38 = vld [vmem:[#allocation22_spill] sm:$0xff] }
 0x160   : > { %7826 = vst [vmem:[#allocation60_spill] sm:$0xff] %v5817_v5  ;;  %v2374_v41 = vrot.slane %v2330_v50, 3  ;;  %v5825_v60 = vsel %vm1111_vm1, %v1342_v59, %v7629_v51  ;;  %v7639_v53 = vrot.slane %v5817_v5, 3 }
 0x161   : > { %7827 = vst [vmem:[#allocation61_spill] sm:$0xff] %v5819_v10  ;;  %v5830_v0 = vsel %vm1627_vm2, %v1858_v40, %v7628_v2  ;;  %v1049_v58 = vmul.f32 %v7828_v15, %v5819_v10  ;;  %v5838_v54 = vmul.f32 %v5230_v14, %v5819_v10  ;;  %v5840_v25 = vmax.f32 %v842_v4, 0.0  ;;  %v776_v50 = vpop.f32.mrb[48].mxu1 }
 0x162   : > { %v1011_v59 = vmul.f32 %v7821_v32, %v5819_v10  ;;  %v1401_v21 = vmul.f32 %v7831_v38, %v5819_v10  ;;  %v1917_v40 = vmul.f32 %v5233_v17, %v5819_v10  ;;  %v5851_v11 = vsel %vm2143_vm3, %v2374_v41, %v7639_v53  ;;  %v4884_v39 = vpop.f32.mrb[49].mxu1 }
 0x163   : > { %7829 = vst [vmem:[#allocation3_spill] sm:$0xff] %v5838_v54  ;;  %7830 = vst [vmem:[#allocation62_spill] sm:$0xff] %v5840_v25  ;;  %v1067_v51 = vadd.f32 %v1049_v58, %v1027_v45  ;;  %v1050_v4 = vmul.f32 %v7828_v15, %v5840_v25  ;;  %v5858_v52 = vmul.f32 %v5230_v14, %v5840_v25  ;;  %v779_v41 = vpop.f32.mrb[50].mxu1 }
 0x164   : > { %7832 = vst [vmem:[#allocation63_spill] sm:$0xff] %v5851_v11  ;;  %v2433_v6 = vmul.f32 %v7834_v62, %v5819_v10  ;;  %v812_v5 = vmul.f32 %v5188_v37, %v776_v50  ;;  %v1012_v53 = vmul.f32 %v7821_v32, %v5840_v25  ;;  %v5868_v45 = vmul.f32 %v7831_v38, %v5840_v25  ;;  %v4885_v10 = vpop.f32.mrb[51].mxu1 }
 0x165   : > { %7833 = vst [vmem:[#allocation64_spill] sm:$0xff] %v5858_v52  ;;  %v5871_v58 = vadd.f32 %v5645_v55, %v1067_v51  ;;  %v1068_v2 = vadd.f32 %v1050_v4, %v1028_v33  ;;  %v1029_v39 = vadd.f32 %v1011_v59, %v989_v26  ;;  %v813_v11 = vmul.f32 %v5188_v37, %v779_v41  ;;  %v7840_v59 = vld [vmem:[#allocation12_spill] sm:$0xff] }
 0x166   : > { %v843_v24 = vadd.f32 %v5199_v44, %v812_v5  ;;  %v1030_v54 = vadd.f32 %v1012_v53, %v990_v19  ;;  %v1445_v50 = vrot.slane %v1401_v21, 1  ;;  %v1446_v22 = vrot.slane %v5868_v45, 1 }
 0x167   : > { %7835 = vst [vmem:[#allocation9_spill] sm:$0xff] %v5871_v58  ;;  %v7836_v32 = vrot.slane %v5622_v42, 1  ;;  %v844_v55 = vadd.f32 %v5199_v44, %v813_v11  ;;  %v5884_v26 = vmul.f32 %v5233_v17, %v5840_v25  ;;  %v1961_v5 = vrot.slane %v1917_v40, 2  ;;  %v7841_v40 = vld [vmem:[#allocation23_spill] sm:$0xff] }
 0x168   : > { %v869_v37 = vmax.f32 %v843_v24, 0.0  ;;  %v1447_v10 = vsel %vm1111_vm1, %v1445_v50, %v1446_v22  ;;  %v5889_v19 = vmul.f32 %v7834_v62, %v5840_v25  ;;  %v7839_v44 = vrot.slane %v5640_v13, 3 }
 0x169   : > { %v5878_v9 = vadd.f32 %v7836_v32, %v1068_v2  ;;  %v870_v33 = vmax.f32 %v844_v55, 0.0  ;;  %v1962_v42 = vrot.slane %v5884_v26, 2  ;;  %v2477_v2 = vrot.slane %v2433_v6, 3 }
 0x16a   : > { %v7838_v32 = vrot.slane %v5662_v30, 3  ;;  %v1051_v53 = vmul.f32 %v7828_v15, %v869_v37  ;;  %v1504_v24 = vmul.f32 %v5230_v14, %v869_v37  ;;  %v2020_v11 = vmul.f32 %v5236_v18, %v869_v37 }
 0x16b   : > { %7837 = vst [vmem:[#allocation65_spill] sm:$0xff] %v5878_v9  ;;  %v2536_v21 = vmul.f32 %v7840_v59, %v869_v37  ;;  %v3052_v4 = vmul.f32 %v7841_v40, %v869_v37  ;;  %v1052_v41 = vmul.f32 %v7828_v15, %v870_v33  ;;  %v1505_v6 = vmul.f32 %v5230_v14, %v870_v33 }
 0x16c   : > { %v2149_v51 = vsel %vm2143_vm3, %v7839_v44, %v7838_v32  ;;  %v5907_v13 = vsel %vm1627_vm2, %v1961_v5, %v1962_v42  ;;  %v1069_v45 = vadd.f32 %v1051_v53, %v1029_v39  ;;  %v1548_v50 = vrot.slane %v1504_v24, 1 }
 0x16d   : > { %v2064_v55 = vrot.slane %v2020_v11, 2  ;;  %v2580_v32 = vrot.slane %v2536_v21, 3  ;;  %v3096_v44 = vrot.slane %v3052_v4, 4  ;;  %v1070_v38 = vadd.f32 %v1052_v41, %v1030_v54  ;;  %v7844_v11 = vld [vmem:[#allocation16_spill] sm:$0xff] }
 0x16e   : > { %v1549_v9 = vrot.slane %v1505_v6, 1  ;;  %v5910_v25 = vmul.f32 %v5236_v18, %v870_v33  ;;  %v1173_v37 = vadd.f32 %v5705_v16, %v1069_v45  ;;  %v7653_v52 = vrot.slane %v5889_v19, 3 }
 0x16f   : > { %v5915_v58 = vmul.f32 %v7840_v59, %v870_v33  ;;  %v5918_v5 = vmul.f32 %v7841_v40, %v870_v33  ;;  %v7843_v39 = vrot.slane %v5677_v12, 1  ;;  %v2189_v21 = vadd.f32 %v7844_v11, %v5650_v28  ;;  %v7846_v28 = vld [vmem:[#allocation13_spill] sm:$0xff] }
 0x170   : > { %v1550_v24 = vsel %vm1111_vm1, %v1548_v50, %v1549_v9  ;;  %v7654_v54 = vrot.slane %v5910_v25, 2  ;;  %v1276_v16 = vadd.f32 %v5768_v20, %v1173_v37  ;;  %v5930_v4 = vsel %vm2143_vm3, %v2477_v2, %v7653_v52 }
 0x171   : > { %7842 = vst [vmem:[#allocation12_spill] sm:$0xff] %v5918_v5  ;;  %v1174_v53 = vadd.f32 %v7843_v39, %v1070_v38  ;;  %v7652_v33 = vrot.slane %v5915_v58, 3  ;;  %v7651_v41 = vrot.slane %v5918_v5, 4  ;;  %v7845_v12 = vrot.slane %v5742_v8, 1 }
 0x172   : > { %v2066_v6 = vsel %vm1627_vm2, %v2064_v55, %v7654_v54  ;;  %v7847_v45 = vrot.slane %v7846_v28, 3  ;;  %v2191_v50 = vadd.f32 %v2149_v51, %v5679_v57  ;;  %v1379_v2 = vadd.f32 %v5825_v60, %v1276_v16 }
 0x173   : > { %v1277_v38 = vadd.f32 %v7845_v12, %v1174_v53  ;;  %v5947_v37 = vsel %vm2143_vm3, %v2580_v32, %v7652_v33  ;;  %v5952_v8 = vsel %vm2659_vm4, %v3096_v44, %v7651_v41  ;;  %v2211_v55 = vmul.f32 %v5334_v29, %v5344_v31 }
 0x174   : > { %v2190_v20 = vadd.f32 %v7847_v45, %v5652_v36  ;;  %7848 = vst [vmem:[#allocation16_spill] sm:$0xff] %v5952_v8  ;;  %v7849_v39 = vrot.slane %v5803_v34, 1  ;;  %v2212_v57 = vmul.f32 %v5334_v29, %v5367_v43  ;;  %v2213_v60 = vmul.f32 %v5334_v29, %v5369_v47 }
 0x175   : > { %v5964_v51 = vmul.f32 %v5334_v29, %v5371_v63  ;;  %v1482_v32 = vadd.f32 %v1447_v10, %v1379_v2  ;;  %v2247_v53 = vrot.slane %v2211_v55, 3  ;;  %v2314_v44 = vmul.f32 %v7824_v61, %v5369_v47 }
 0x176   : > { %v1380_v36 = vadd.f32 %v7849_v39, %v1277_v38  ;;  %v2315_v11 = vmul.f32 %v7824_v61, %v5371_v63  ;;  %v2248_v16 = vrot.slane %v2212_v57, 3  ;;  %v2250_v12 = vrot.slane %v2213_v60, 3 }
 0x177   : > { %v7663_v38 = vrot.slane %v5964_v51, 3  ;;  %v1585_v28 = vadd.f32 %v1550_v24, %v1482_v32  ;;  %v2316_v45 = vmul.f32 %v7824_v61, %v5400_v48  ;;  %v5975_v39 = vmul.f32 %v7824_v61, %v5416_v7 }
 0x178   : > { %v1483_v34 = vadd.f32 %v1446_v22, %v1380_v36  ;;  %v2350_v10 = vrot.slane %v2314_v44, 3  ;;  %v2249_v55 = vsel %vm2143_vm3, %v2247_v53, %v2248_v16  ;;  %v2293_v36 = vadd.f32 %v2248_v16, %v2190_v20 }
 0x179   : > { %v2252_v22 = vsel %vm2143_vm3, %v2250_v12, %v7663_v38  ;;  %v1689_v57 = vadd.f32 %v5710_v49, %v1585_v28  ;;  %v2292_v60 = vadd.f32 %v2249_v55, %v2189_v21  ;;  %v2351_v32 = vrot.slane %v2315_v11, 3 }
 0x17a   : > { %v1586_v2 = vadd.f32 %v1549_v9, %v1483_v34  ;;  %v2294_v24 = vadd.f32 %v2252_v22, %v2191_v50  ;;  %v7850_v41 = vrot.slane %v5685_v27, 2  ;;  %v2353_v52 = vrot.slane %v2316_v45, 3 }
 0x17b   : > { %v7662_v54 = vrot.slane %v5975_v39, 3  ;;  %v2417_v9 = vmul.f32 %v7834_v62, %v5400_v48  ;;  %v1792_v53 = vadd.f32 %v5773_v56, %v1689_v57  ;;  %v2352_v44 = vsel %vm2143_vm3, %v2350_v10, %v2351_v32  ;;  %v7853_v57 = vld [vmem:[#allocation38_spill] sm:$0xff] }
 0x17c   : > { %v1690_v33 = vadd.f32 %v7850_v41, %v1586_v2  ;;  %v2396_v34 = vadd.f32 %v2351_v32, %v2293_v36  ;;  %v2418_v49 = vmul.f32 %v7834_v62, %v5416_v7  ;;  %v7851_v21 = vrot.slane %v5748_v23, 2 }
 0x17d   : > { %v2355_v27 = vsel %vm2143_vm3, %v2353_v52, %v7662_v54  ;;  %v2395_v41 = vadd.f32 %v2352_v44, %v2292_v60  ;;  %v2419_v50 = vmul.f32 %v7834_v62, %v5454_v35  ;;  %v1895_v11 = vadd.f32 %v5830_v0, %v1792_v53  ;;  %v7884_v54 = vld [vmem:[#allocation24_spill] sm:$0xff] }
 0x17e   : > { %v1793_v20 = vadd.f32 %v7851_v21, %v1690_v33  ;;  %v2397_v56 = vadd.f32 %v2355_v27, %v2294_v24  ;;  %v6001_v16 = vmul.f32 %v7834_v62, %v5471_v1  ;;  %v2453_v12 = vrot.slane %v2417_v9, 3  ;;  %v7855_v21 = vld [vmem:[#allocation53_spill] sm:$0xff]  ;;  %v7856_v27 = vld [vmem:[#allocation11_spill] sm:$0xff] }
 0x17f   : > { %v7852_v28 = vrot.slane %v5809_v46, 2  ;;  %v2454_v33 = vrot.slane %v2418_v49, 3  ;;  %v2456_v45 = vrot.slane %v2419_v50, 3  ;;  %v2520_v52 = vmul.f32 %v7840_v59, %v5454_v35 }
 0x180   : > { %v1998_v10 = vadd.f32 %v5907_v13, %v1895_v11  ;;  %v7661_v2 = vrot.slane %v6001_v16, 3  ;;  %v2521_v0 = vmul.f32 %v7840_v59, %v5471_v1  ;;  %v2522_v55 = vmul.f32 %v7840_v59, %v5513_v3  ;;  %v7857_v11 = vld [vmem:[#allocation49_spill] sm:$0xff] }
 0x181   : > { %v1896_v23 = vadd.f32 %v7852_v28, %v1793_v20  ;;  %v2455_v46 = vsel %vm2143_vm3, %v2453_v12, %v2454_v33  ;;  %v2499_v36 = vadd.f32 %v2454_v33, %v2396_v34  ;;  %v6018_v60 = vmul.f32 %v7840_v59, %v7853_v57  ;;  %v7860_v33 = vld [vmem:[#allocation59_spill] sm:$0xff] }
 0x182   : > { %v2101_v24 = vadd.f32 %v2066_v6, %v1998_v10  ;;  %v2458_v13 = vsel %vm2143_vm3, %v2456_v45, %v7661_v2  ;;  %v2498_v32 = vadd.f32 %v2455_v46, %v2395_v41  ;;  %v2556_v9 = vrot.slane %v2520_v52, 3 }
 0x183   : > { %v1999_v22 = vadd.f32 %v1962_v42, %v1896_v23  ;;  %v7854_v53 = vrot.slane %v5910_v25, 2  ;;  %v2500_v49 = vadd.f32 %v2458_v13, %v2397_v56  ;;  %v2557_v26 = vrot.slane %v2521_v0, 3  ;;  %v7859_v56 = vld [vmem:[#allocation29_spill] sm:$0xff] }
 0x184   : > { %v2559_v42 = vrot.slane %v2522_v55, 3  ;;  %v2205_v20 = vadd.f32 %v7855_v21, %v2101_v24  ;;  %v7659_v34 = vrot.slane %v6018_v60, 3  ;;  %v2625_v50 = vmul.f32 %v7856_v27, %v5344_v31  ;;  %v7861_v55 = vld [vmem:[#allocation55_spill] sm:$0xff] }
 0x185   : > { %v2102_v44 = vadd.f32 %v7854_v53, %v1999_v22  ;;  %v6031_v6 = vmul.f32 %v7856_v27, %v5367_v43  ;;  %v7858_v41 = vrot.slane %v7857_v11, 3  ;;  %v2558_v25 = vsel %vm2143_vm3, %v2556_v9, %v2557_v26  ;;  %v7863_v53 = vld [vmem:[#allocation14_spill] sm:$0xff] }
 0x186   : > { %v2602_v28 = vadd.f32 %v2557_v26, %v2499_v36  ;;  %v2727_v23 = vmul.f32 %v7859_v56, %v5344_v31  ;;  %v2308_v45 = vadd.f32 %v7860_v33, %v2205_v20  ;;  %v2561_v52 = vsel %vm2143_vm3, %v2559_v42, %v7659_v34  ;;  %v7866_v31 = vld [vmem:[#allocation20_spill] sm:$0xff] }
 0x187   : > { %v2206_v12 = vadd.f32 %v7858_v41, %v2102_v44  ;;  %v2601_v10 = vadd.f32 %v2558_v25, %v2498_v32  ;;  %v2663_v0 = vrot.slane %v2625_v50, 4  ;;  %v7862_v22 = vrot.slane %v7861_v55, 3  ;;  %v7865_v44 = vld [vmem:[#allocation63_spill] sm:$0xff]  ;;  %v7867_v42 = vld [vmem:[#allocation60_spill] sm:$0xff]  ;;  %v7870_v55 = vld [vmem:[#allocation30_spill] sm:$0xff] }
 0x188   : > { %v2603_v24 = vadd.f32 %v2561_v52, %v2500_v49  ;;  %v7658_v13 = vrot.slane %v6031_v6, 4  ;;  %v7864_v9 = vrot.slane %v7863_v53, 4  ;;  %v2411_v26 = vadd.f32 %v7865_v44, %v2308_v45 }
 0x189   : > { %v2309_v46 = vadd.f32 %v7862_v22, %v2206_v12  ;;  %v2705_v21 = vadd.f32 %v7866_v31, %v2601_v10  ;;  %v2728_v20 = vmul.f32 %v7859_v56, %v5367_v43  ;;  %v2729_v32 = vmul.f32 %v7859_v56, %v5369_v47 }
 0x18a   : > { %v2706_v36 = vadd.f32 %v7864_v9, %v2602_v28  ;;  %v7868_v50 = vrot.slane %v7867_v42, 3  ;;  %v2665_v49 = vsel %vm2659_vm4, %v2663_v0, %v7658_v13  ;;  %v6060_v41 = vmul.f32 %v7859_v56, %v5371_v63  ;;  %v7874_v42 = vld [vmem:[#allocation28_spill] sm:$0xff] }
 0x18b   : > { %v2763_v12 = vrot.slane %v2727_v23, 4  ;;  %v2514_v25 = vadd.f32 %v5930_v4, %v2411_v26  ;;  %v2707_v28 = vadd.f32 %v2665_v49, %v2603_v24  ;;  %v2764_v33 = vrot.slane %v2728_v20, 4 }
 0x18c   : > { %v2412_v11 = vadd.f32 %v7868_v50, %v2309_v46  ;;  %v2766_v43 = vrot.slane %v2729_v32, 4  ;;  %v7869_v45 = vrot.slane %v5889_v19, 3  ;;  %v7657_v10 = vrot.slane %v6060_v41, 4 }
 0x18d   : > { %v2830_v22 = vmul.f32 %v7870_v55, %v5369_v47  ;;  %v2831_v0 = vmul.f32 %v7870_v55, %v5371_v63  ;;  %v2617_v46 = vadd.f32 %v5947_v37, %v2514_v25  ;;  %v2765_v23 = vsel %vm2659_vm4, %v2763_v12, %v2764_v33  ;;  %v7873_v37 = vld [vmem:[#allocation54_spill] sm:$0xff] }
 0x18e   : > { %v2515_v52 = vadd.f32 %v7869_v45, %v2412_v11  ;;  %v2809_v53 = vadd.f32 %v2764_v33, %v2706_v36  ;;  %v2832_v4 = vmul.f32 %v7870_v55, %v5400_v48  ;;  %v7871_v24 = vrot.slane %v5915_v58, 3  ;;  %v7876_v11 = vld [vmem:[#allocation57_spill] sm:$0xff] }
 0x18f   : > { %v2768_v9 = vsel %vm2659_vm4, %v2766_v43, %v7657_v10  ;;  %v2808_v44 = vadd.f32 %v2765_v23, %v2705_v21  ;;  %v6083_v26 = vmul.f32 %v7870_v55, %v5416_v7  ;;  %v2721_v31 = vadd.f32 %v7873_v37, %v2617_v46  ;;  %v7878_v21 = vld [vmem:[#allocation15_spill] sm:$0xff] }
 0x190   : > { %v6076_v19 = vadd.f32 %v7871_v24, %v2515_v52  ;;  %v2810_v20 = vadd.f32 %v2768_v9, %v2707_v28  ;;  %v2866_v36 = vrot.slane %v2830_v22, 4  ;;  %v2867_v32 = vrot.slane %v2831_v0, 4 }
 0x191   : > { %v7875_v50 = vrot.slane %v7874_v42, 4  ;;  %v7877_v58 = vrot.slane %v7876_v11, 4  ;;  %v2869_v12 = vrot.slane %v2832_v4, 4  ;;  %v7656_v25 = vrot.slane %v6083_v26, 4 }
 0x192   : > { %7872 = vst [vmem:[#allocation13_spill] sm:$0xff] %v6076_v19  ;;  %v2933_v33 = vmul.f32 %v7878_v21, %v5400_v48  ;;  %v2868_v45 = vsel %vm2659_vm4, %v2866_v36, %v2867_v32  ;;  %v2912_v52 = vadd.f32 %v2867_v32, %v2809_v53  ;;  %v2934_v28 = vmul.f32 %v7878_v21, %v5416_v7 }
 0x193   : > { %v2789_v49 = vsel %vm2659_vm4, %v7877_v58, %v7875_v50  ;;  %v2871_v22 = vsel %vm2659_vm4, %v2869_v12, %v7656_v25  ;;  %v2911_v0 = vadd.f32 %v2868_v45, %v2808_v44  ;;  %v2935_v46 = vmul.f32 %v7878_v21, %v5454_v35 }
 0x194   : > { %v6094_v43 = vadd.f32 %v2789_v49, %v2721_v31  ;;  %v6106_v23 = vmul.f32 %v7878_v21, %v5471_v1  ;;  %v2913_v4 = vadd.f32 %v2871_v22, %v2810_v20  ;;  %v2969_v24 = vrot.slane %v2933_v33, 4  ;;  %v7880_v22 = vld [vmem:[#allocation21_spill] sm:$0xff] }
 0x195   : > { %v2970_v9 = vrot.slane %v2934_v28, 4  ;;  %v3036_v53 = vmul.f32 %v7841_v40, %v5454_v35  ;;  %v2972_v37 = vrot.slane %v2935_v46, 4  ;;  %v3037_v36 = vmul.f32 %v7841_v40, %v5471_v1 }
 0x196   : > { %7879 = vst [vmem:[#allocation38_spill] sm:$0xff] %v6094_v43  ;;  %v7655_v31 = vrot.slane %v6106_v23, 4  ;;  %v3038_v44 = vmul.f32 %v7841_v40, %v5513_v3  ;;  %v6118_v20 = vmul.f32 %v7841_v40, %v7853_v57  ;;  %v879_v46 = vmul.f32 %v7880_v22, %v5369_v47 }
 0x197   : > { %v2971_v32 = vsel %vm2659_vm4, %v2969_v24, %v2970_v9  ;;  %v3015_v50 = vadd.f32 %v2970_v9, %v2912_v52  ;;  %v3072_v11 = vrot.slane %v3036_v53, 4  ;;  %v3073_v12 = vrot.slane %v3037_v36, 4 }
 0x198   : > { %v2974_v58 = vsel %vm2659_vm4, %v2972_v37, %v7655_v31  ;;  %v3014_v49 = vadd.f32 %v2971_v32, %v2911_v0  ;;  %v3075_v33 = vrot.slane %v3038_v44, 4  ;;  %v7660_v28 = vrot.slane %v6118_v20, 4  ;;  %v7881_v37 = vld [vmem:[#allocation17_spill] sm:$0xff]  ;;  %v7883_v31 = vld [vmem:[#allocation32_spill] sm:$0xff] }
 0x199   : > { %v3016_v45 = vadd.f32 %v2974_v58, %v2913_v4  ;;  %v880_v52 = vmul.f32 %v7880_v22, %v5371_v63  ;;  %v3074_v24 = vsel %vm2659_vm4, %v3072_v11, %v3073_v12  ;;  %v3118_v9 = vadd.f32 %v3073_v12, %v3015_v50  ;;  %v7882_v11 = vld [vmem:[#allocation2_spill] sm:$0xff] }
 0x19a   : > { %v881_v53 = vmul.f32 %v7880_v22, %v5400_v48  ;;  %v918_v0 = vmul.f32 %v7881_v37, %v5371_v63  ;;  %v3077_v4 = vsel %vm2659_vm4, %v3075_v33, %v7660_v28  ;;  %v3117_v36 = vadd.f32 %v3074_v24, %v3014_v49 }
 0x19b   : > { %v919_v44 = vmul.f32 %v7881_v37, %v5400_v48  ;;  %v920_v32 = vmul.f32 %v7881_v37, %v5416_v7  ;;  %v3119_v58 = vadd.f32 %v3077_v4, %v3016_v45  ;;  %v3208_v50 = vrot.slane %v3118_v9, %v7882_v11 }
 0x19c   : > { %v921_v12 = vmul.f32 %v7881_v37, %v5454_v35  ;;  %v936_v25 = vadd.f32 %v918_v0, %v7883_v31  ;;  %v3153_v10 = vcombine.high %v3117_v36, %v3117_v36  ;;  %v3160_v13 = vrot.slane %v3117_v36, %v7882_v11 }
 0x19d   : > { %v937_v34 = vadd.f32 %v919_v44, %v879_v46  ;;  %v938_v33 = vadd.f32 %v920_v32, %v880_v52  ;;  %v3215_v49 = vrot.slane %v3208_v50, %v7882_v11  ;;  %v3216_v24 = vcombine.high %v3119_v58, %v3119_v58 }
 0x19e   : > { %v3223_v28 = vrot.slane %v3119_v58, %v7882_v11  ;;  %v939_v2 = vadd.f32 %v921_v12, %v881_v53  ;;  %v3167_v45 = vrot.slane %v3153_v10, %v7882_v11  ;;  %v3168_v4 = vcombine.high %v3160_v13, %v3160_v13 }
 0x19f   : > { %v3176_v9 = vrot.slane %v3160_v13, %v7882_v11  ;;  %v958_v38 = vmul.f32 %v7884_v54, %v5416_v7  ;;  %v3230_v31 = vrot.slane %v3216_v24, %v7882_v11  ;;  %v959_v52 = vmul.f32 %v7884_v54, %v5454_v35 }
 0x1a0   : > { %v3231_v0 = vcombine.high %v3223_v28, %v3223_v28  ;;  %v3239_v46 = vrot.slane %v3223_v28, %v7882_v11  ;;  %v3169_v36 = vcombine.high %v3167_v45, %v3167_v45  ;;  %v3183_v44 = vrot.slane %v3167_v45, %v7882_v11 }
 0x1a1   : > { %v3190_v53 = vrot.slane %v3168_v4, %v7882_v11  ;;  %v960_v10 = vmul.f32 %v7884_v54, %v5471_v1  ;;  %v3232_v13 = vcombine.high %v3230_v31, %v3230_v31  ;;  %v3246_v32 = vrot.slane %v3230_v31, %v7882_v11 }
 0x1a2   : > { %v3253_v58 = vrot.slane %v3231_v0, %v7882_v11  ;;  %v3261_v50 = vcombine.high %v3239_v46, %v3239_v46  ;;  %v3197_v12 = vrot.slane %v3169_v36, %v7882_v11  ;;  %v3769_v5 = vcombine.low %v3215_v49, %v3239_v46  ;;  %v7897_v0 = vld [vmem:[#allocation26_spill] sm:$0xff] }
 0x1a3   : > { %v3720_v28 = vcombine.low %v3176_v9, %v3190_v53  ;;  %v4707_v24 = vcombine.high %v3176_v9, %v3190_v53  ;;  %v6163_v8 = vrot.slane %v3232_v13, %v7882_v11  ;;  %v3262_v45 = vcombine.high %v3246_v32, %v3246_v32 }
 0x1a4   : > { %v3263_v42 = vcombine.high %v3253_v58, %v3253_v58  ;;  %v3770_v4 = vcombine.low %v3253_v58, %v3261_v50  ;;  %v3722_v43 = vcombine.low %v3183_v44, %v3197_v12  ;;  %v4708_v19 = vcombine.high %v3183_v44, %v3197_v12 }
 0x1a5   : > { %v3730_v37 = vrot.slane %v3720_v28, %v7882_v11  ;;  %v3737_v31 = vrot.slane %v4707_v24, %v7882_v11  ;;  %v3772_v36 = vcombine.low %v6163_v8, %v3262_v45  ;;  %v3779_v49 = vrot.slane %v3769_v5, %v7882_v11 }
 0x1a6   : > { %v3771_v22 = vcombine.low %v3263_v42, %v3246_v32  ;;  %v3744_v9 = vrot.slane %v3722_v43, %v7882_v11  ;;  %v3751_v46 = vrot.slane %v4708_v19, %v7882_v11  ;;  %v3786_v13 = vrot.slane %v3770_v4, %v7882_v11  ;;  %v7885_v19 = vld [vmem:[#allocation25_spill] sm:$0xff] }
 0x1a7   : > { %v3752_v53 = vcombine.low %v3730_v37, %v3737_v31  ;;  %v3800_v58 = vrot.slane %v3772_v36, %v7882_v11  ;;  %v961_v50 = vmul.f32 %v7884_v54, %v5513_v3  ;;  %v976_v12 = vadd.f32 %v958_v38, %v936_v25  ;;  %v7886_v36 = vld [vmem:[#allocation40_spill] sm:$0xff] }
 0x1a8   : > { %v3793_v44 = vrot.slane %v3771_v22, %v7882_v11  ;;  %v3753_v42 = vcombine.low %v3744_v9, %v3751_v46  ;;  %v3801_v28 = vcombine.low %v3779_v49, %v3786_v13  ;;  %v977_v5 = vadd.f32 %v959_v52, %v937_v34  ;;  %v7887_v13 = vld [vmem:[#allocation42_spill] sm:$0xff] }
 0x1a9   : > { %v3760_v32 = vrot.slane %v3752_v53, %v7882_v11  ;;  %v978_v43 = vadd.f32 %v960_v10, %v938_v33  ;;  %v979_v45 = vadd.f32 %v961_v50, %v939_v2  ;;  %v998_v37 = vmul.f32 %v7885_v19, %v5471_v1 }
 0x1aa   : > { %v3802_v24 = vcombine.low %v3793_v44, %v3800_v58  ;;  %v3767_v4 = vrot.slane %v3753_v42, %v7882_v11  ;;  %v3809_v22 = vrot.slane %v3801_v28, %v7882_v11  ;;  %v999_v31 = vmul.f32 %v7885_v19, %v5513_v3  ;;  %v7888_v58 = vld [vmem:[#allocation44_spill] sm:$0xff] }
 0x1ab   : > { %v1000_v38 = vmul.f32 %v7885_v19, %v7853_v57  ;;  %v1001_v34 = vmul.f32 %v7885_v19, %v7886_v36  ;;  %v1016_v33 = vadd.f32 %v998_v37, %v976_v12  ;;  %v1038_v2 = vmul.f32 %v7828_v15, %v7853_v57  ;;  %v7889_v12 = vld [vmem:[#allocation7_spill] sm:$0xff] }
 0x1ac   : > { %v3816_v25 = vrot.slane %v3802_v24, %v7882_v11  ;;  %v3768_v52 = vcombine.low %v3760_v32, %v3767_v4  ;;  %v1017_v10 = vadd.f32 %v999_v31, %v977_v5  ;;  %v1039_v9 = vmul.f32 %v7828_v15, %v7886_v36 }
 0x1ad   : > { %v1018_v49 = vadd.f32 %v1000_v38, %v978_v43  ;;  %v1019_v53 = vadd.f32 %v1001_v34, %v979_v45  ;;  %v1040_v44 = vmul.f32 %v7828_v15, %v7887_v13  ;;  %v1041_v50 = vmul.f32 %v7828_v15, %v7888_v58  ;;  %v7891_v38 = vld [vmem:[#allocation31_spill] sm:$0xff] }
 0x1ae   : > { %v3817_v46 = vcombine.low %v3809_v22, %v3816_v25  ;;  %v1056_v42 = vadd.f32 %v1038_v2, %v1016_v33  ;;  %v1057_v28 = vadd.f32 %v1039_v9, %v1017_v10  ;;  %v1079_v24 = vmul.f32 %v7889_v12, %v5369_v47  ;;  %v7893_v2 = vld [vmem:[#allocation18_spill] sm:$0xff] }
 0x1af   : > { %v1080_v32 = vmul.f32 %v7889_v12, %v5371_v63  ;;  %v1058_v43 = vadd.f32 %v1040_v44, %v1018_v49  ;;  %v1059_v37 = vadd.f32 %v1041_v50, %v1019_v53  ;;  %v1081_v45 = vmul.f32 %v7889_v12, %v5400_v48 }
 0x1b0   : > { %v4235_v5 = vpack.c.bf16 %v3817_v46, %v3768_v52  ;;  %v6206_v4 = vmul.f32 %v7889_v12, %v5416_v7  ;;  %v1118_v22 = vrot.slane %v1079_v24, 1  ;;  %v7892_v25 = vrot.slane %v7891_v38, 1  ;;  %v7895_v38 = vld [vmem:[#allocation34_spill] sm:$0xff] }
 0x1b1   : > { %v1119_v31 = vrot.slane %v1080_v32, 1  ;;  %v1121_v33 = vrot.slane %v1081_v45, 1  ;;  %v1183_v10 = vmul.f32 %v7893_v2, %v5400_v48  ;;  %v1184_v52 = vmul.f32 %v7893_v2, %v5416_v7 }
 0x1b2   : > { %7890 = vst [vmem:[#allocation53_spill] sm:$0xff] %v6206_v4  ;;  %v1160_v34 = vadd.f32 %v7892_v25, %v1056_v42  ;;  %4902 = vmatprep.mubr.bf16.mxu0 %v4235_v5  ;;  %v1185_v49 = vmul.f32 %v7893_v2, %v5454_v35  ;;  %v7670_v46 = vrot.slane %v6206_v4, 1  ;;  %v6220_v44 = vmul.f32 %v7893_v2, %v5471_v1 }
 0x1b3   : > { %v1120_v9 = vsel %vm1111_vm1, %v1118_v22, %v1119_v31  ;;  %v1162_v53 = vadd.f32 %v1119_v31, %v1058_v43  ;;  %v1221_v42 = vrot.slane %v1183_v10, 1  ;;  %v1222_v24 = vrot.slane %v1184_v52, 1 }
 0x1b4   : > { %7894 = vst [vmem:[#allocation11_spill] sm:$0xff] %v6220_v44  ;;  %v1161_v50 = vadd.f32 %v1120_v9, %v1057_v28  ;;  %v1224_v32 = vrot.slane %v1185_v49, 1  ;;  %v1123_v5 = vsel %vm1111_vm1, %v1121_v33, %v7670_v46  ;;  %v7669_v45 = vrot.slane %v6220_v44, 1 }
 0x1b5   : > { %v7896_v25 = vrot.slane %v7895_v38, 1  ;;  %v1286_v43 = vmul.f32 %v7897_v0, %v5454_v35  ;;  %v1163_v31 = vadd.f32 %v1123_v5, %v1059_v37  ;;  %v1223_v2 = vsel %vm1111_vm1, %v1221_v42, %v1222_v24  ;;  %v7899_v42 = vld [vmem:[#allocation35_spill] sm:$0xff] }
 0x1b6   : > { %v1265_v12 = vadd.f32 %v1222_v24, %v1162_v53  ;;  %v1287_v28 = vmul.f32 %v7897_v0, %v5471_v1  ;;  %v1226_v10 = vsel %vm1111_vm1, %v1224_v32, %v7669_v45  ;;  %v1264_v33 = vadd.f32 %v1223_v2, %v1161_v50 }
 0x1b7   : > { %v1263_v22 = vadd.f32 %v7896_v25, %v1160_v34  ;;  %v1288_v52 = vmul.f32 %v7897_v0, %v5513_v3  ;;  %v6240_v34 = vmul.f32 %v7897_v0, %v7853_v57  ;;  %v1266_v49 = vadd.f32 %v1226_v10, %v1163_v31  ;;  %v7901_v25 = vld [vmem:[#allocation22_spill] sm:$0xff] }
 0x1b8   : > { %v1324_v37 = vrot.slane %v1286_v43, 1  ;;  %v1325_v9 = vrot.slane %v1287_v28, 1  ;;  %v7900_v53 = vrot.slane %v7899_v42, 1  ;;  %v1389_v32 = vmul.f32 %v7901_v25, %v5513_v3 }
 0x1b9   : > { %7898 = vst [vmem:[#allocation49_spill] sm:$0xff] %v6240_v34  ;;  %v1327_v5 = vrot.slane %v1288_v52, 1  ;;  %v7676_v38 = vrot.slane %v6240_v34, 1  ;;  %v1390_v2 = vmul.f32 %v7901_v25, %v7853_v57  ;;  %v1391_v31 = vmul.f32 %v7901_v25, %v7886_v36 }
 0x1ba   : > { %v1366_v24 = vadd.f32 %v7900_v53, %v1263_v22  ;;  %v1326_v50 = vsel %vm1111_vm1, %v1324_v37, %v1325_v9  ;;  %v1368_v45 = vadd.f32 %v1325_v9, %v1265_v12  ;;  %v6254_v43 = vmul.f32 %v7901_v25, %v7887_v13  ;;  %v7903_v37 = vld [vmem:[#allocation36_spill] sm:$0xff] }
 0x1bb   : > { %v1329_v22 = vsel %vm1111_vm1, %v1327_v5, %v7676_v38  ;;  %v1367_v28 = vadd.f32 %v1326_v50, %v1264_v33  ;;  %v1427_v10 = vrot.slane %v1389_v32, 1  ;;  %v1428_v52 = vrot.slane %v1390_v2, 1  ;;  %v7905_v32 = vld [vmem:[#allocation45_spill] sm:$0xff] }
 0x1bc   : > { %7902 = vst [vmem:[#allocation29_spill] sm:$0xff] %v6254_v43  ;;  %v1369_v42 = vadd.f32 %v1329_v22, %v1266_v49  ;;  %v1430_v53 = vrot.slane %v1391_v31, 1  ;;  %v7675_v46 = vrot.slane %v6254_v43, 1  ;;  %v7904_v12 = vrot.slane %v7903_v37, 1  ;;  %v7907_v31 = vld [vmem:[#allocation39_spill] sm:$0xff] }
 0x1bd   : > { %v1429_v0 = vsel %vm1111_vm1, %v1427_v10, %v1428_v52  ;;  %v1471_v44 = vadd.f32 %v1428_v52, %v1368_v45  ;;  %v1492_v25 = vmul.f32 %v5230_v14, %v7886_v36  ;;  %v1493_v34 = vmul.f32 %v5230_v14, %v7887_v13 }
 0x1be   : > { %v1469_v9 = vadd.f32 %v7904_v12, %v1366_v24  ;;  %v1432_v33 = vsel %vm1111_vm1, %v1430_v53, %v7675_v46  ;;  %v1470_v49 = vadd.f32 %v1429_v0, %v1367_v28  ;;  %v1494_v5 = vmul.f32 %v5230_v14, %v7888_v58  ;;  %v7909_v12 = vld [vmem:[#allocation8_spill] sm:$0xff] }
 0x1bf   : > { %v6274_v24 = vmul.f32 %v5230_v14, %v7905_v32  ;;  %v1472_v2 = vadd.f32 %v1432_v33, %v1369_v42  ;;  %v1530_v45 = vrot.slane %v1492_v25, 1  ;;  %v1531_v50 = vrot.slane %v1493_v34, 1 }
 0x1c0   : > { %v7908_v22 = vrot.slane %v7907_v31, 1  ;;  %v1533_v52 = vrot.slane %v1494_v5, 1  ;;  %v1595_v53 = vmul.f32 %v7909_v12, %v5369_v47  ;;  %v1596_v0 = vmul.f32 %v7909_v12, %v5371_v63 }
 0x1c1   : > { %7906 = vst [vmem:[#allocation59_spill] sm:$0xff] %v6274_v24  ;;  %v7684_v37 = vrot.slane %v6274_v24, 1  ;;  %v1532_v28 = vsel %vm1111_vm1, %v1530_v45, %v1531_v50  ;;  %v1574_v46 = vadd.f32 %v1531_v50, %v1471_v44  ;;  %v1597_v42 = vmul.f32 %v7909_v12, %v5400_v48  ;;  %v7910_v45 = vld [vmem:[#allocation33_spill] sm:$0xff] }
 0x1c2   : > { %v1572_v10 = vadd.f32 %v7908_v22, %v1469_v9  ;;  %v6288_v34 = vmul.f32 %v7909_v12, %v5416_v7  ;;  %v1573_v9 = vadd.f32 %v1532_v28, %v1470_v49  ;;  %v1634_v33 = vrot.slane %v1595_v53, 2  ;;  %v7912_v12 = vld [vmem:[#allocation19_spill] sm:$0xff]  ;;  %v7914_v28 = vld [vmem:[#allocation37_spill] sm:$0xff] }
 0x1c3   : > { %v1535_v25 = vsel %vm1111_vm1, %v1533_v52, %v7684_v37  ;;  %v1635_v5 = vrot.slane %v1596_v0, 2  ;;  %v1637_v22 = vrot.slane %v1597_v42, 2  ;;  %v7911_v44 = vrot.slane %v7910_v45, 2  ;;  %v7916_v45 = vld [vmem:[#allocation27_spill] sm:$0xff] }
 0x1c4   : > { %v1575_v31 = vadd.f32 %v1535_v25, %v1472_v2  ;;  %v7683_v38 = vrot.slane %v6288_v34, 2  ;;  %v1699_v4 = vmul.f32 %v7912_v12, %v5400_v48  ;;  %v1700_v24 = vmul.f32 %v7912_v12, %v5416_v7 }
 0x1c5   : > { %v1676_v50 = vadd.f32 %v7911_v44, %v1572_v10  ;;  %v1636_v14 = vsel %vm1627_vm2, %v1634_v33, %v1635_v5  ;;  %v1678_v43 = vadd.f32 %v1635_v5, %v1574_v46  ;;  %v1701_v52 = vmul.f32 %v7912_v12, %v5454_v35 }
 0x1c6   : > { %v1639_v49 = vsel %vm1627_vm2, %v1637_v22, %v7683_v38  ;;  %v1677_v2 = vadd.f32 %v1636_v14, %v1573_v9  ;;  %v6308_v10 = vmul.f32 %v7912_v12, %v5471_v1  ;;  %v1737_v46 = vrot.slane %v1699_v4, 2 }
 0x1c7   : > { %v1679_v53 = vadd.f32 %v1639_v49, %v1575_v31  ;;  %v1738_v0 = vrot.slane %v1700_v24, 2  ;;  %v7915_v42 = vrot.slane %v7914_v28, 2  ;;  %v1740_v33 = vrot.slane %v1701_v52, 2 }
 0x1c8   : > { %7913 = vst [vmem:[#allocation55_spill] sm:$0xff] %v6308_v10  ;;  %v7689_v5 = vrot.slane %v6308_v10, 2  ;;  %v1802_v22 = vmul.f32 %v7916_v45, %v5454_v35  ;;  %v1803_v14 = vmul.f32 %v7916_v45, %v5471_v1  ;;  %v1804_v31 = vmul.f32 %v7916_v45, %v5513_v3 }
 0x1c9   : > { %v1779_v25 = vadd.f32 %v7915_v42, %v1676_v50  ;;  %v1739_v9 = vsel %vm1627_vm2, %v1737_v46, %v1738_v0  ;;  %v1781_v44 = vadd.f32 %v1738_v0, %v1678_v43  ;;  %v6322_v4 = vmul.f32 %v7916_v45, %v7853_v57  ;;  %v7917_v46 = vld [vmem:[#allocation41_spill] sm:$0xff] }
 0x1ca   : > { %v1742_v24 = vsel %vm1627_vm2, %v1740_v33, %v7689_v5  ;;  %v1780_v50 = vadd.f32 %v1739_v9, %v1677_v2  ;;  %v1840_v49 = vrot.slane %v1802_v22, 2  ;;  %v1841_v52 = vrot.slane %v1803_v14, 2 }
 0x1cb   : > { %v1782_v28 = vadd.f32 %v1742_v24, %v1679_v53  ;;  %v1843_v42 = vrot.slane %v1804_v31, 2  ;;  %v7688_v38 = vrot.slane %v6322_v4, 2  ;;  %v7918_v43 = vrot.slane %v7917_v46, 2 }
 0x1cc   : > { %v1842_v37 = vsel %vm1627_vm2, %v1840_v49, %v1841_v52  ;;  %v1884_v12 = vadd.f32 %v1841_v52, %v1781_v44  ;;  %v1905_v45 = vmul.f32 %v5233_v17, %v5513_v3  ;;  %v1906_v10 = vmul.f32 %v5233_v17, %v7853_v57  ;;  %v7920_v44 = vld [vmem:[#allocation43_spill] sm:$0xff] }
 0x1cd   : > { %v1882_v0 = vadd.f32 %v7918_v43, %v1779_v25  ;;  %v1845_v2 = vsel %vm1627_vm2, %v1843_v42, %v7688_v38  ;;  %v1883_v53 = vadd.f32 %v1842_v37, %v1780_v50  ;;  %v1907_v33 = vmul.f32 %v5233_v17, %v7886_v36 }
 0x1ce   : > { %v6342_v25 = vmul.f32 %v5233_v17, %v7887_v13  ;;  %v1885_v22 = vadd.f32 %v1845_v2, %v1782_v28  ;;  %v1943_v14 = vrot.slane %v1905_v45, 2  ;;  %v1944_v9 = vrot.slane %v1906_v10, 2 }
 0x1cf   : > { %v7921_v31 = vrot.slane %v7920_v44, 2  ;;  %v1946_v49 = vrot.slane %v1907_v33, 2  ;;  %v2008_v42 = vmul.f32 %v5236_v18, %v7886_v36  ;;  %v2009_v37 = vmul.f32 %v5236_v18, %v7887_v13 }
 0x1d0   : > { %7919 = vst [vmem:[#allocation14_spill] sm:$0xff] %v6342_v25  ;;  %v7696_v52 = vrot.slane %v6342_v25, 2  ;;  %v1945_v50 = vsel %vm1627_vm2, %v1943_v14, %v1944_v9  ;;  %v1987_v46 = vadd.f32 %v1944_v9, %v1884_v12  ;;  %v2010_v28 = vmul.f32 %v5236_v18, %v7888_v58  ;;  %v7922_v14 = vld [vmem:[#allocation46_spill] sm:$0xff] }
 0x1d1   : > { %v1985_v24 = vadd.f32 %v7921_v31, %v1882_v0  ;;  %v6356_v10 = vmul.f32 %v5236_v18, %v7905_v32  ;;  %v1986_v43 = vadd.f32 %v1945_v50, %v1883_v53  ;;  %v2046_v0 = vrot.slane %v2008_v42, 2  ;;  %v7924_v18 = vld [vmem:[#allocation10_spill] sm:$0xff] }
 0x1d2   : > { %v1948_v45 = vsel %vm1627_vm2, %v1946_v49, %v7696_v52  ;;  %v2047_v2 = vrot.slane %v2009_v37, 2  ;;  %v2049_v44 = vrot.slane %v2010_v28, 2  ;;  %v7923_v12 = vrot.slane %v7922_v14, 2 }
 0x1d3   : > { %v1988_v33 = vadd.f32 %v1948_v45, %v1885_v22  ;;  %v7695_v31 = vrot.slane %v6356_v10, 2  ;;  %v2111_v17 = vmul.f32 %v7924_v18, %v5369_v47  ;;  %v2112_v25 = vmul.f32 %v7924_v18, %v5371_v63 }
 0x1d4   : > { %v2088_v9 = vadd.f32 %v7923_v12, %v1985_v24  ;;  %v2048_v38 = vsel %vm1627_vm2, %v2046_v0, %v2047_v2  ;;  %v2090_v5 = vadd.f32 %v2047_v2, %v1987_v46  ;;  %v2113_v49 = vmul.f32 %v7924_v18, %v5400_v48 }
 0x1d5   : > { %v2051_v53 = vsel %vm1627_vm2, %v2049_v44, %v7695_v31  ;;  %v2089_v22 = vadd.f32 %v2048_v38, %v1986_v43  ;;  %v6376_v24 = vmul.f32 %v7924_v18, %v5416_v7  ;;  %v2150_v37 = vrot.slane %v2111_v17, 3 }
 0x1d6   : > { %v2091_v42 = vadd.f32 %v2051_v53, %v1988_v33  ;;  %v2151_v50 = vrot.slane %v2112_v25, 3  ;;  %v7925_v46 = vrot.slane %v5662_v30, 3  ;;  %v2153_v45 = vrot.slane %v2113_v49, 3 }
 0x1d7   : > { %v7698_v0 = vrot.slane %v6376_v24, 3  ;;  %v2215_v2 = vmul.f32 %v5334_v29, %v5400_v48  ;;  %v2216_v38 = vmul.f32 %v5334_v29, %v5416_v7  ;;  %v2217_v33 = vmul.f32 %v5334_v29, %v5454_v35 }
 0x1d8   : > { %v2192_v28 = vadd.f32 %v7925_v46, %v2088_v9  ;;  %v2152_v43 = vsel %vm2143_vm3, %v2150_v37, %v2151_v50  ;;  %v2194_v44 = vadd.f32 %v2151_v50, %v2090_v5  ;;  %v6390_v17 = vmul.f32 %v5334_v29, %v5471_v1 }
 0x1d9   : > { %v2155_v30 = vsel %vm2143_vm3, %v2153_v45, %v7698_v0  ;;  %v2193_v25 = vadd.f32 %v2152_v43, %v2089_v22  ;;  %v2253_v14 = vrot.slane %v2215_v2, 3  ;;  %v2254_v12 = vrot.slane %v2216_v38, 3 }
 0x1da   : > { %v2195_v9 = vadd.f32 %v2155_v30, %v2091_v42  ;;  %v2256_v53 = vrot.slane %v2217_v33, 3  ;;  %v7697_v49 = vrot.slane %v6390_v17, 3  ;;  %v7926_v5 = vrot.slane %v5964_v51, 3 }
 0x1db   : > { %v2255_v50 = vsel %vm2143_vm3, %v2253_v14, %v2254_v12  ;;  %v2297_v46 = vadd.f32 %v2254_v12, %v2194_v44  ;;  %v2318_v31 = vmul.f32 %v7824_v61, %v5454_v35  ;;  %v2319_v52 = vmul.f32 %v7824_v61, %v5471_v1 }
 0x1dc   : > { %v2295_v37 = vadd.f32 %v7926_v5, %v2192_v28  ;;  %v2258_v22 = vsel %vm2143_vm3, %v2256_v53, %v7697_v49  ;;  %v2296_v42 = vadd.f32 %v2255_v50, %v2193_v25  ;;  %v2320_v45 = vmul.f32 %v7824_v61, %v5513_v3 }
 0x1dd   : > { %v6410_v51 = vmul.f32 %v7824_v61, %v7853_v57  ;;  %v2298_v28 = vadd.f32 %v2258_v22, %v2195_v9  ;;  %v2356_v2 = vrot.slane %v2318_v31, 3  ;;  %v2357_v38 = vrot.slane %v2319_v52, 3 }
 0x1de   : > { %v7927_v43 = vrot.slane %v5975_v39, 3  ;;  %v2359_v33 = vrot.slane %v2320_v45, 3  ;;  %v2421_v14 = vmul.f32 %v7834_v62, %v5513_v3  ;;  %v2422_v25 = vmul.f32 %v7834_v62, %v7853_v57 }
 0x1df   : > { %v7706_v30 = vrot.slane %v6410_v51, 3  ;;  %v2358_v12 = vsel %vm2143_vm3, %v2356_v2, %v2357_v38  ;;  %v2400_v53 = vadd.f32 %v2357_v38, %v2297_v46  ;;  %v2423_v9 = vmul.f32 %v7834_v62, %v7886_v36 }
 0x1e0   : > { %v2398_v44 = vadd.f32 %v7927_v43, %v2295_v37  ;;  %v6424_v52 = vmul.f32 %v7834_v62, %v7887_v13  ;;  %v2399_v31 = vadd.f32 %v2358_v12, %v2296_v42  ;;  %v2459_v5 = vrot.slane %v2421_v14, 3 }
 0x1e1   : > { %v2361_v39 = vsel %vm2143_vm3, %v2359_v33, %v7706_v30  ;;  %v2460_v37 = vrot.slane %v2422_v25, 3  ;;  %v2462_v22 = vrot.slane %v2423_v9, 3  ;;  %v7928_v46 = vrot.slane %v6001_v16, 3 }
 0x1e2   : > { %v2401_v50 = vadd.f32 %v2361_v39, %v2298_v28  ;;  %v7705_v45 = vrot.slane %v6424_v52, 3  ;;  %v2524_v49 = vmul.f32 %v7840_v59, %v7886_v36  ;;  %v2525_v0 = vmul.f32 %v7840_v59, %v7887_v13 }
 0x1e3   : > { %v2501_v2 = vadd.f32 %v7928_v46, %v2398_v44  ;;  %v2461_v38 = vsel %vm2143_vm3, %v2459_v5, %v2460_v37  ;;  %v2503_v43 = vadd.f32 %v2460_v37, %v2400_v53  ;;  %v2526_v33 = vmul.f32 %v7840_v59, %v7888_v58 }
 0x1e4   : > { %v2464_v42 = vsel %vm2143_vm3, %v2462_v22, %v7705_v45  ;;  %v2502_v28 = vadd.f32 %v2461_v38, %v2399_v31  ;;  %v6444_v16 = vmul.f32 %v7840_v59, %v7905_v32  ;;  %v2562_v14 = vrot.slane %v2524_v49, 3 }
 0x1e5   : > { %v2504_v44 = vadd.f32 %v2464_v42, %v2401_v50  ;;  %v2563_v25 = vrot.slane %v2525_v0, 3  ;;  %v7929_v12 = vrot.slane %v6018_v60, 3  ;;  %v2565_v9 = vrot.slane %v2526_v33, 3 }
 0x1e6   : > { %v7702_v39 = vrot.slane %v6444_v16, 3  ;;  %v2627_v5 = vmul.f32 %v7856_v27, %v5369_v47  ;;  %v2628_v31 = vmul.f32 %v7856_v27, %v5371_v63  ;;  %v2629_v50 = vmul.f32 %v7856_v27, %v5400_v48 }
 0x1e7   : > { %v2604_v53 = vadd.f32 %v7929_v12, %v2501_v2  ;;  %v2564_v37 = vsel %vm2143_vm3, %v2562_v14, %v2563_v25  ;;  %v2606_v22 = vadd.f32 %v2563_v25, %v2503_v43  ;;  %v6458_v0 = vmul.f32 %v7856_v27, %v5416_v7 }
 0x1e8   : > { %v2567_v60 = vsel %vm2143_vm3, %v2565_v9, %v7702_v39  ;;  %v2605_v49 = vadd.f32 %v2564_v37, %v2502_v28  ;;  %v2666_v46 = vrot.slane %v2627_v5, 4  ;;  %v2667_v47 = vrot.slane %v2628_v31, 4 }
 0x1e9   : > { %v2607_v2 = vadd.f32 %v2567_v60, %v2504_v44  ;;  %v2669_v38 = vrot.slane %v2629_v50, 4  ;;  %v7699_v63 = vrot.slane %v6458_v0, 4  ;;  %v7930_v43 = vrot.slane %v6031_v6, 4 }
 0x1ea   : > { %v2668_v33 = vsel %vm2659_vm4, %v2666_v46, %v2667_v47  ;;  %v2710_v14 = vadd.f32 %v2667_v47, %v2606_v22  ;;  %v2731_v25 = vmul.f32 %v7859_v56, %v5400_v48  ;;  %v2732_v12 = vmul.f32 %v7859_v56, %v5416_v7 }
 0x1eb   : > { %v2708_v42 = vadd.f32 %v7930_v43, %v2604_v53  ;;  %v2671_v28 = vsel %vm2659_vm4, %v2669_v38, %v7699_v63  ;;  %v2709_v44 = vadd.f32 %v2668_v33, %v2605_v49  ;;  %v2733_v9 = vmul.f32 %v7859_v56, %v5454_v35 }
 0x1ec   : > { %v6478_v6 = vmul.f32 %v7859_v56, %v5471_v1  ;;  %v2711_v53 = vadd.f32 %v2671_v28, %v2607_v2  ;;  %v2769_v5 = vrot.slane %v2731_v25, 4  ;;  %v2770_v31 = vrot.slane %v2732_v12, 4 }
 0x1ed   : > { %v7931_v48 = vrot.slane %v6060_v41, 4  ;;  %v2772_v22 = vrot.slane %v2733_v9, 4  ;;  %v2834_v60 = vmul.f32 %v7870_v55, %v5454_v35  ;;  %v2835_v49 = vmul.f32 %v7870_v55, %v5471_v1 }
 0x1ee   : > { %v7701_v50 = vrot.slane %v6478_v6, 4  ;;  %v2771_v46 = vsel %vm2659_vm4, %v2769_v5, %v2770_v31  ;;  %v2813_v47 = vadd.f32 %v2770_v31, %v2710_v14  ;;  %v2836_v2 = vmul.f32 %v7870_v55, %v5513_v3 }
 0x1ef   : > { %v2811_v37 = vadd.f32 %v7931_v48, %v2708_v42  ;;  %v6492_v38 = vmul.f32 %v7870_v55, %v7853_v57  ;;  %v2812_v43 = vadd.f32 %v2771_v46, %v2709_v44  ;;  %v2872_v42 = vrot.slane %v2834_v60, 4 }
 0x1f0   : > { %v2774_v41 = vsel %vm2659_vm4, %v2772_v22, %v7701_v50  ;;  %v2873_v33 = vrot.slane %v2835_v49, 4  ;;  %v2875_v12 = vrot.slane %v2836_v2, 4  ;;  %v7932_v14 = vrot.slane %v6083_v26, 4 }
 0x1f1   : > { %v2814_v25 = vadd.f32 %v2774_v41, %v2711_v53  ;;  %v7700_v28 = vrot.slane %v6492_v38, 4  ;;  %v2937_v48 = vmul.f32 %v7878_v21, %v5513_v3  ;;  %v2938_v63 = vmul.f32 %v7878_v21, %v7853_v57 }
 0x1f2   : > { %v2914_v9 = vadd.f32 %v7932_v14, %v2811_v37  ;;  %v2874_v5 = vsel %vm2659_vm4, %v2872_v42, %v2873_v33  ;;  %v2916_v31 = vadd.f32 %v2873_v33, %v2813_v47  ;;  %v2939_v22 = vmul.f32 %v7878_v21, %v7886_v36 }
 0x1f3   : > { %v2877_v44 = vsel %vm2659_vm4, %v2875_v12, %v7700_v28  ;;  %v2915_v53 = vadd.f32 %v2874_v5, %v2812_v43  ;;  %v6512_v26 = vmul.f32 %v7878_v21, %v7887_v13  ;;  %v2975_v60 = vrot.slane %v2937_v48, 4  ;;  %v7937_v28 = vld [vmem:[#allocation21_spill] sm:$0xff] }
 0x1f4   : > { %v2917_v37 = vadd.f32 %v2877_v44, %v2814_v25  ;;  %v2976_v49 = vrot.slane %v2938_v63, 4  ;;  %v7934_v46 = vrot.slane %v6106_v23, 4  ;;  %v2978_v2 = vrot.slane %v2939_v22, 4 }
 0x1f5   : > { %7933 = vst [vmem:[#allocation63_spill] sm:$0xff] %v6512_v26  ;;  %v7704_v41 = vrot.slane %v6512_v26, 4  ;;  %v3040_v42 = vmul.f32 %v7841_v40, %v7886_v36  ;;  %v3041_v43 = vmul.f32 %v7841_v40, %v7887_v13  ;;  %v3042_v25 = vmul.f32 %v7841_v40, %v7888_v58 }
 0x1f6   : > { %v3017_v47 = vadd.f32 %v7934_v46, %v2914_v9  ;;  %v2977_v33 = vsel %vm2659_vm4, %v2975_v60, %v2976_v49  ;;  %v3019_v12 = vadd.f32 %v2976_v49, %v2916_v31  ;;  %v6526_v63 = vmul.f32 %v7841_v40, %v7905_v32 }
 0x1f7   : > { %v2980_v23 = vsel %vm2659_vm4, %v2978_v2, %v7704_v41  ;;  %v3018_v14 = vadd.f32 %v2977_v33, %v2915_v53  ;;  %v3078_v9 = vrot.slane %v3040_v42, 4  ;;  %v3079_v5 = vrot.slane %v3041_v43, 4 }
 0x1f8   : > { %7935 = vst [vmem:[#allocation20_spill] sm:$0xff] %v6526_v63  ;;  %v3020_v48 = vadd.f32 %v2980_v23, %v2917_v37  ;;  %v3081_v44 = vrot.slane %v3042_v25, 4  ;;  %v7703_v22 = vrot.slane %v6526_v63, 4  ;;  %v7936_v31 = vrot.slane %v6118_v20, 4 }
 0x1f9   : > { %v3080_v49 = vsel %vm2659_vm4, %v3078_v9, %v3079_v5  ;;  %v3122_v46 = vadd.f32 %v3079_v5, %v3019_v12  ;;  %v882_v50 = vmul.f32 %v7937_v28, %v5416_v7  ;;  %v883_v39 = vmul.f32 %v7937_v28, %v5454_v35  ;;  %v7938_v7 = vld [vmem:[#allocation17_spill] sm:$0xff] }
 0x1fa   : > { %v3120_v60 = vadd.f32 %v7936_v31, %v3017_v47  ;;  %v3083_v53 = vsel %vm2659_vm4, %v3081_v44, %v7703_v22  ;;  %v3121_v37 = vadd.f32 %v3080_v49, %v3018_v14  ;;  %v884_v20 = vmul.f32 %v7937_v28, %v5471_v1 }
 0x1fb   : > { %v3123_v47 = vadd.f32 %v3083_v53, %v3020_v48  ;;  %v3334_v42 = vrot.slane %v3122_v46, %v7882_v11  ;;  %v885_v43 = vmul.f32 %v7937_v28, %v5513_v3  ;;  %v922_v33 = vmul.f32 %v7938_v7, %v5471_v1 }
 0x1fc   : > { %v3271_v2 = vrot.slane %v3120_v60, %v7882_v11  ;;  %v3279_v25 = vcombine.high %v3121_v37, %v3121_v37  ;;  %v3286_v23 = vrot.slane %v3121_v37, %v7882_v11  ;;  %v923_v14 = vmul.f32 %v7938_v7, %v5513_v3 }
 0x1fd   : > { %v3341_v9 = vrot.slane %v3334_v42, %v7882_v11  ;;  %v3342_v5 = vcombine.high %v3123_v47, %v3123_v47  ;;  %v3349_v48 = vrot.slane %v3123_v47, %v7882_v11  ;;  %v924_v44 = vmul.f32 %v7938_v7, %v7853_v57 }
 0x1fe   : > { %v3278_v12 = vrot.slane %v3271_v2, %v7882_v11  ;;  %v3293_v31 = vrot.slane %v3279_v25, %v7882_v11  ;;  %v3294_v60 = vcombine.high %v3286_v23, %v3286_v23  ;;  %v3302_v49 = vrot.slane %v3286_v23, %v7882_v11 }
 0x1ff   : > { %v7939_v46 = vcombine.high %v6163_v8, %v6163_v8  ;;  %v6564_v37 = vrot.slane %v3342_v5, %v7882_v11  ;;  %v3357_v2 = vcombine.high %v3349_v48, %v3349_v48  ;;  %v3365_v42 = vrot.slane %v3349_v48, %v7882_v11 }
 0x200   : > { %v925_v47 = vmul.f32 %v7938_v7, %v7886_v36  ;;  %v3295_v22 = vcombine.high %v3293_v31, %v3293_v31  ;;  %v3309_v41 = vrot.slane %v3293_v31, %v7882_v11  ;;  %v3316_v25 = vrot.slane %v3294_v60, %v7882_v11 }
 0x201   : > { %v3818_v53 = vcombine.low %v7939_v46, %v3278_v12  ;;  %7940 = vst [vmem:[#allocation60_spill] sm:$0xff] %v6564_v37  ;;  %v6574_v8 = vrot.slane %v6564_v37, %v7882_v11  ;;  %v3379_v12 = vrot.slane %v3357_v2, %v7882_v11  ;;  %v3387_v5 = vcombine.high %v3365_v42, %v3365_v42 }
 0x202   : > { %v3868_v46 = vcombine.low %v3341_v9, %v3365_v42  ;;  %v3323_v48 = vrot.slane %v3295_v22, %v7882_v11  ;;  %v3819_v45 = vcombine.low %v3302_v49, %v3316_v25  ;;  %v4709_v30 = vcombine.high %v3302_v49, %v3316_v25 }
 0x203   : > { %v3828_v23 = vrot.slane %v3818_v53, %v7882_v11  ;;  %v940_v7 = vadd.f32 %v922_v33, %v882_v50  ;;  %v3389_v28 = vcombine.high %v3379_v12, %v3379_v12  ;;  %v3869_v63 = vcombine.low %v3379_v12, %v3387_v5 }
 0x204   : > { %v3884_v31 = vrot.slane %v3868_v46, %v7882_v11  ;;  %v941_v60 = vadd.f32 %v923_v14, %v883_v39  ;;  %v3821_v40 = vcombine.low %v3309_v41, %v3323_v48  ;;  %v3835_v53 = vrot.slane %v3819_v45, %v7882_v11 }
 0x205   : > { %v3842_v37 = vrot.slane %v4709_v30, %v7882_v11  ;;  %v4710_v26 = vcombine.high %v3309_v41, %v3323_v48  ;;  %v3870_v2 = vcombine.low %v3389_v28, %v6574_v8  ;;  %v3891_v9 = vrot.slane %v3869_v63, %v7882_v11 }
 0x206   : > { %v942_v42 = vadd.f32 %v924_v44, %v884_v20  ;;  %v943_v22 = vadd.f32 %v925_v47, %v885_v43  ;;  %v3849_v49 = vrot.slane %v3821_v40, %v7882_v11  ;;  %v3850_v50 = vcombine.low %v3828_v23, %v3835_v53 }
 0x207   : > { %v3877_v33 = vrot.slane %v4710_v26, %v7882_v11  ;;  %v962_v39 = vmul.f32 %v7884_v54, %v7853_v57  ;;  %v3898_v14 = vrot.slane %v3870_v2, %v7882_v11  ;;  %v963_v30 = vmul.f32 %v7884_v54, %v7886_v36 }
 0x208   : > { %v964_v45 = vmul.f32 %v7884_v54, %v7887_v13  ;;  %v965_v28 = vmul.f32 %v7884_v54, %v7888_v58  ;;  %v3851_v41 = vcombine.low %v3842_v37, %v3849_v49  ;;  %v3858_v40 = vrot.slane %v3850_v50, %v7882_v11  ;;  %v7942_v50 = vld [vmem:[#allocation48_spill] sm:$0xff] }
 0x209   : > { %v3899_v63 = vcombine.low %v3877_v33, %v3884_v31  ;;  %v980_v20 = vadd.f32 %v962_v39, %v940_v7  ;;  %v3900_v26 = vcombine.low %v3891_v9, %v3898_v14  ;;  %v981_v43 = vadd.f32 %v963_v30, %v941_v60  ;;  %v7941_v7 = vld [vmem:[#allocation47_spill] sm:$0xff] }
 0x20a   : > { %v982_v44 = vadd.f32 %v964_v45, %v942_v42  ;;  %v983_v47 = vadd.f32 %v965_v28, %v943_v22  ;;  %v3865_v25 = vrot.slane %v3851_v41, %v7882_v11  ;;  %v1002_v12 = vmul.f32 %v7885_v19, %v7887_v13  ;;  %v7943_v39 = vld [vmem:[#allocation51_spill] sm:$0xff] }
 0x20b   : > { %v3907_v23 = vrot.slane %v3899_v63, %v7882_v11  ;;  %v1003_v5 = vmul.f32 %v7885_v19, %v7888_v58  ;;  %v3914_v37 = vrot.slane %v3900_v26, %v7882_v11  ;;  %v1004_v46 = vmul.f32 %v7885_v19, %v7905_v32  ;;  %v7944_v28 = vld [vmem:[#allocation7_spill] sm:$0xff] }
 0x20c   : > { %v1005_v48 = vmul.f32 %v7885_v19, %v7941_v7  ;;  %v1042_v31 = vmul.f32 %v7828_v15, %v7905_v32  ;;  %v3866_v60 = vcombine.low %v3858_v40, %v3865_v25  ;;  %v1020_v53 = vadd.f32 %v1002_v12, %v980_v20  ;;  %v7946_v25 = vld [vmem:[#allocation53_spill] sm:$0xff] }
 0x20d   : > { %v1021_v2 = vadd.f32 %v1003_v5, %v981_v43  ;;  %v1043_v9 = vmul.f32 %v7828_v15, %v7941_v7  ;;  %v3915_v42 = vcombine.low %v3907_v23, %v3914_v37  ;;  %v1022_v22 = vadd.f32 %v1004_v46, %v982_v44  ;;  %v7948_v46 = vld [vmem:[#allocation18_spill] sm:$0xff] }
 0x20e   : > { %v1023_v49 = vadd.f32 %v1005_v48, %v983_v47  ;;  %v1044_v33 = vmul.f32 %v7828_v15, %v7942_v50  ;;  %v1045_v14 = vmul.f32 %v7828_v15, %v7943_v39  ;;  %v1060_v30 = vadd.f32 %v1042_v31, %v1020_v53 }
 0x20f   : > { %v1061_v45 = vadd.f32 %v1043_v9, %v1021_v2  ;;  %v1083_v41 = vmul.f32 %v7944_v28, %v5454_v35  ;;  %v4236_v40 = vpack.c.bf16 %v3915_v42, %v3866_v60  ;;  %v1084_v20 = vmul.f32 %v7944_v28, %v5471_v1  ;;  %v7950_v9 = vld [vmem:[#allocation11_spill] sm:$0xff] }
 0x210   : > { %v1062_v63 = vadd.f32 %v1044_v33, %v1022_v22  ;;  %v1085_v26 = vmul.f32 %v7944_v28, %v5513_v3  ;;  %v1063_v43 = vadd.f32 %v1045_v14, %v1023_v49  ;;  %v6622_v44 = vmul.f32 %v7944_v28, %v7853_v57 }
 0x211   : > { %v1124_v47 = vrot.slane %v1083_v41, 1  ;;  %v7947_v23 = vrot.slane %v7946_v25, 1  ;;  %4903 = vmatmul.mubr.bf16.vlgmr.msra.gmra.mrb[4].mxu0 %v4236_v40  ;;  %v1125_v5 = vrot.slane %v1084_v20, 1  ;;  %v1187_v48 = vmul.f32 %v7948_v46, %v5513_v3 }
 0x212   : > { %7945 = vst [vmem:[#allocation30_spill] sm:$0xff] %v6622_v44  ;;  %v1127_v37 = vrot.slane %v1085_v26, 1  ;;  %v1188_v31 = vmul.f32 %v7948_v46, %v7853_v57  ;;  %v7715_v60 = vrot.slane %v6622_v44, 1  ;;  %v1189_v53 = vmul.f32 %v7948_v46, %v7886_v36 }
 0x213   : > { %v1164_v12 = vadd.f32 %v7947_v23, %v1060_v30  ;;  %v6635_v2 = vmul.f32 %v7948_v46, %v7887_v13  ;;  %v7951_v42 = vrot.slane %v7950_v9, 1  ;;  %v1126_v49 = vsel %vm1111_vm1, %v1124_v47, %v1125_v5  ;;  %v7952_v9 = vld [vmem:[#allocation26_spill] sm:$0xff] }
 0x214   : > { %v1166_v33 = vadd.f32 %v1125_v5, %v1062_v63  ;;  %v1227_v14 = vrot.slane %v1187_v48, 1  ;;  %v1228_v30 = vrot.slane %v1188_v31, 1  ;;  %v1129_v41 = vsel %vm1111_vm1, %v1127_v37, %v7715_v60  ;;  %v7954_v31 = vld [vmem:[#allocation49_spill] sm:$0xff] }
 0x215   : > { %7949 = vst [vmem:[#allocation54_spill] sm:$0xff] %v6635_v2  ;;  %v1267_v22 = vadd.f32 %v7951_v42, %v1164_v12  ;;  %v1165_v40 = vadd.f32 %v1126_v49, %v1061_v45  ;;  %v1230_v20 = vrot.slane %v1189_v53, 1  ;;  %v7714_v26 = vrot.slane %v6635_v2, 1 }
 0x216   : > { %v1167_v25 = vadd.f32 %v1129_v41, %v1063_v43  ;;  %v1229_v23 = vsel %vm1111_vm1, %v1227_v14, %v1228_v30  ;;  %v1269_v46 = vadd.f32 %v1228_v30, %v1166_v33  ;;  %v1290_v12 = vmul.f32 %v7952_v9, %v7886_v36  ;;  %v7956_v14 = vld [vmem:[#allocation22_spill] sm:$0xff] }
 0x217   : > { %v1232_v63 = vsel %vm1111_vm1, %v1230_v20, %v7714_v26  ;;  %v1268_v47 = vadd.f32 %v1229_v23, %v1165_v40  ;;  %v1291_v5 = vmul.f32 %v7952_v9, %v7887_v13  ;;  %v1292_v45 = vmul.f32 %v7952_v9, %v7888_v58  ;;  %v7958_v23 = vld [vmem:[#allocation29_spill] sm:$0xff] }
 0x218   : > { %v1270_v37 = vadd.f32 %v1232_v63, %v1167_v25  ;;  %v6656_v43 = vmul.f32 %v7952_v9, %v7905_v32  ;;  %v1330_v48 = vrot.slane %v1290_v12, 1  ;;  %v7955_v53 = vrot.slane %v7954_v31, 1 }
 0x219   : > { %v1331_v49 = vrot.slane %v1291_v5, 1  ;;  %v1333_v33 = vrot.slane %v1292_v45, 1  ;;  %v1393_v30 = vmul.f32 %v7956_v14, %v7888_v58  ;;  %v1394_v41 = vmul.f32 %v7956_v14, %v7905_v32 }
 0x21a   : > { %7953 = vst [vmem:[#allocation57_spill] sm:$0xff] %v6656_v43  ;;  %v1370_v42 = vadd.f32 %v7955_v53, %v1267_v22  ;;  %v7721_v40 = vrot.slane %v6656_v43, 1  ;;  %v1395_v20 = vmul.f32 %v7956_v14, %v7941_v7  ;;  %v6669_v25 = vmul.f32 %v7956_v14, %v7942_v50 }
 0x21b   : > { %v7959_v12 = vrot.slane %v7958_v23, 1  ;;  %v1332_v63 = vsel %vm1111_vm1, %v1330_v48, %v1331_v49  ;;  %v1372_v5 = vadd.f32 %v1331_v49, %v1269_v46  ;;  %v1433_v45 = vrot.slane %v1393_v30, 1  ;;  %v7960_v23 = vld [vmem:[#allocation4_spill] sm:$0xff] }
 0x21c   : > { %7957 = vst [vmem:[#allocation15_spill] sm:$0xff] %v6669_v25  ;;  %v1434_v31 = vrot.slane %v1394_v41, 1  ;;  %v1335_v53 = vsel %vm1111_vm1, %v1333_v33, %v7721_v40  ;;  %v1371_v26 = vadd.f32 %v1332_v63, %v1268_v47  ;;  %v1436_v60 = vrot.slane %v1395_v20, 1  ;;  %v7961_v30 = vld [vmem:[#allocation52_spill] sm:$0xff]  ;;  %v7962_v20 = vld [vmem:[#allocation59_spill] sm:$0xff] }
 0x21d   : > { %v1473_v22 = vadd.f32 %v7959_v12, %v1370_v42  ;;  %v7720_v2 = vrot.slane %v6669_v25, 1  ;;  %v1373_v9 = vadd.f32 %v1335_v53, %v1270_v37  ;;  %v1496_v42 = vmul.f32 %v7960_v23, %v7941_v7 }
 0x21e   : > { %v1435_v14 = vsel %vm1111_vm1, %v1433_v45, %v1434_v31  ;;  %v1475_v44 = vadd.f32 %v1434_v31, %v1372_v5  ;;  %v1497_v49 = vmul.f32 %v7960_v23, %v7942_v50  ;;  %v1498_v47 = vmul.f32 %v7960_v23, %v7943_v39 }
 0x21f   : > { %v1438_v46 = vsel %vm1111_vm1, %v1436_v60, %v7720_v2  ;;  %v1474_v48 = vadd.f32 %v1435_v14, %v1371_v26  ;;  %v6690_v37 = vmul.f32 %v7960_v23, %v7961_v30  ;;  %v1536_v41 = vrot.slane %v1496_v42, 1  ;;  %v7964_v60 = vld [vmem:[#allocation8_spill] sm:$0xff] }
 0x220   : > { %v1476_v33 = vadd.f32 %v1438_v46, %v1373_v9  ;;  %v7963_v12 = vrot.slane %v7962_v20, 1  ;;  %v1537_v5 = vrot.slane %v1497_v49, 1  ;;  %v1539_v45 = vrot.slane %v1498_v47, 1 }
 0x221   : > { %v1599_v26 = vmul.f32 %v7964_v60, %v5454_v35  ;;  %v1600_v14 = vmul.f32 %v7964_v60, %v5471_v1  ;;  %v7727_v31 = vrot.slane %v6690_v37, 1  ;;  %v1601_v9 = vmul.f32 %v7964_v60, %v5513_v3 }
 0x222   : > { %v1576_v63 = vadd.f32 %v7963_v12, %v1473_v22  ;;  %v6703_v53 = vmul.f32 %v7964_v60, %v7853_v57  ;;  %v7966_v42 = vrot.slane %v6288_v34, 2  ;;  %v1538_v46 = vsel %vm1111_vm1, %v1536_v41, %v1537_v5  ;;  %v7967_v34 = vld [vmem:[#allocation19_spill] sm:$0xff] }
 0x223   : > { %v1578_v49 = vadd.f32 %v1537_v5, %v1475_v44  ;;  %v1640_v47 = vrot.slane %v1599_v26, 2  ;;  %v1641_v20 = vrot.slane %v1600_v14, 2  ;;  %v1541_v12 = vsel %vm1111_vm1, %v1539_v45, %v7727_v31  ;;  %v7968_v14 = vld [vmem:[#allocation55_spill] sm:$0xff] }
 0x224   : > { %7965 = vst [vmem:[#allocation2_spill] sm:$0xff] %v6703_v53  ;;  %v1680_v22 = vadd.f32 %v7966_v42, %v1576_v63  ;;  %v1577_v2 = vadd.f32 %v1538_v46, %v1474_v48  ;;  %v1643_v40 = vrot.slane %v1601_v9, 2  ;;  %v7726_v23 = vrot.slane %v6703_v53, 2 }
 0x225   : > { %v1579_v25 = vadd.f32 %v1541_v12, %v1476_v33  ;;  %v1642_v60 = vsel %vm1627_vm2, %v1640_v47, %v1641_v20  ;;  %v1682_v43 = vadd.f32 %v1641_v20, %v1578_v49  ;;  %v1703_v63 = vmul.f32 %v7967_v34, %v5513_v3 }
 0x226   : > { %v1645_v44 = vsel %vm1627_vm2, %v1643_v40, %v7726_v23  ;;  %v1681_v41 = vadd.f32 %v1642_v60, %v1577_v2  ;;  %v1704_v5 = vmul.f32 %v7967_v34, %v7853_v57  ;;  %v1705_v48 = vmul.f32 %v7967_v34, %v7886_v36  ;;  %v7970_v40 = vld [vmem:[#allocation27_spill] sm:$0xff] }
 0x227   : > { %v1683_v45 = vadd.f32 %v1645_v44, %v1579_v25  ;;  %v6724_v33 = vmul.f32 %v7967_v34, %v7887_v13  ;;  %v1743_v26 = vrot.slane %v1703_v63, 2  ;;  %v7969_v9 = vrot.slane %v7968_v14, 2 }
 0x228   : > { %v1744_v46 = vrot.slane %v1704_v5, 2  ;;  %v1746_v49 = vrot.slane %v1705_v48, 2  ;;  %v1806_v2 = vmul.f32 %v7970_v40, %v7886_v36  ;;  %v1807_v60 = vmul.f32 %v7970_v40, %v7887_v13 }
 0x229   : > { %v1783_v42 = vadd.f32 %v7969_v9, %v1680_v22  ;;  %v7732_v47 = vrot.slane %v6724_v33, 2  ;;  %v1808_v25 = vmul.f32 %v7970_v40, %v7888_v58  ;;  %v6737_v20 = vmul.f32 %v7970_v40, %v7905_v32 }
 0x22a   : > { %v7972_v12 = vrot.slane %v6322_v4, 2  ;;  %v1745_v63 = vsel %vm1627_vm2, %v1743_v26, %v1744_v46  ;;  %v1785_v44 = vadd.f32 %v1744_v46, %v1682_v43  ;;  %v1846_v5 = vrot.slane %v1806_v2, 2  ;;  %v7973_v4 = vld [vmem:[#allocation5_spill] sm:$0xff] }
 0x22b   : > { %7971 = vst [vmem:[#allocation32_spill] sm:$0xff] %v6737_v20  ;;  %v1847_v48 = vrot.slane %v1807_v60, 2  ;;  %v1748_v14 = vsel %vm1627_vm2, %v1746_v49, %v7732_v47  ;;  %v1784_v9 = vadd.f32 %v1745_v63, %v1681_v41  ;;  %v1849_v23 = vrot.slane %v1808_v25, 2  ;;  %v7974_v60 = vld [vmem:[#allocation14_spill] sm:$0xff] }
 0x22c   : > { %v1886_v22 = vadd.f32 %v7972_v12, %v1783_v42  ;;  %v7731_v31 = vrot.slane %v6737_v20, 2  ;;  %v1786_v34 = vadd.f32 %v1748_v14, %v1683_v45  ;;  %v1909_v42 = vmul.f32 %v7973_v4, %v7888_v58 }
 0x22d   : > { %v1848_v40 = vsel %vm1627_vm2, %v1846_v5, %v1847_v48  ;;  %v1888_v53 = vadd.f32 %v1847_v48, %v1785_v44  ;;  %v1910_v46 = vmul.f32 %v7973_v4, %v7905_v32  ;;  %v1911_v41 = vmul.f32 %v7973_v4, %v7941_v7 }
 0x22e   : > { %v1851_v43 = vsel %vm1627_vm2, %v1849_v23, %v7731_v31  ;;  %v1887_v26 = vadd.f32 %v1848_v40, %v1784_v9  ;;  %v6758_v45 = vmul.f32 %v7973_v4, %v7942_v50  ;;  %v1949_v2 = vrot.slane %v1909_v42, 2  ;;  %v7976_v23 = vld [vmem:[#allocation6_spill] sm:$0xff] }
 0x22f   : > { %v1889_v49 = vadd.f32 %v1851_v43, %v1786_v34  ;;  %v7975_v25 = vrot.slane %v7974_v60, 2  ;;  %v1950_v63 = vrot.slane %v1910_v46, 2  ;;  %v1952_v44 = vrot.slane %v1911_v41, 2 }
 0x230   : > { %v2012_v40 = vmul.f32 %v7976_v23, %v7941_v7  ;;  %v2013_v5 = vmul.f32 %v7976_v23, %v7942_v50  ;;  %v7737_v48 = vrot.slane %v6758_v45, 2  ;;  %v2014_v34 = vmul.f32 %v7976_v23, %v7943_v39 }
 0x231   : > { %v1989_v12 = vadd.f32 %v7975_v25, %v1886_v22  ;;  %v6771_v14 = vmul.f32 %v7976_v23, %v7961_v30  ;;  %v7977_v9 = vrot.slane %v6356_v10, 2  ;;  %v1951_v42 = vsel %vm1627_vm2, %v1949_v2, %v1950_v63 }
 0x232   : > { %v1991_v43 = vadd.f32 %v1950_v63, %v1888_v53  ;;  %v2052_v46 = vrot.slane %v2012_v40, 2  ;;  %v2053_v41 = vrot.slane %v2013_v5, 2  ;;  %v1954_v60 = vsel %vm1627_vm2, %v1952_v44, %v7737_v48 }
 0x233   : > { %v2092_v22 = vadd.f32 %v7977_v9, %v1989_v12  ;;  %v1990_v25 = vadd.f32 %v1951_v42, %v1887_v26  ;;  %v2055_v31 = vrot.slane %v2014_v34, 2  ;;  %v7736_v47 = vrot.slane %v6771_v14, 2 }
 0x234   : > { %v1992_v4 = vadd.f32 %v1954_v60, %v1889_v49  ;;  %v2054_v23 = vsel %vm1627_vm2, %v2052_v46, %v2053_v41  ;;  %v2094_v20 = vadd.f32 %v2053_v41, %v1991_v43  ;;  %v2115_v10 = vmul.f32 %v7924_v18, %v5454_v35 }
 0x235   : > { %v2057_v53 = vsel %vm1627_vm2, %v2055_v31, %v7736_v47  ;;  %v2093_v2 = vadd.f32 %v2054_v23, %v1990_v25  ;;  %v2116_v12 = vmul.f32 %v7924_v18, %v5471_v1  ;;  %v2117_v26 = vmul.f32 %v7924_v18, %v5513_v3 }
 0x236   : > { %v2095_v63 = vadd.f32 %v2057_v53, %v1992_v4  ;;  %v6792_v49 = vmul.f32 %v7924_v18, %v7853_v57  ;;  %v2156_v44 = vrot.slane %v2115_v10, 3  ;;  %v7978_v40 = vrot.slane %v6376_v24, 3 }
 0x237   : > { %v2157_v34 = vrot.slane %v2116_v12, 3  ;;  %v2159_v9 = vrot.slane %v2117_v26, 3  ;;  %v2219_v31 = vmul.f32 %v5334_v29, %v5513_v3  ;;  %v2220_v23 = vmul.f32 %v5334_v29, %v7853_v57 }
 0x238   : > { %v2196_v5 = vadd.f32 %v7978_v40, %v2092_v22  ;;  %v7739_v42 = vrot.slane %v6792_v49, 3  ;;  %v2221_v4 = vmul.f32 %v5334_v29, %v7886_v36  ;;  %v6805_v43 = vmul.f32 %v5334_v29, %v7887_v13 }
 0x239   : > { %v7979_v24 = vrot.slane %v6390_v17, 3  ;;  %v2158_v46 = vsel %vm2143_vm3, %v2156_v44, %v2157_v34  ;;  %v2198_v41 = vadd.f32 %v2157_v34, %v2094_v20  ;;  %v2259_v60 = vrot.slane %v2219_v31, 3 }
 0x23a   : > { %v2260_v25 = vrot.slane %v2220_v23, 3  ;;  %v2161_v10 = vsel %vm2143_vm3, %v2159_v9, %v7739_v42  ;;  %v2197_v53 = vadd.f32 %v2158_v46, %v2093_v2  ;;  %v2262_v12 = vrot.slane %v2221_v4, 3 }
 0x23b   : > { %v2299_v22 = vadd.f32 %v7979_v24, %v2196_v5  ;;  %v7738_v26 = vrot.slane %v6805_v43, 3  ;;  %v2199_v40 = vadd.f32 %v2161_v10, %v2095_v63  ;;  %v2322_v17 = vmul.f32 %v7824_v61, %v7886_v36 }
 0x23c   : > { %v2261_v47 = vsel %vm2143_vm3, %v2259_v60, %v2260_v25  ;;  %v2301_v48 = vadd.f32 %v2260_v25, %v2198_v41  ;;  %v2323_v5 = vmul.f32 %v7824_v61, %v7887_v13  ;;  %v2324_v2 = vmul.f32 %v7824_v61, %v7888_v58 }
 0x23d   : > { %v2264_v20 = vsel %vm2143_vm3, %v2262_v12, %v7738_v26  ;;  %v2300_v44 = vadd.f32 %v2261_v47, %v2197_v53  ;;  %v6826_v63 = vmul.f32 %v7824_v61, %v7905_v32  ;;  %v2362_v9 = vrot.slane %v2322_v17, 3 }
 0x23e   : > { %v2302_v34 = vadd.f32 %v2264_v20, %v2199_v40  ;;  %v7980_v31 = vrot.slane %v6410_v51, 3  ;;  %v2363_v4 = vrot.slane %v2323_v5, 3  ;;  %v2365_v24 = vrot.slane %v2324_v2, 3 }
 0x23f   : > { %v2425_v47 = vmul.f32 %v7834_v62, %v7888_v58  ;;  %v2426_v46 = vmul.f32 %v7834_v62, %v7905_v32  ;;  %v7745_v41 = vrot.slane %v6826_v63, 3  ;;  %v2427_v60 = vmul.f32 %v7834_v62, %v7941_v7 }
 0x240   : > { %v2402_v23 = vadd.f32 %v7980_v31, %v2299_v22  ;;  %v6839_v25 = vmul.f32 %v7834_v62, %v7942_v50  ;;  %v7981_v51 = vrot.slane %v6424_v52, 3  ;;  %v2364_v10 = vsel %vm2143_vm3, %v2362_v9, %v2363_v4 }
 0x241   : > { %v2404_v53 = vadd.f32 %v2363_v4, %v2301_v48  ;;  %v2465_v12 = vrot.slane %v2425_v47, 3  ;;  %v2466_v40 = vrot.slane %v2426_v46, 3  ;;  %v2367_v17 = vsel %vm2143_vm3, %v2365_v24, %v7745_v41 }
 0x242   : > { %v2505_v22 = vadd.f32 %v7981_v51, %v2402_v23  ;;  %v2403_v20 = vadd.f32 %v2364_v10, %v2300_v44  ;;  %v2468_v5 = vrot.slane %v2427_v60, 3  ;;  %v7744_v2 = vrot.slane %v6839_v25, 3 }
 0x243   : > { %v2405_v31 = vadd.f32 %v2367_v17, %v2302_v34  ;;  %v2467_v26 = vsel %vm2143_vm3, %v2465_v12, %v2466_v40  ;;  %v2507_v42 = vadd.f32 %v2466_v40, %v2404_v53  ;;  %v2528_v52 = vmul.f32 %v7840_v59, %v7941_v7 }
 0x244   : > { %v2470_v48 = vsel %vm2143_vm3, %v2468_v5, %v7744_v2  ;;  %v2506_v9 = vadd.f32 %v2467_v26, %v2403_v20  ;;  %v2529_v23 = vmul.f32 %v7840_v59, %v7942_v50  ;;  %v2530_v44 = vmul.f32 %v7840_v59, %v7943_v39 }
 0x245   : > { %v2508_v4 = vadd.f32 %v2470_v48, %v2405_v31  ;;  %v6860_v34 = vmul.f32 %v7840_v59, %v7961_v30  ;;  %v2568_v24 = vrot.slane %v2528_v52, 3  ;;  %v7982_v47 = vrot.slane %v6444_v16, 3 }
 0x246   : > { %v2569_v60 = vrot.slane %v2529_v23, 3  ;;  %v2571_v51 = vrot.slane %v2530_v44, 3  ;;  %v2631_v26 = vmul.f32 %v7856_v27, %v5454_v35  ;;  %v2632_v10 = vmul.f32 %v7856_v27, %v5471_v1 }
 0x247   : > { %v2608_v46 = vadd.f32 %v7982_v47, %v2505_v22  ;;  %v7743_v53 = vrot.slane %v6860_v34, 3  ;;  %v2633_v12 = vmul.f32 %v7856_v27, %v5513_v3  ;;  %v6873_v40 = vmul.f32 %v7856_v27, %v7853_v57 }
 0x248   : > { %v7983_v16 = vrot.slane %v6458_v0, 4  ;;  %v2570_v17 = vsel %vm2143_vm3, %v2568_v24, %v2569_v60  ;;  %v2610_v20 = vadd.f32 %v2569_v60, %v2507_v42  ;;  %v2672_v5 = vrot.slane %v2631_v26, 4 }
 0x249   : > { %v2673_v35 = vrot.slane %v2632_v10, 4  ;;  %v2573_v1 = vsel %vm2143_vm3, %v2571_v51, %v7743_v53  ;;  %v2609_v31 = vadd.f32 %v2570_v17, %v2506_v9  ;;  %v2675_v52 = vrot.slane %v2633_v12, 4 }
 0x24a   : > { %v2712_v22 = vadd.f32 %v7983_v16, %v2608_v46  ;;  %v7740_v48 = vrot.slane %v6873_v40, 4  ;;  %v2611_v23 = vadd.f32 %v2573_v1, %v2508_v4  ;;  %v2735_v0 = vmul.f32 %v7859_v56, %v5513_v3 }
 0x24b   : > { %v2674_v44 = vsel %vm2659_vm4, %v2672_v5, %v2673_v35  ;;  %v2714_v47 = vadd.f32 %v2673_v35, %v2610_v20  ;;  %v2736_v46 = vmul.f32 %v7859_v56, %v7853_v57  ;;  %v2737_v9 = vmul.f32 %v7859_v56, %v7886_v36 }
 0x24c   : > { %v2677_v42 = vsel %vm2659_vm4, %v2675_v52, %v7740_v48  ;;  %v2713_v24 = vadd.f32 %v2674_v44, %v2609_v31  ;;  %v6894_v4 = vmul.f32 %v7859_v56, %v7887_v13  ;;  %v2775_v51 = vrot.slane %v2735_v0, 4 }
 0x24d   : > { %v2715_v60 = vadd.f32 %v2677_v42, %v2611_v23  ;;  %v7984_v26 = vrot.slane %v6478_v6, 4  ;;  %v2776_v10 = vrot.slane %v2736_v46, 4  ;;  %v2778_v12 = vrot.slane %v2737_v9, 4 }
 0x24e   : > { %v2838_v16 = vmul.f32 %v7870_v55, %v7886_v36  ;;  %v2839_v17 = vmul.f32 %v7870_v55, %v7887_v13  ;;  %v7742_v20 = vrot.slane %v6894_v4, 4  ;;  %v2840_v5 = vmul.f32 %v7870_v55, %v7888_v58 }
 0x24f   : > { %v2815_v3 = vadd.f32 %v7984_v26, %v2712_v22  ;;  %v6907_v35 = vmul.f32 %v7870_v55, %v7905_v32  ;;  %v7985_v6 = vrot.slane %v6492_v38, 4  ;;  %v2777_v1 = vsel %vm2659_vm4, %v2775_v51, %v2776_v10 }
 0x250   : > { %v2817_v31 = vadd.f32 %v2776_v10, %v2714_v47  ;;  %v2878_v52 = vrot.slane %v2838_v16, 4  ;;  %v2879_v23 = vrot.slane %v2839_v17, 4  ;;  %v2780_v44 = vsel %vm2659_vm4, %v2778_v12, %v7742_v20  ;;  %v7986_v16 = vld [vmem:[#allocation63_spill] sm:$0xff] }
 0x251   : > { %v2918_v22 = vadd.f32 %v7985_v6, %v2815_v3  ;;  %v2816_v0 = vadd.f32 %v2777_v1, %v2713_v24  ;;  %v2881_v42 = vrot.slane %v2840_v5, 4  ;;  %v7741_v46 = vrot.slane %v6907_v35, 4 }
 0x252   : > { %v2818_v9 = vadd.f32 %v2780_v44, %v2715_v60  ;;  %v2880_v26 = vsel %vm2659_vm4, %v2878_v52, %v2879_v23  ;;  %v2920_v48 = vadd.f32 %v2879_v23, %v2817_v31  ;;  %v2941_v38 = vmul.f32 %v7878_v21, %v7888_v58  ;;  %v7988_v31 = vld [vmem:[#allocation23_spill] sm:$0xff] }
 0x253   : > { %v2883_v47 = vsel %vm2659_vm4, %v2881_v42, %v7741_v46  ;;  %v2919_v51 = vadd.f32 %v2880_v26, %v2816_v0  ;;  %v2942_v3 = vmul.f32 %v7878_v21, %v7905_v32  ;;  %v2943_v24 = vmul.f32 %v7878_v21, %v7941_v7 }
 0x254   : > { %v2921_v10 = vadd.f32 %v2883_v47, %v2818_v9  ;;  %v6928_v60 = vmul.f32 %v7878_v21, %v7942_v50  ;;  %v2981_v12 = vrot.slane %v2941_v38, 4  ;;  %v7987_v17 = vrot.slane %v7986_v16, 4  ;;  %v7989_v9 = vld [vmem:[#allocation20_spill] sm:$0xff] }
 0x255   : > { %v2982_v6 = vrot.slane %v2942_v3, 4  ;;  %v2984_v1 = vrot.slane %v2943_v24, 4  ;;  %v3044_v52 = vmul.f32 %v7988_v31, %v7941_v7  ;;  %v3045_v23 = vmul.f32 %v7988_v31, %v7942_v50 }
 0x256   : > { %v3021_v5 = vadd.f32 %v7987_v17, %v2918_v22  ;;  %v7748_v44 = vrot.slane %v6928_v60, 4  ;;  %v3046_v0 = vmul.f32 %v7988_v31, %v7943_v39  ;;  %v6941_v42 = vmul.f32 %v7988_v31, %v7961_v30  ;;  %v7991_v31 = vld [vmem:[#allocation60_spill] sm:$0xff] }
 0x257   : > { %v7990_v26 = vrot.slane %v7989_v9, 4  ;;  %v2983_v38 = vsel %vm2659_vm4, %v2981_v12, %v2982_v6  ;;  %v3023_v47 = vadd.f32 %v2982_v6, %v2920_v48  ;;  %v3084_v3 = vrot.slane %v3044_v52, 4 }
 0x258   : > { %v3085_v24 = vrot.slane %v3045_v23, 4  ;;  %v2986_v16 = vsel %vm2659_vm4, %v2984_v1, %v7748_v44  ;;  %v3022_v17 = vadd.f32 %v2983_v38, %v2919_v51  ;;  %v3087_v46 = vrot.slane %v3046_v0, 4  ;;  %v7992_v23 = vld [vmem:[#allocation21_spill] sm:$0xff] }
 0x259   : > { %v3124_v22 = vadd.f32 %v7990_v26, %v3021_v5  ;;  %v7747_v20 = vrot.slane %v6941_v42, 4  ;;  %v3024_v53 = vadd.f32 %v2986_v16, %v2921_v10  ;;  %v3358_v5 = vcombine.high %v7991_v31, %v7991_v31 }
 0x25a   : > { %v3086_v2 = vsel %vm2659_vm4, %v3084_v3, %v3085_v24  ;;  %v3126_v41 = vadd.f32 %v3085_v24, %v3023_v47  ;;  %v3388_v6 = vcombine.high %v6574_v8, %v6574_v8  ;;  %v886_v0 = vmul.f32 %v7992_v23, %v7853_v57 }
 0x25b   : > { %v3089_v48 = vsel %vm2659_vm4, %v3087_v46, %v7747_v20  ;;  %v3125_v12 = vadd.f32 %v3086_v2, %v3022_v17  ;;  %v3397_v51 = vrot.slane %v3124_v22, %v7882_v11  ;;  %v3386_v10 = vrot.slane %v3358_v5, %v7882_v11 }
 0x25c   : > { %v6959_v1 = vadd.f32 %v3089_v48, %v3024_v53  ;;  %v3460_v52 = vrot.slane %v3126_v41, %v7882_v11  ;;  %v887_v2 = vmul.f32 %v7992_v23, %v7886_v36  ;;  %v888_v47 = vmul.f32 %v7992_v23, %v7887_v13 }
 0x25d   : > { %v3404_v31 = vrot.slane %v3397_v51, %v7882_v11  ;;  %v3405_v9 = vcombine.high %v3125_v12, %v3125_v12  ;;  %v3412_v46 = vrot.slane %v3125_v12, %v7882_v11  ;;  %v3390_v8 = vcombine.high %v3386_v10, %v3386_v10 }
 0x25e   : > { %v3467_v26 = vrot.slane %v3460_v52, %v7882_v11  ;;  %v3475_v53 = vrot.slane %v6959_v1, %v7882_v11  ;;  %v3916_v22 = vcombine.low %v3386_v10, %v3388_v6  ;;  %v7993_v6 = vld [vmem:[#allocation17_spill] sm:$0xff] }
 0x25f   : > { %v3419_v41 = vrot.slane %v3405_v9, %v7882_v11  ;;  %v3420_v38 = vcombine.high %v3412_v46, %v3412_v46  ;;  %v3428_v57 = vrot.slane %v3412_v46, %v7882_v11  ;;  %v3917_v16 = vcombine.low %v3390_v8, %v3404_v31 }
 0x260   : > { %v3483_v3 = vcombine.high %v3475_v53, %v3475_v53  ;;  %v3491_v24 = vrot.slane %v3475_v53, %v7882_v11  ;;  %v3926_v17 = vrot.slane %v3916_v22, %v7882_v11  ;;  %v926_v51 = vmul.f32 %v7993_v6, %v7887_v13 }
 0x261   : > { %v3421_v5 = vcombine.high %v3419_v41, %v3419_v41  ;;  %v3435_v48 = vrot.slane %v3419_v41, %v7882_v11  ;;  %v3442_v12 = vrot.slane %v3420_v38, %v7882_v11  ;;  %v3933_v23 = vrot.slane %v3917_v16, %v7882_v11 }
 0x262   : > { %v6983_v10 = vrot.slane %v3483_v3, %v7882_v11  ;;  %v3513_v52 = vcombine.high %v3491_v24, %v3491_v24  ;;  %v3967_v9 = vcombine.low %v3467_v26, %v3491_v24  ;;  %v927_v53 = vmul.f32 %v7993_v6, %v7888_v58 }
 0x263   : > { %v3449_v46 = vrot.slane %v3421_v5, %v7882_v11  ;;  %v3918_v31 = vcombine.low %v3428_v57, %v3442_v12  ;;  %v4711_v8 = vcombine.high %v3428_v57, %v3442_v12  ;;  %v3948_v22 = vcombine.low %v3926_v17, %v3933_v23 }
 0x264   : > { %7994 = vst [vmem:[#allocation24_spill] sm:$0xff] %v6983_v10  ;;  %v3968_v41 = vcombine.low %v6983_v10, %v3513_v52  ;;  %v3989_v38 = vrot.slane %v3967_v9, %v7882_v11  ;;  %v928_v3 = vmul.f32 %v7993_v6, %v7905_v32  ;;  %v944_v12 = vadd.f32 %v926_v51, %v886_v0 }
 0x265   : > { %v3940_v20 = vrot.slane %v3918_v31, %v7882_v11  ;;  %v3947_v16 = vrot.slane %v4711_v8, %v7882_v11  ;;  %v3965_v26 = vcombine.low %v3435_v48, %v3449_v46  ;;  %v4712_v24 = vcombine.high %v3435_v48, %v3449_v46 }
 0x266   : > { %v3956_v5 = vrot.slane %v3948_v22, %v7882_v11  ;;  %v3996_v57 = vrot.slane %v3968_v41, %v7882_v11  ;;  %v945_v44 = vadd.f32 %v927_v53, %v887_v2  ;;  %v946_v9 = vadd.f32 %v928_v3, %v888_v47  ;;  %v4994_v22 = vld [vmem:[%s7537_s6] sm:$0xff]  }
 0x267   : > { %v3949_v17 = vcombine.low %v3940_v20, %v3947_v16  ;;  %v3975_v52 = vrot.slane %v3965_v26, %v7882_v11  ;;  %v3982_v23 = vrot.slane %v4712_v24, %v7882_v11  ;;  %v966_v6 = vmul.f32 %v7884_v54, %v7905_v32  ;;  %v7995_v26 = vld [vmem:[#allocation56_spill] sm:$0xff]  ;;  %4914 = vmatprep.subr.bf16.mxu0 %v4994_v22 }
 0x268   : > { %v3998_v10 = vcombine.low %v3989_v38, %v3996_v57  ;;  %v967_v31 = vmul.f32 %v7884_v54, %v7941_v7  ;;  %v968_v48 = vmul.f32 %v7884_v54, %v7942_v50  ;;  %v1006_v20 = vmul.f32 %v7885_v19, %v7942_v50  ;;  %v4995_v54 = vld [vmem:[%s7537_s6 + $0x8] sm:$0xff]   ;;  %v7996_v57 = vld [vmem:[#allocation58_spill] sm:$0xff]  ;;  %4915 = vmatpush3.bf16.msra.mxu0 %v4994_v22 }
 0x269   : > { %v3963_v46 = vrot.slane %v3949_v17, %v7882_v11  ;;  %v3997_v0 = vcombine.low %v3975_v52, %v3982_v23  ;;  %v1007_v2 = vmul.f32 %v7885_v19, %v7943_v39  ;;  %v984_v51 = vadd.f32 %v966_v6, %v944_v12  ;;  %v7997_v6 = vld [vmem:[#allocation18_spill] sm:$0xff]  ;;  %4916 = vmatprep.subr.bf16.mxu0 %v4995_v54 }
 0x26a   : > { %v4012_v47 = vrot.slane %v3998_v10, %v7882_v11  ;;  %v985_v8 = vadd.f32 %v967_v31, %v945_v44  ;;  %v986_v53 = vadd.f32 %v968_v48, %v946_v9  ;;  %v1008_v3 = vmul.f32 %v7885_v19, %v7961_v30 }
 0x26b   : > { %v3964_v41 = vcombine.low %v3956_v5, %v3963_v46  ;;  %v4005_v38 = vrot.slane %v3997_v0, %v7882_v11  ;;  %v1046_v10 = vmul.f32 %v7828_v15, %v7961_v30  ;;  %v1024_v16 = vadd.f32 %v1006_v20, %v984_v51 }
 0x26c   : > { %v1025_v44 = vadd.f32 %v1007_v2, %v985_v8  ;;  %v1047_v24 = vmul.f32 %v7828_v15, %v7995_v26  ;;  %v1048_v12 = vmul.f32 %v7828_v15, %v7996_v57  ;;  %v1026_v52 = vadd.f32 %v1008_v3, %v986_v53  ;;  %v4996_v15 = vld [vmem:[%s7537_s6 + $0x10] sm:$0xff]   ;;  %4917 = vmatpush3.bf16.msra.mxu0 %v4995_v54 }
 0x26d   : > { %v4013_v17 = vcombine.low %v4005_v38, %v4012_v47  ;;  %v1087_v5 = vmul.f32 %v7944_v28, %v7886_v36  ;;  %v1088_v19 = vmul.f32 %v7944_v28, %v7887_v13  ;;  %v1064_v23 = vadd.f32 %v1046_v10, %v1024_v16  ;;  %v7998_v47 = vld [vmem:[#allocation30_spill] sm:$0xff]  ;;  %4918 = vmatprep.subr.bf16.mxu0 %v4996_v15 }
 0x26e   : > { %v1065_v9 = vadd.f32 %v1047_v24, %v1025_v44  ;;  %v1191_v31 = vmul.f32 %v7997_v6, %v7888_v58  ;;  %v1192_v48 = vmul.f32 %v7997_v6, %v7905_v32  ;;  %v1066_v0 = vadd.f32 %v1048_v12, %v1026_v52 }
 0x26f   : > { %v4237_v46 = vpack.c.bf16 %v4013_v17, %v3964_v41  ;;  %v1130_v20 = vrot.slane %v1087_v5, 1  ;;  %v1131_v2 = vrot.slane %v1088_v19, 1  ;;  %v7999_v28 = vrot.slane %v7998_v47, 1  ;;  %v8000_v41 = vld [vmem:[#allocation26_spill] sm:$0xff]  ;;  %v4997_v19 = vld [vmem:[%s7537_s6 + $0x18] sm:$0xff]  }
 0x270   : > { %v1193_v8 = vmul.f32 %v7997_v6, %v7941_v7  ;;  %v7043_v53 = vmul.f32 %v7997_v6, %v7942_v50  ;;  %v1233_v22 = vrot.slane %v1191_v31, 1  ;;  %v1234_v10 = vrot.slane %v1192_v48, 1  ;;  %v8001_v17 = vld [vmem:[#allocation54_spill] sm:$0xff]  ;;  %4919 = vmatpush3.bf16.msra.mxu0 %v4996_v15 }
 0x271   : > { %v1168_v51 = vadd.f32 %v7999_v28, %v1064_v23  ;;  %4906 = vmatprep.mubr.bf16.mxu0 %v4237_v46  ;;  %v1132_v38 = vsel %vm1111_vm1, %v1130_v20, %v1131_v2  ;;  %v1170_v3 = vadd.f32 %v1131_v2, %v1066_v0  ;;  %v1294_v16 = vmul.f32 %v8000_v41, %v7941_v7  ;;  %v8003_v20 = vld [vmem:[#allocation9_spill] sm:$0xff] }
 0x272   : > { %v1169_v44 = vadd.f32 %v1132_v38, %v1065_v9  ;;  %v1236_v24 = vrot.slane %v1193_v8, 1  ;;  %v7750_v12 = vrot.slane %v7043_v53, 1  ;;  %v8002_v52 = vrot.slane %v8001_v17, 1  ;;  %4920 = vmatprep.subr.bf16.mxu0 %v4997_v19 }
 0x273   : > { %v1235_v23 = vsel %vm1111_vm1, %v1233_v22, %v1234_v10  ;;  %v1273_v6 = vadd.f32 %v1234_v10, %v1170_v3  ;;  %v1295_v31 = vmul.f32 %v8000_v41, %v7942_v50  ;;  %v1296_v54 = vmul.f32 %v8000_v41, %v7943_v39  ;;  %v8006_v3 = vld [vmem:[#allocation22_spill] sm:$0xff] }
 0x274   : > { %v1271_v5 = vadd.f32 %v8002_v52, %v1168_v51  ;;  %v1238_v9 = vsel %vm1111_vm1, %v1236_v24, %v7750_v12  ;;  %v1272_v48 = vadd.f32 %v1235_v23, %v1169_v44  ;;  %v7064_v46 = vmul.f32 %v8000_v41, %v7961_v30  ;;  %v8004_v51 = vld [vmem:[#allocation57_spill] sm:$0xff]  ;;  %v8007_v52 = vld [vmem:[#allocation15_spill] sm:$0xff]  ;;  %4921 = vmatpush3.bf16.msra.mxu0 %v4997_v19 }
 0x275   : > { %v1336_v0 = vrot.slane %v1294_v16, 1  ;;  %v1274_v2 = vadd.f32 %v1238_v9, %v8003_v20  ;;  %v1337_v47 = vrot.slane %v1295_v31, 1  ;;  %v1339_v28 = vrot.slane %v1296_v54, 1  ;;  %v4998_v16 = vld [vmem:[%s7537_s6 + $0x20] sm:$0xff]  }
 0x276   : > { %v8005_v8 = vrot.slane %v8004_v51, 1  ;;  %v7752_v38 = vrot.slane %v7064_v46, 1  ;;  %v1397_v10 = vmul.f32 %v8006_v3, %v7943_v39  ;;  %v1398_v44 = vmul.f32 %v8006_v3, %v7961_v30  ;;  %4922 = vmatprep.subr.bf16.mxu0 %v4998_v16 }
 0x277   : > { %v1399_v41 = vmul.f32 %v8006_v3, %v7995_v26  ;;  %v1338_v24 = vsel %vm1111_vm1, %v1336_v0, %v1337_v47  ;;  %v1376_v17 = vadd.f32 %v1337_v47, %v1273_v6  ;;  %v7082_v15 = vmul.f32 %v8006_v3, %v7996_v57  ;;  %v8009_v6 = vld [vmem:[#allocation4_spill] sm:$0xff] }
 0x278   : > { %v1374_v22 = vadd.f32 %v8005_v8, %v1271_v5  ;;  %v8008_v5 = vrot.slane %v8007_v52, 1  ;;  %v1341_v31 = vsel %vm1111_vm1, %v1339_v28, %v7752_v38  ;;  %v1375_v54 = vadd.f32 %v1338_v24, %v1272_v48  ;;  %v8010_v52 = vld [vmem:[#allocation64_spill] sm:$0xff]  ;;  %v8012_v28 = vld [vmem:[#allocation3_spill] sm:$0xff]  ;;  %4923 = vmatpush3.bf16.msra.mxu0 %v4998_v16 }
 0x279   : > { %v1439_v9 = vrot.slane %v1397_v10, 1  ;;  %v1440_v20 = vrot.slane %v1398_v44, 1  ;;  %v1377_v51 = vadd.f32 %v1341_v31, %v1274_v2  ;;  %v1442_v8 = vrot.slane %v1399_v41, 1  ;;  %v4999_v2 = vld [vmem:[%s7537_s6 + $0x28] sm:$0xff]  }
 0x27a   : > { %v1477_v23 = vadd.f32 %v8008_v5, %v1374_v22  ;;  %v7751_v12 = vrot.slane %v7082_v15, 1  ;;  %v1500_v0 = vmul.f32 %v8009_v6, %v7995_v26  ;;  %v1501_v22 = vmul.f32 %v8009_v6, %v7996_v57  ;;  %4924 = vmatprep.subr.bf16.mxu0 %v4999_v2 }
 0x27b   : > { %v1441_v47 = vsel %vm1111_vm1, %v1439_v9, %v1440_v20  ;;  %v1479_v3 = vadd.f32 %v1440_v20, %v1376_v17  ;;  %v8011_v5 = vrot.slane %v8010_v52, 1  ;;  %v8013_v48 = vrot.slane %v8012_v28, 1  ;;  %v8015_v20 = vld [vmem:[#allocation8_spill] sm:$0xff] }
 0x27c   : > { %v1444_v19 = vsel %vm1111_vm1, %v1442_v8, %v7751_v12  ;;  %v1478_v44 = vadd.f32 %v1441_v47, %v1375_v54  ;;  %v1542_v41 = vrot.slane %v1500_v0, 1  ;;  %v8014_v24 = vrot.slane %v6690_v37, 1  ;;  %v8017_v54 = vld [vmem:[#allocation2_spill] sm:$0xff]  ;;  %v8019_v37 = vld [vmem:[#allocation19_spill] sm:$0xff]  ;;  %4925 = vmatpush3.bf16.msra.mxu0 %v4999_v2 }
 0x27d   : > { %v1547_v10 = vsel %vm1111_vm1, %v8013_v48, %v8011_v5  ;;  %v1480_v31 = vadd.f32 %v1444_v19, %v1377_v51  ;;  %v1543_v9 = vrot.slane %v1501_v22, 1  ;;  %v1603_v6 = vmul.f32 %v8015_v20, %v7886_v36 }
 0x27e   : > { %v1580_v17 = vadd.f32 %v8014_v24, %v1477_v23  ;;  %v1604_v5 = vmul.f32 %v8015_v20, %v7887_v13  ;;  %v1605_v28 = vmul.f32 %v8015_v20, %v7888_v58  ;;  %v7116_v48 = vmul.f32 %v8015_v20, %v7905_v32  ;;  %v5000_v24 = vld [vmem:[%s7537_s6 + $0x30] sm:$0xff]  }
 0x27f   : > { %v8018_v8 = vrot.slane %v8017_v54, 2  ;;  %v1707_v23 = vmul.f32 %v8019_v37, %v7888_v58  ;;  %v1544_v51 = vsel %vm1111_vm1, %v1542_v41, %v1543_v9  ;;  %v1582_v47 = vadd.f32 %v1543_v9, %v1479_v3  ;;  %4926 = vmatprep.subr.bf16.mxu0 %v5000_v24 }
 0x280   : > { %8016 = vst [vmem:[#allocation25_spill] sm:$0xff] %v7116_v48  ;;  %v1583_v22 = vadd.f32 %v1547_v10, %v1480_v31  ;;  %v1646_v19 = vrot.slane %v1603_v6, 2  ;;  %v1581_v12 = vadd.f32 %v1544_v51, %v1478_v44  ;;  %v1647_v20 = vrot.slane %v1604_v5, 2  ;;  %4927 = vmatpush3.bf16.msra.mxu0 %v5000_v24 }
 0x281   : > { %v1684_v0 = vadd.f32 %v8018_v8, %v1580_v17  ;;  %v1649_v38 = vrot.slane %v1605_v28, 2  ;;  %v7754_v54 = vrot.slane %v7116_v48, 2  ;;  %v1708_v17 = vmul.f32 %v8019_v37, %v7905_v32 }
 0x282   : > { %v1709_v16 = vmul.f32 %v8019_v37, %v7941_v7  ;;  %v7133_v3 = vmul.f32 %v8019_v37, %v7942_v50  ;;  %v1749_v10 = vrot.slane %v1707_v23, 2  ;;  %v1648_v41 = vsel %vm1627_vm2, %v1646_v19, %v1647_v20  ;;  %v5001_v37 = vld [vmem:[%s7537_s6 + $0x38] sm:$0xff]   ;;  %v8021_v19 = vld [vmem:[#allocation27_spill] sm:$0xff] }
 0x283   : > { %v1651_v44 = vsel %vm1627_vm2, %v1649_v38, %v7754_v54  ;;  %v1686_v31 = vadd.f32 %v1647_v20, %v1582_v47  ;;  %v8020_v9 = vrot.slane %v6724_v33, 2  ;;  %v1685_v5 = vadd.f32 %v1648_v41, %v1581_v12  ;;  %v8023_v47 = vld [vmem:[#allocation32_spill] sm:$0xff]  ;;  %4928 = vmatprep.subr.bf16.mxu0 %v5001_v37 }
 0x284   : > { %v1687_v28 = vadd.f32 %v1651_v44, %v1583_v22  ;;  %v1750_v8 = vrot.slane %v1708_v17, 2  ;;  %v1752_v51 = vrot.slane %v1709_v16, 2  ;;  %v7756_v23 = vrot.slane %v7133_v3, 2  ;;  %4929 = vmatpush3.bf16.msra.mxu0 %v5001_v37 }
 0x285   : > { %v1787_v6 = vadd.f32 %v8020_v9, %v1684_v0  ;;  %v1810_v48 = vmul.f32 %v8021_v19, %v7941_v7  ;;  %v1811_v38 = vmul.f32 %v8021_v19, %v7942_v50  ;;  %v1812_v33 = vmul.f32 %v8021_v19, %v7943_v39 }
 0x286   : > { %v1751_v12 = vsel %vm1627_vm2, %v1749_v10, %v1750_v8  ;;  %v1789_v2 = vadd.f32 %v1750_v8, %v1686_v31  ;;  %v7154_v0 = vmul.f32 %v8021_v19, %v7961_v30  ;;  %v8024_v22 = vrot.slane %v8023_v47, 2  ;;  %v8025_v31 = vld [vmem:[#allocation5_spill] sm:$0xff] }
 0x287   : > { %v1754_v17 = vsel %vm1627_vm2, %v1752_v51, %v7756_v23  ;;  %v1788_v16 = vadd.f32 %v1751_v12, %v1685_v5  ;;  %v1852_v41 = vrot.slane %v1810_v48, 2  ;;  %v1853_v44 = vrot.slane %v1811_v38, 2 }
 0x288   : > { %8022 = vst [vmem:[#allocation40_spill] sm:$0xff] %v7154_v0  ;;  %v1890_v20 = vadd.f32 %v8024_v22, %v1787_v6  ;;  %v1790_v9 = vadd.f32 %v1754_v17, %v1687_v28  ;;  %v1855_v54 = vrot.slane %v1812_v33, 2  ;;  %v7755_v10 = vrot.slane %v7154_v0, 2 }
 0x289   : > { %v1913_v8 = vmul.f32 %v8025_v31, %v7943_v39  ;;  %v1854_v19 = vsel %vm1627_vm2, %v1852_v41, %v1853_v44  ;;  %v1892_v47 = vadd.f32 %v1853_v44, %v1789_v2  ;;  %v1914_v6 = vmul.f32 %v8025_v31, %v7961_v30  ;;  %v8027_v41 = vld [vmem:[#allocation6_spill] sm:$0xff] }
 0x28a   : > { %v1915_v5 = vmul.f32 %v8025_v31, %v7995_v26  ;;  %v1857_v48 = vsel %vm1627_vm2, %v1855_v54, %v7755_v10  ;;  %v1891_v24 = vadd.f32 %v1854_v19, %v1788_v16  ;;  %v7174_v28 = vmul.f32 %v8025_v31, %v7996_v57  ;;  %v8028_v16 = vld [vmem:[#allocation61_spill] sm:$0xff]  ;;  %v8029_v19 = vld [vmem:[#allocation62_spill] sm:$0xff] }
 0x28b   : > { %v1955_v51 = vrot.slane %v1913_v8, 2  ;;  %v1893_v38 = vadd.f32 %v1857_v48, %v1790_v9  ;;  %v1956_v33 = vrot.slane %v1914_v6, 2  ;;  %v8026_v2 = vrot.slane %v6758_v45, 2 }
 0x28c   : > { %v1958_v12 = vrot.slane %v1915_v5, 2  ;;  %v1959_v17 = vrot.slane %v7174_v28, 2  ;;  %v2016_v44 = vmul.f32 %v8027_v41, %v7995_v26  ;;  %v2017_v54 = vmul.f32 %v8027_v41, %v7996_v57 }
 0x28d   : > { %v1993_v22 = vadd.f32 %v8026_v2, %v1890_v20  ;;  %v2018_v31 = vmul.f32 %v8027_v41, %v8028_v16  ;;  %v1957_v8 = vsel %vm1627_vm2, %v1955_v51, %v1956_v33  ;;  %v1995_v9 = vadd.f32 %v1956_v33, %v1892_v47 }
 0x28e   : > { %v7188_v6 = vmul.f32 %v8027_v41, %v8029_v19  ;;  %v8030_v45 = vrot.slane %v6771_v14, 2  ;;  %v1960_v20 = vsel %vm1627_vm2, %v1958_v12, %v1959_v17  ;;  %v1994_v5 = vadd.f32 %v1957_v8, %v1891_v24 }
 0x28f   : > { %v2058_v48 = vrot.slane %v2016_v44, 2  ;;  %v2059_v2 = vrot.slane %v2017_v54, 2  ;;  %v1996_v10 = vadd.f32 %v1960_v20, %v1893_v38  ;;  %v2061_v23 = vrot.slane %v2018_v31, 2 }
 0x290   : > { %v2096_v37 = vadd.f32 %v8030_v45, %v1993_v22  ;;  %v2062_v0 = vrot.slane %v7188_v6, 2  ;;  %v2119_v47 = vmul.f32 %v7924_v18, %v7886_v36  ;;  %v2120_v14 = vmul.f32 %v7924_v18, %v7887_v13 }
 0x291   : > { %v2060_v51 = vsel %vm1627_vm2, %v2058_v48, %v2059_v2  ;;  %v2098_v33 = vadd.f32 %v2059_v2, %v1995_v9  ;;  %v2121_v22 = vmul.f32 %v7924_v18, %v7888_v58  ;;  %v7208_v12 = vmul.f32 %v7924_v18, %v7905_v32 }
 0x292   : > { %v2063_v24 = vsel %vm1627_vm2, %v2061_v23, %v2062_v0  ;;  %v2097_v38 = vadd.f32 %v2060_v51, %v1994_v5  ;;  %v2162_v41 = vrot.slane %v2119_v47, 3  ;;  %v2163_v54 = vrot.slane %v2120_v14, 3 }
 0x293   : > { %v2099_v44 = vadd.f32 %v2063_v24, %v1996_v10  ;;  %v2165_v31 = vrot.slane %v2121_v22, 3  ;;  %v8031_v8 = vrot.slane %v6792_v49, 3  ;;  %v2166_v45 = vrot.slane %v7208_v12, 3 }
 0x294   : > { %v2223_v20 = vmul.f32 %v5334_v29, %v7888_v58  ;;  %v2224_v23 = vmul.f32 %v5334_v29, %v7905_v32  ;;  %v2225_v5 = vmul.f32 %v5334_v29, %v7941_v7  ;;  %v2164_v18 = vsel %vm2143_vm3, %v2162_v41, %v2163_v54 }
 0x295   : > { %v2200_v9 = vadd.f32 %v8031_v8, %v2096_v37  ;;  %v2202_v48 = vadd.f32 %v2163_v54, %v2098_v33  ;;  %v7222_v10 = vmul.f32 %v5334_v29, %v7942_v50  ;;  %v8032_v49 = vrot.slane %v6805_v43, 3 }
 0x296   : > { %v2167_v2 = vsel %vm2143_vm3, %v2165_v31, %v2166_v45  ;;  %v2201_v47 = vadd.f32 %v2164_v18, %v2097_v38  ;;  %v2265_v51 = vrot.slane %v2223_v20, 3  ;;  %v2266_v14 = vrot.slane %v2224_v23, 3 }
 0x297   : > { %v2303_v37 = vadd.f32 %v8032_v49, %v2200_v9  ;;  %v2203_v22 = vadd.f32 %v2167_v2, %v2099_v44  ;;  %v2268_v24 = vrot.slane %v2225_v5, 3  ;;  %v2269_v8 = vrot.slane %v7222_v10, 3 }
 0x298   : > { %v2326_v33 = vmul.f32 %v7824_v61, %v7941_v7  ;;  %v2267_v29 = vsel %vm2143_vm3, %v2265_v51, %v2266_v14  ;;  %v2305_v41 = vadd.f32 %v2266_v14, %v2202_v48  ;;  %v2327_v43 = vmul.f32 %v7824_v61, %v7942_v50 }
 0x299   : > { %v2328_v54 = vmul.f32 %v7824_v61, %v7943_v39  ;;  %v2270_v38 = vsel %vm2143_vm3, %v2268_v24, %v2269_v8  ;;  %v2304_v44 = vadd.f32 %v2267_v29, %v2201_v47  ;;  %v7242_v31 = vmul.f32 %v7824_v61, %v7961_v30 }
 0x29a   : > { %v2368_v9 = vrot.slane %v2326_v33, 3  ;;  %v2306_v20 = vadd.f32 %v2270_v38, %v2203_v22  ;;  %v2369_v23 = vrot.slane %v2327_v43, 3  ;;  %v8033_v18 = vrot.slane %v6826_v63, 3 }
 0x29b   : > { %v2371_v5 = vrot.slane %v2328_v54, 3  ;;  %v2372_v49 = vrot.slane %v7242_v31, 3  ;;  %v2429_v2 = vmul.f32 %v7834_v62, %v7943_v39  ;;  %v2430_v51 = vmul.f32 %v7834_v62, %v7961_v30 }
 0x29c   : > { %v2406_v48 = vadd.f32 %v8033_v18, %v2303_v37  ;;  %v2431_v47 = vmul.f32 %v7834_v62, %v7995_v26  ;;  %v2370_v61 = vsel %vm2143_vm3, %v2368_v9, %v2369_v23  ;;  %v2408_v14 = vadd.f32 %v2369_v23, %v2305_v41 }
 0x29d   : > { %v7256_v22 = vmul.f32 %v7834_v62, %v7996_v57  ;;  %v8034_v63 = vrot.slane %v6839_v25, 3  ;;  %v2373_v24 = vsel %vm2143_vm3, %v2371_v5, %v2372_v49  ;;  %v2407_v33 = vadd.f32 %v2370_v61, %v2304_v44 }
 0x29e   : > { %v2471_v29 = vrot.slane %v2429_v2, 3  ;;  %v2472_v43 = vrot.slane %v2430_v51, 3  ;;  %v2409_v54 = vadd.f32 %v2373_v24, %v2306_v20  ;;  %v2474_v38 = vrot.slane %v2431_v47, 3 }
 0x29f   : > { %v2509_v37 = vadd.f32 %v8034_v63, %v2406_v48  ;;  %v2475_v18 = vrot.slane %v7256_v22, 3  ;;  %v2532_v41 = vmul.f32 %v7840_v59, %v7995_v26  ;;  %v2533_v25 = vmul.f32 %v7840_v59, %v7996_v57 }
 0x2a0   : > { %v2473_v62 = vsel %vm2143_vm3, %v2471_v29, %v2472_v43  ;;  %v2511_v9 = vadd.f32 %v2472_v43, %v2408_v14  ;;  %v2534_v23 = vmul.f32 %v7840_v59, %v8028_v16  ;;  %v7276_v5 = vmul.f32 %v7840_v59, %v8029_v19 }
 0x2a1   : > { %v2476_v44 = vsel %vm2143_vm3, %v2474_v38, %v2475_v18  ;;  %v2510_v20 = vadd.f32 %v2473_v62, %v2407_v33  ;;  %v2574_v48 = vrot.slane %v2532_v41, 3  ;;  %v2575_v51 = vrot.slane %v2533_v25, 3 }
 0x2a2   : > { %v2512_v2 = vadd.f32 %v2476_v44, %v2409_v54  ;;  %v2577_v47 = vrot.slane %v2534_v23, 3  ;;  %v8035_v61 = vrot.slane %v6860_v34, 3  ;;  %v2578_v63 = vrot.slane %v7276_v5, 3 }
 0x2a3   : > { %v2635_v24 = vmul.f32 %v7856_v27, %v7886_v36  ;;  %v2636_v29 = vmul.f32 %v7856_v27, %v7887_v13  ;;  %v2637_v33 = vmul.f32 %v7856_v27, %v7888_v58  ;;  %v2576_v59 = vsel %vm2143_vm3, %v2574_v48, %v2575_v51 }
 0x2a4   : > { %v2612_v14 = vadd.f32 %v8035_v61, %v2509_v37  ;;  %v2614_v43 = vadd.f32 %v2575_v51, %v2511_v9  ;;  %v7290_v54 = vmul.f32 %v7856_v27, %v7905_v32  ;;  %v8036_v34 = vrot.slane %v6873_v40, 4 }
 0x2a5   : > { %v2579_v36 = vsel %vm2143_vm3, %v2577_v47, %v2578_v63  ;;  %v2613_v38 = vadd.f32 %v2576_v59, %v2510_v20  ;;  %v2678_v41 = vrot.slane %v2635_v24, 4  ;;  %v2679_v13 = vrot.slane %v2636_v29, 4 }
 0x2a6   : > { %v2716_v37 = vadd.f32 %v8036_v34, %v2612_v14  ;;  %v2615_v62 = vadd.f32 %v2579_v36, %v2512_v2  ;;  %v2681_v25 = vrot.slane %v2637_v33, 4  ;;  %v2682_v23 = vrot.slane %v7290_v54, 4 }
 0x2a7   : > { %v2739_v9 = vmul.f32 %v7859_v56, %v7888_v58  ;;  %v2680_v27 = vsel %vm2659_vm4, %v2678_v41, %v2679_v13  ;;  %v2718_v44 = vadd.f32 %v2679_v13, %v2614_v43  ;;  %v2740_v40 = vmul.f32 %v7859_v56, %v7905_v32 }
 0x2a8   : > { %v2741_v48 = vmul.f32 %v7859_v56, %v7941_v7  ;;  %v2683_v20 = vsel %vm2659_vm4, %v2681_v25, %v2682_v23  ;;  %v2717_v2 = vadd.f32 %v2680_v27, %v2613_v38  ;;  %v7310_v51 = vmul.f32 %v7859_v56, %v7942_v50 }
 0x2a9   : > { %v2781_v47 = vrot.slane %v2739_v9, 4  ;;  %v2719_v58 = vadd.f32 %v2683_v20, %v2615_v62  ;;  %v2782_v61 = vrot.slane %v2740_v40, 4  ;;  %v8037_v24 = vrot.slane %v6894_v4, 4 }
 0x2aa   : > { %v2784_v14 = vrot.slane %v2741_v48, 4  ;;  %v2785_v32 = vrot.slane %v7310_v51, 4  ;;  %v2842_v33 = vmul.f32 %v7870_v55, %v7941_v7  ;;  %v2843_v59 = vmul.f32 %v7870_v55, %v7942_v50 }
 0x2ab   : > { %v2819_v29 = vadd.f32 %v8037_v24, %v2716_v37  ;;  %v2844_v43 = vmul.f32 %v7870_v55, %v7943_v39  ;;  %v2783_v56 = vsel %vm2659_vm4, %v2781_v47, %v2782_v61  ;;  %v2821_v34 = vadd.f32 %v2782_v61, %v2718_v44 }
 0x2ac   : > { %v7324_v36 = vmul.f32 %v7870_v55, %v7961_v30  ;;  %v8038_v4 = vrot.slane %v6907_v35, 4  ;;  %v2786_v7 = vsel %vm2659_vm4, %v2784_v14, %v2785_v32  ;;  %v2820_v38 = vadd.f32 %v2783_v56, %v2717_v2 }
 0x2ad   : > { %v2884_v41 = vrot.slane %v2842_v33, 4  ;;  %v2885_v50 = vrot.slane %v2843_v59, 4  ;;  %v2822_v13 = vadd.f32 %v2786_v7, %v2719_v58  ;;  %v2887_v62 = vrot.slane %v2844_v43, 4 }
 0x2ae   : > { %v2922_v37 = vadd.f32 %v8038_v4, %v2819_v29  ;;  %v2888_v25 = vrot.slane %v7324_v36, 4  ;;  %v2945_v9 = vmul.f32 %v7878_v21, %v7943_v39  ;;  %v2946_v35 = vmul.f32 %v7878_v21, %v7961_v30  ;;  %v8040_v29 = vld [vmem:[#allocation23_spill] sm:$0xff] }
 0x2af   : > { %v2886_v27 = vsel %vm2659_vm4, %v2884_v41, %v2885_v50  ;;  %v2924_v44 = vadd.f32 %v2885_v50, %v2821_v34  ;;  %v2947_v40 = vmul.f32 %v7878_v21, %v7995_v26  ;;  %v7344_v2 = vmul.f32 %v7878_v21, %v7996_v57 }
 0x2b0   : > { %v2889_v48 = vsel %vm2659_vm4, %v2887_v62, %v2888_v25  ;;  %v2923_v20 = vadd.f32 %v2886_v27, %v2820_v38  ;;  %v2987_v47 = vrot.slane %v2945_v9, 4  ;;  %v2988_v58 = vrot.slane %v2946_v35, 4 }
 0x2b1   : > { %v2925_v39 = vadd.f32 %v2889_v48, %v2822_v13  ;;  %v2990_v61 = vrot.slane %v2947_v40, 4  ;;  %v8039_v14 = vrot.slane %v6928_v60, 4  ;;  %v2991_v30 = vrot.slane %v7344_v2, 4  ;;  %v8042_v40 = vld [vmem:[#allocation24_spill] sm:$0xff] }
 0x2b2   : > { %v3048_v33 = vmul.f32 %v8040_v29, %v7995_v26  ;;  %v3049_v59 = vmul.f32 %v8040_v29, %v7996_v57  ;;  %v3050_v43 = vmul.f32 %v8040_v29, %v8028_v16  ;;  %v2989_v56 = vsel %vm2659_vm4, %v2987_v47, %v2988_v58 }
 0x2b3   : > { %v3025_v24 = vadd.f32 %v8039_v14, %v2922_v37  ;;  %v3027_v34 = vadd.f32 %v2988_v58, %v2924_v44  ;;  %v7358_v4 = vmul.f32 %v8040_v29, %v8029_v19  ;;  %v8041_v60 = vrot.slane %v6941_v42, 4  ;;  %v8043_v58 = vld [vmem:[#allocation65_spill] sm:$0xff] }
 0x2b4   : > { %v2992_v7 = vsel %vm2659_vm4, %v2990_v61, %v2991_v30  ;;  %v3026_v38 = vadd.f32 %v2989_v56, %v2923_v20  ;;  %v3090_v41 = vrot.slane %v3048_v33, 4  ;;  %v3091_v50 = vrot.slane %v3049_v59, 4 }
 0x2b5   : > { %v3128_v37 = vadd.f32 %v8041_v60, %v3025_v24  ;;  %v3028_v13 = vadd.f32 %v2992_v7, %v2925_v39  ;;  %v3093_v62 = vrot.slane %v3050_v43, 4  ;;  %v3094_v9 = vrot.slane %v7358_v4, 4 }
 0x2b6   : > { %v3468_v27 = vcombine.high %v6959_v1, %v6959_v1  ;;  %v3092_v44 = vsel %vm2659_vm4, %v3090_v41, %v3091_v50  ;;  %v3130_v35 = vadd.f32 %v3091_v50, %v3027_v34  ;;  %v3515_v42 = vcombine.high %v8042_v40, %v8042_v40 }
 0x2b7   : > { %v3523_v48 = vrot.slane %v3128_v37, %v7882_v11  ;;  %v3095_v20 = vsel %vm2659_vm4, %v3093_v62, %v3094_v9  ;;  %v3129_v47 = vadd.f32 %v3092_v44, %v3026_v38  ;;  %v8044_v61 = vrot.slane %v7043_v53, 1 }
 0x2b8   : > { %v3482_v39 = vrot.slane %v3468_v27, %v7882_v11  ;;  %v7379_v1 = vadd.f32 %v3095_v20, %v3028_v13  ;;  %v3586_v29 = vrot.slane %v3130_v35, %v7882_v11  ;;  %v2846_v33 = vmul.f32 %v7870_v55, %v7995_v26 }
 0x2b9   : > { %v1275_v14 = vadd.f32 %v8044_v61, %v8043_v58  ;;  %v3530_v24 = vrot.slane %v3523_v48, %v7882_v11  ;;  %v3531_v56 = vcombine.high %v3129_v47, %v3129_v47  ;;  %v3538_v34 = vrot.slane %v3129_v47, %v7882_v11 }
 0x2ba   : > { %v3484_v59 = vcombine.high %v3482_v39, %v3482_v39  ;;  %v3498_v43 = vrot.slane %v3482_v39, %v7882_v11  ;;  %v3593_v60 = vrot.slane %v3586_v29, %v7882_v11  ;;  %v7390_v53 = vrot.slane %v7379_v1, %v7882_v11 }
 0x2bb   : > { %v8045_v37 = vrot.slane %v7064_v46, 1  ;;  %v2847_v38 = vmul.f32 %v7870_v55, %v7996_v57  ;;  %v3545_v50 = vrot.slane %v3531_v56, %v7882_v11  ;;  %v3546_v13 = vcombine.high %v3538_v34, %v3538_v34  ;;  %v8048_v56 = vld [vmem:[#allocation25_spill] sm:$0xff] }
 0x2bc   : > { %v3512_v26 = vrot.slane %v3484_v59, %v7882_v11  ;;  %v3514_v41 = vcombine.high %v3498_v43, %v3498_v43  ;;  %v3554_v62 = vrot.slane %v3538_v34, %v7882_v11  ;;  %v7401_v27 = vrot.slane %v7390_v53, %v7882_v11 }
 0x2bd   : > { %v1378_v7 = vadd.f32 %v8045_v37, %v1275_v14  ;;  %v4014_v44 = vcombine.low %v3515_v42, %v3498_v43  ;;  %v8046_v35 = vrot.slane %v7082_v15, 1  ;;  %v3547_v48 = vcombine.high %v3545_v50, %v3545_v50 }
 0x2be   : > { %v3516_v40 = vcombine.high %v3512_v26, %v3512_v26  ;;  %v3561_v55 = vrot.slane %v3545_v50, %v7882_v11  ;;  %v3568_v57 = vrot.slane %v3546_v13, %v7882_v11  ;;  %v4015_v20 = vcombine.low %v3512_v26, %v3514_v41 }
 0x2bf   : > { %v1481_v46 = vadd.f32 %v8046_v35, %v1378_v7  ;;  %v4024_v47 = vrot.slane %v4014_v44, %v7882_v11  ;;  %v4066_v39 = vcombine.low %v3593_v60, %v7401_v27  ;;  %v8047_v58 = vrot.slane %v8010_v52, 1 }
 0x2c0   : > { %v3575_v14 = vrot.slane %v3547_v48, %v7882_v11  ;;  %v4016_v42 = vcombine.low %v3516_v40, %v3530_v24  ;;  %v4017_v29 = vcombine.low %v3554_v62, %v3568_v57  ;;  %v4713_v15 = vcombine.high %v3554_v62, %v3568_v57  ;;  %v8051_v48 = vld [vmem:[#allocation13_spill] sm:$0xff]  ;;  %v8052_v57 = vld [vmem:[#allocation50_spill] sm:$0xff] }
 0x2c1   : > { %v1584_v61 = vadd.f32 %v8047_v58, %v1481_v46  ;;  %v4031_v59 = vrot.slane %v4015_v20, %v7882_v11  ;;  %v4094_v43 = vrot.slane %v4066_v39, %v7882_v11  ;;  %v8049_v34 = vrot.slane %v8048_v56, 2 }
 0x2c2   : > { %v2890_v7 = vrot.slane %v2846_v33, 4  ;;  %v4038_v26 = vrot.slane %v4016_v42, %v7882_v11  ;;  %v4045_v60 = vrot.slane %v4017_v29, %v7882_v11  ;;  %v4064_v41 = vcombine.low %v3561_v55, %v3575_v14  ;;  %v8056_v29 = vld [vmem:[#allocation38_spill] sm:$0xff] }
 0x2c3   : > { %v1688_v37 = vadd.f32 %v8049_v34, %v1584_v61  ;;  %v4714_v52 = vcombine.high %v3561_v55, %v3575_v14  ;;  %v4046_v50 = vcombine.low %v4024_v47, %v4031_v59  ;;  %v4073_v13 = vrot.slane %v4713_v15, %v7882_v11  ;;  %v8054_v55 = vld [vmem:[#allocation40_spill] sm:$0xff] }
 0x2c4   : > { %v8050_v24 = vrot.slane %v7133_v3, 2  ;;  %v2891_v44 = vrot.slane %v2847_v38, 4  ;;  %v4047_v35 = vcombine.low %v4038_v26, %v4045_v60  ;;  %v4080_v46 = vrot.slane %v4064_v41, %v7882_v11  ;;  %v8057_v41 = vld [vmem:[#allocation28_spill] sm:$0xff] }
 0x2c5   : > { %v4087_v40 = vrot.slane %v4714_v52, %v7882_v11  ;;  %v2949_v33 = vmul.f32 %v7878_v21, %v8028_v16  ;;  %v8053_v20 = vrot.slane %v8052_v57, 4  ;;  %v8055_v47 = vrot.slane %v8054_v55, 2 }
 0x2c6   : > { %v1791_v62 = vadd.f32 %v8050_v24, %v1688_v37  ;;  %v2892_v61 = vsel %vm2659_vm4, %v2890_v7, %v2891_v44  ;;  %v2950_v3 = vmul.f32 %v7878_v21, %v8029_v19  ;;  %v4061_v38 = vrot.slane %v4047_v35, %v7882_v11 }
 0x2c7   : > { %v2722_v39 = vadd.f32 %v8053_v20, %v8051_v48  ;;  %v4095_v14 = vcombine.low %v4073_v13, %v4080_v46  ;;  %v4096_v42 = vcombine.low %v4087_v40, %v4094_v43  ;;  %v2927_v15 = vadd.f32 %v2892_v61, %v8056_v29 }
 0x2c8   : > { %v1894_v58 = vadd.f32 %v8055_v47, %v1791_v62  ;;  %v2993_v59 = vrot.slane %v2949_v33, 4  ;;  %v2994_v56 = vrot.slane %v2950_v3, 4  ;;  %v4054_v34 = vrot.slane %v4046_v50, %v7882_v11  ;;  %v8059_v50 = vld [vmem:[#allocation16_spill] sm:$0xff] }
 0x2c9   : > { %v4103_v37 = vrot.slane %v4095_v14, %v7882_v11  ;;  %v4110_v7 = vrot.slane %v4096_v42, %v7882_v11  ;;  %v8058_v52 = vrot.slane %v8057_v41, 4  ;;  %v3594_v46 = vcombine.high %v7379_v1, %v7379_v1 }
 0x2ca   : > { %v1997_v16 = vadd.f32 %v1959_v17, %v1894_v58  ;;  %v2995_v19 = vsel %vm2659_vm4, %v2993_v59, %v2994_v56  ;;  %v4062_v26 = vcombine.low %v4054_v34, %v4061_v38  ;;  %v3609_v12 = vcombine.high %v7390_v53, %v7390_v53 }
 0x2cb   : > { %v4111_v43 = vcombine.low %v4103_v37, %v4110_v7  ;;  %v3030_v60 = vadd.f32 %v2995_v19, %v2927_v15  ;;  %v2825_v28 = vadd.f32 %v8058_v52, %v2722_v39  ;;  %v3639_v3 = vcombine.high %v7401_v27, %v7401_v27 }
 0x2cc   : > { %v2100_v21 = vadd.f32 %v2062_v0, %v1997_v16  ;;  %v3631_v20 = vrot.slane %v3609_v12, %v7882_v11  ;;  %v4726_v12 = vld [vmem:[%s7535_s4 + $0x5] ss:$0 sm:$0xff] }
 0x2cd   : > { %v4238_v13 = vpack.c.bf16 %v4111_v43, %v4062_v26  ;;  %v3133_v24 = vadd.f32 %v8059_v50, %v3030_v60  ;;  %v2928_v35 = vadd.f32 %v2891_v44, %v2825_v28 }
 0x2ce   : > { %v2204_v17 = vadd.f32 %v2166_v45, %v2100_v21  ;;  %v4112_v16 = vcombine.low %v3631_v20, %v3639_v3 }
 0x2cf   : > { %4907 = vmatmul.mubr.bf16.gmra.mrb[8].mxu0 %v4238_v13  ;;  %v3657_v0 = vcombine.high %v3133_v24, %v3133_v24  ;;  %v3664_v40 = vrot.slane %v3133_v24, %v7882_v11  ;;  %v3031_v33 = vadd.f32 %v2994_v56, %v2928_v35 }
 0x2d0   : > { %v2307_v62 = vadd.f32 %v2269_v8, %v2204_v17  ;;  %v8060_v8 = vld [vmem:[#allocation12_spill] sm:$0xff]  ;;  %v4122_v19 = vrot.slane %v4112_v16, %v7882_v11 }
 0x2d1   : > { %v3671_v45 = vrot.slane %v3657_v0, %v7882_v11  ;;  %v8061_v44 = vrot.slane %v8060_v8, 4  ;;  %v3672_v1 = vcombine.high %v3664_v40, %v3664_v40  ;;  %v3680_v61 = vrot.slane %v3664_v40, %v7882_v11  ;;  %v4725_v40 = vld [vmem:[%s7535_s4 + $0x4] ss:$0 sm:$0xff] }
 0x2d2   : > { %v2410_v6 = vadd.f32 %v2372_v49, %v2307_v62  ;;  %v3608_v49 = vrot.slane %v3594_v46, %v7882_v11 }
 0x2d3   : > { %v3134_v48 = vadd.f32 %v8061_v44, %v3031_v33  ;;  %v3673_v57 = vcombine.high %v3671_v45, %v3671_v45  ;;  %v3687_v55 = vrot.slane %v3671_v45, %v7882_v11  ;;  %v3694_v47 = vrot.slane %v3672_v1, %v7882_v11 }
 0x2d4   : > { %v2513_v10 = vadd.f32 %v2475_v18, %v2410_v6  ;;  %v3610_v18 = vcombine.high %v3608_v49, %v3608_v49  ;;  %v3624_v5 = vrot.slane %v3608_v49, %v7882_v11 }
 0x2d5   : > { %v3701_v39 = vrot.slane %v3673_v57, %v7882_v11  ;;  %v4161_v38 = vcombine.low %v3680_v61, %v3694_v47  ;;  %v4715_v14 = vcombine.high %v3680_v61, %v3694_v47  ;;  %v3712_v59 = vrot.slane %v3134_v48, %v7882_v11 }
 0x2d6   : > { %v2616_v31 = vadd.f32 %v2578_v63, %v2513_v10  ;;  %v3641_v63 = vcombine.high %v3631_v20, %v3631_v20  ;;  %v3640_v42 = vcombine.high %v3624_v5, %v3624_v5 }
 0x2d7   : > { %v4163_v54 = vcombine.low %v3687_v55, %v3701_v39  ;;  %v4178_v56 = vrot.slane %v4715_v14, %v7882_v11  ;;  %v3719_v7 = vrot.slane %v3712_v59, %v7882_v11 }
 0x2d8   : > { %v2720_v53 = vadd.f32 %v2682_v23, %v2616_v31  ;;  %v4716_v23 = vcombine.high %v3687_v55, %v3701_v39  ;;  %v4113_v36 = vcombine.low %v3641_v63, %v3624_v5 }
 0x2d9   : > { %v4216_v28 = vrot.slane %v3719_v7, %v7882_v11 }
 0x2da   : > { %v2823_v22 = vadd.f32 %v2785_v32, %v2720_v53  ;;  %v3638_v32 = vrot.slane %v3610_v18, %v7882_v11  ;;  %v4192_v15 = vrot.slane %v4716_v23, %v7882_v11  ;;  %v4129_v4 = vrot.slane %v4113_v36, %v7882_v11 }
 0x2db   : > { %v4223_v35 = vrot.slane %v4216_v28, %v7882_v11 }
 0x2dc   : > { %v2926_v58 = vadd.f32 %v2888_v25, %v2823_v22  ;;  %v4185_v25 = vrot.slane %v4163_v54, %v7882_v11  ;;  %v3642_v27 = vcombine.high %v3638_v32, %v3638_v32  ;;  %v4114_v37 = vcombine.low %v3638_v32, %v3640_v42 }
 0x2dd   : > { %v4144_v41 = vcombine.low %v4122_v19, %v4129_v4  ;;  %v4240_v46 = vpack.c.bf16 %v4223_v35, %v4223_v35 }
 0x2de   : > { %v3029_v51 = vadd.f32 %v2991_v30, %v2926_v58  ;;  %v4171_v30 = vrot.slane %v4161_v38, %v7882_v11  ;;  %v4136_v43 = vrot.slane %v4114_v37, %v7882_v11 }
 0x2df   : > { %v4152_v50 = vrot.slane %v4144_v41, %v7882_v11 }
 0x2e0   : > { %v3132_v29 = vadd.f32 %v3094_v9, %v3029_v51  ;;  %v4194_v9 = vcombine.low %v4185_v25, %v4192_v15  ;;  %v4193_v26 = vcombine.low %v4171_v30, %v4178_v56 }
 0x2e2   : > { %v3649_v2 = vrot.slane %v3132_v29, %v7882_v11  ;;  %v4208_v52 = vrot.slane %v4194_v9, %v7882_v11  ;;  %v4201_v13 = vrot.slane %v4193_v26, %v7882_v11 }
 0x2e4   : > { %v3656_v34 = vrot.slane %v3649_v2, %v7882_v11  ;;  %v4209_v62 = vcombine.low %v4201_v13, %v4208_v52  ;;  %v4904_v33 = vpop.f32.mrb[4].mxu0  ;;  %v4727_v52 = vld [vmem:[%s7538_s7] ss:$0 sm:$0xff] }
 0x2e5   : > { %v4392_v45 = vmul.f32 %v4904_v33, %v4725_v40  ;;  %v4339_v10 = vpop.f32.mrb[5].mxu0 }
 0x2e6   : > { %v4115_v21 = vcombine.low %v3642_v27, %v3656_v34  ;;  %v4390_v8 = vmul.f32 %v4725_v40, %v4339_v10  ;;  %v4905_v44 = vpop.f32.mrb[6].mxu0 }
 0x2e7   : > { %v4408_v48 = vadd.f32 %v4726_v12, %v4392_v45  ;;  %v4342_v57 = vpop.f32.mrb[7].mxu0 }
 0x2e8   : > { %v4143_v60 = vrot.slane %v4115_v21, %v7882_v11  ;;  %v4406_v31 = vadd.f32 %v4726_v12, %v4390_v8  ;;  %v4391_v49 = vmul.f32 %v4725_v40, %v4342_v57 }
 0x2e9   : > { %v4419_v53 = vmax.f32 %v4408_v48, 0.0 }
 0x2ea   : > { %v4145_v17 = vcombine.low %v4136_v43, %v4143_v60  ;;  %v4407_v20 = vadd.f32 %v4726_v12, %v4391_v49  ;;  %v4417_v22 = vmax.f32 %v4406_v31, 0.0 }
 0x2ec   : > { %v4159_v24 = vrot.slane %v4145_v17, %v7882_v11  ;;  %v4393_v11 = vmul.f32 %v4905_v44, %v4725_v40  ;;  %v4418_v18 = vmax.f32 %v4407_v20, 0.0 }
 0x2ee   : > { %v4160_v0 = vcombine.low %v4152_v50, %v4159_v24  ;;  %v4409_v1 = vadd.f32 %v4726_v12, %v4393_v11  ;;  %v4428_v47 = vpack.c.bf16 %v4418_v18, %v4417_v22 }
 0x2f0   : > { %v4239_v6 = vpack.c.bf16 %v4209_v62, %v4160_v0  ;;  %v4420_v39 = vmax.f32 %v4409_v1, 0.0 }
 0x2f2   : > { %4910 = vmatprep.mubr.bf16.mxu0 %v4239_v6  ;;  %v4429_v55 = vpack.c.bf16 %v4420_v39, %v4419_v53 }
 0x2f3   : > { %4911 = vmatmul.mubr.bf16.gmra.mrb[12].mxu0 %v4240_v46 }
 0x2f4   : > { %4930 = vmatprep.mubr.bf16.mxu0 %v4428_v47 }
 0x2fb   : > { %4931 = vmatmul.mubr.bf16.vlgmr.msra.gmra.mrb[16].mxu0 %v4429_v55 }
 0x3a2   : > { %v4908_v5 = vpop.f32.mrb[8].mxu0 }
 0x3a3   : > { %v4396_v63 = vmul.f32 %v4908_v5, %v4725_v40  ;;  %v4355_v58 = vpop.f32.mrb[9].mxu0 }
 0x3a4   : > { %v4394_v61 = vmul.f32 %v4725_v40, %v4355_v58  ;;  %v4909_v54 = vpop.f32.mrb[10].mxu0 }
 0x3a5   : > { %v4412_v23 = vadd.f32 %v4726_v12, %v4396_v63  ;;  %v4397_v3 = vmul.f32 %v4909_v54, %v4725_v40  ;;  %v4358_v51 = vpop.f32.mrb[11].mxu0 }
 0x3a6   : > { %v4410_v32 = vadd.f32 %v4726_v12, %v4394_v61  ;;  %v4395_v38 = vmul.f32 %v4725_v40, %v4358_v51 }
 0x3a7   : > { %v4413_v14 = vadd.f32 %v4726_v12, %v4397_v3  ;;  %v4423_v29 = vmax.f32 %v4412_v23, 0.0 }
 0x3a8   : > { %v4411_v42 = vadd.f32 %v4726_v12, %v4395_v38  ;;  %v4421_v25 = vmax.f32 %v4410_v32, 0.0 }
 0x3a9   : > { %v4424_v36 = vmax.f32 %v4413_v14, 0.0 }
 0x3aa   : > { %v4422_v15 = vmax.f32 %v4411_v42, 0.0 }
 0x3ab   : > { %v4431_v16 = vpack.c.bf16 %v4424_v36, %v4423_v29 }
 0x3ac   : > { %v4430_v59 = vpack.c.bf16 %v4422_v15, %v4421_v25 }
 0x3ae   : > { %4934 = vmatprep.mubr.bf16.mxu0 %v4430_v59 }
 0x3af   : > { %4935 = vmatmul.mubr.bf16.gmra.mrb[20].mxu0 %v4431_v16 }
 0x3c6   : > { %v4912_v27 = vpop.f32.mrb[12].mxu0 }
 0x3c7   : > { %v4400_v2 = vmul.f32 %v4912_v27, %v4725_v40  ;;  %v4371_v30 = vpop.f32.mrb[13].mxu0 }
 0x3c8   : > { %v4398_v56 = vmul.f32 %v4725_v40, %v4371_v30  ;;  %v4913_v34 = vpop.f32.mrb[14].mxu0 }
 0x3c9   : > { %v4416_v37 = vadd.f32 %v4726_v12, %v4400_v2  ;;  %v4374_v4 = vpop.f32.mrb[15].mxu0 }
 0x3ca   : > { %v4414_v9 = vadd.f32 %v4726_v12, %v4398_v56  ;;  %v4399_v7 = vmul.f32 %v4725_v40, %v4374_v4 }
 0x3cb   : > { %v4427_v19 = vmax.f32 %v4416_v37, 0.0 }
 0x3cc   : > { %v4415_v21 = vadd.f32 %v4726_v12, %v4399_v7  ;;  %v4425_v26 = vmax.f32 %v4414_v9, 0.0 }
 0x3cd   : > { %v4433_v41 = vpack.c.bf16 %v4427_v19, %v4427_v19 }
 0x3ce   : > { %v4426_v43 = vmax.f32 %v4415_v21, 0.0  ;;  %v4932_v28 = vpop.f32.mrb[16].mxu0 }
 0x3cf   : > { %v4548_v17 = vadd.f32 %v4932_v28, %v4727_v52  ;;  %v4539_v13 = vpop.f32.mrb[17].mxu0 }
 0x3d0   : > { %v4432_v60 = vpack.c.bf16 %v4426_v43, %v4425_v26  ;;  %v4540_v50 = vadd.f32 %v4727_v52, %v4539_v13  ;;  %v4933_v24 = vpop.f32.mrb[18].mxu0 }
 0x3d1   : > { %4587 = vst [vmem:[%s7515_s16 + $0x10] sm:$0xff] %v4548_v17  ;;  %v4551_v62 = vadd.f32 %v4933_v24, %v4727_v52  ;;  %v4542_v35 = vpop.f32.mrb[19].mxu0 }
 0x3d2   : > { %4938 = vmatprep.mubr.bf16.mxu0 %v4432_v60  ;;  %4585 = vst [vmem:[%s7515_s16] sm:$0xff] %v4540_v50  ;;  %v4543_v0 = vadd.f32 %v4727_v52, %v4542_v35 }
 0x3d3   : > { %4939 = vmatmul.mubr.bf16.gmra.mrb[24].mxu0 %v4433_v41  ;;  %4588 = vst [vmem:[%s7515_s16 + $0x18] sm:$0xff] %v4551_v62 }
 0x3d4   : > { %4586 = vst [vmem:[%s7515_s16 + $0x8] sm:$0xff] %v4543_v0 }
 0x482   : > { %v4936_v6 = vpop.f32.mrb[20].mxu0 }
 0x483   : > { %v4564_v46 = vadd.f32 %v4936_v6, %v4727_v52  ;;  %v4555_v40 = vpop.f32.mrb[21].mxu0 }
 0x484   : > { %v4556_v33 = vadd.f32 %v4727_v52, %v4555_v40  ;;  %v4937_v12 = vpop.f32.mrb[22].mxu0 }
 0x485   : > { %4591 = vst [vmem:[%s7515_s16 + $0x30] sm:$0xff] %v4564_v46  ;;  %v4567_v45 = vadd.f32 %v4937_v12, %v4727_v52  ;;  %v4558_v10 = vpop.f32.mrb[23].mxu0 }
 0x486   : > { %4589 = vst [vmem:[%s7515_s16 + $0x20] sm:$0xff] %v4556_v33  ;;  %v4559_v8 = vadd.f32 %v4727_v52, %v4558_v10 }
 0x487   : > { %4592 = vst [vmem:[%s7515_s16 + $0x38] sm:$0xff] %v4567_v45 }
 0x488   : > { %4590 = vst [vmem:[%s7515_s16 + $0x28] sm:$0xff] %v4559_v8 }
 0x4a6   : > { %v4940_v44 = vpop.f32.mrb[24].mxu0 }
 0x4a7   : > { %v4580_v48 = vadd.f32 %v4940_v44, %v4727_v52  ;;  %v4571_v11 = vpop.f32.mrb[25].mxu0 }
 0x4a8   : > { %v4572_v57 = vadd.f32 %v4727_v52, %v4571_v11  ;;  %v4941_v31 = vpop.f32.mrb[26].mxu0 }
 0x4a9   : > { %4595 = vst [vmem:[%s7515_s16 + $0x50] sm:$0x1] %v4580_v48  ;;  %v4574_v49 = vpop.f32.mrb[27].mxu0 }
 0x4aa   : > { %4593 = vst [vmem:[%s7515_s16 + $0x40] sm:$0xff] %v4572_v57  ;;  %v4575_v1 = vadd.f32 %v4727_v52, %v4574_v49 }
 0x4ac   : > { %4594 = vst [vmem:[%s7515_s16 + $0x48] sm:$0xff] %v4575_v1 }
 0x4ad PF: > { %s18_s27 = sadd.s32 1, %s5008_s27  }
 0x4ae   : > { %p15_p4 = scmp.ge.s32.totalorder %s18_s27, 4  }
 0x4b0   :  { %17 = sbr.rel (!%p15_p4) target bundleno = 1 (0x1), region = 85 }

</bundles_post_ra>
